<compile_context>
chip_gen: v7x
topology: tpu7x:2x2x1
jax: 0.10.0
libtpu: 0.0.40
codegen_flags: <defaults>
</compile_context>

<pallas_src>
import jax
import jax.numpy as jnp
from jax.experimental import pallas as pl
from jax.experimental.pallas import tpu as pltpu

HIDDEN = 8       # VAE hidden_dim (latent size)
DFR_HID = 64     # dist_fun hidden width (PyTorch default hidden_dim=64)


def _round_up(n, m):
    return (n + m - 1) // m * m


# ----------------------------------------------------------------- kernel ---

def _vae_fused_kernel(
        # batch-tiled inputs
        x_ref, u_ref,
        # first-needed / small weights (auto-pipelined, VMEM-resident)
        w1_ref, b1_ref, b2_ref,
        bml1_ref, wm2_ref, bm2_ref, wl2_ref, bl2_ref,
        einv_ref, binv1_ref, ginv_ref, binv2_ref,
        ef_ref, bf1_ref, gf_ref, bf2_ref,
        wd1_ref, bd1_ref, bd2_ref, bd3_ref, bd4_ref,
        # large later-used weights left in HBM (manual, overlapped DMA)
        w2_hbm, wml1_hbm, wd2_hbm, wd3_hbm, wd4_hbm,
        # outputs
        xrec_ref, small_ref,
        # scratch: VMEM destinations for the manual weight copies + DMA sems
        w2_v, wml1_v, wd2_v, wd3_v, wd4_v, sem):
    f32 = jnp.float32
    bf16 = jnp.bfloat16
    first = pl.program_id(0) == 0

    cp_w2 = pltpu.make_async_copy(w2_hbm, w2_v, sem.at[0])
    cp_wml1 = pltpu.make_async_copy(wml1_hbm, wml1_v, sem.at[1])
    cp_wd2 = pltpu.make_async_copy(wd2_hbm, wd2_v, sem.at[2])
    cp_wd3 = pltpu.make_async_copy(wd3_hbm, wd3_v, sem.at[3])
    cp_wd4 = pltpu.make_async_copy(wd4_hbm, wd4_v, sem.at[4])

    # Kick off every big-weight DMA up front (first grid step only); they
    # overlap with the fc1 matmul + tanh chain below.
    @pl.when(first)
    def _start_weight_dma():
        cp_w2.start()
        cp_wml1.start()
        cp_wd2.start()
        cp_wd3.start()
        cp_wd4.start()

    # ---------------- encode: fc1 -> relu -> fc_mu / fc_logvar -------------
    x = x_ref[...].astype(bf16)                                    # (TB, F)
    h = jnp.tanh(jnp.dot(x, w1_ref[...], preferred_element_type=f32)
                 + b1_ref[...])                                    # (TB, 512)

    @pl.when(first)
    def _wait_w2():
        cp_w2.wait()
    h = jnp.dot(h.astype(bf16), w2_v[...], preferred_element_type=f32) \
        + b2_ref[...]                                              # (TB, 256)
    h = jnp.maximum(h, 0.0)                                        # F.relu

    @pl.when(first)
    def _wait_wml1():
        cp_wml1.wait()
    # merged first layers of fc_mu | fc_logvar -> lane-dense (TB, 256)
    m = jnp.tanh(jnp.dot(h.astype(bf16), wml1_v[...],
                         preferred_element_type=f32) + bml1_ref[...])
    mb = m.astype(bf16)
    mu = jnp.dot(mb[:, :128], wm2_ref[...], preferred_element_type=f32) \
        + bm2_ref[...]                                             # (TB, H)
    lv = jnp.dot(mb[:, 128:], wl2_ref[...], preferred_element_type=f32) \
        + bl2_ref[...]                                             # (TB, H)
    lv = jnp.clip(lv, -4.0, 4.0)                                   # max(min(.,4),-4)
    var = jnp.exp(lv)

    # ---------------- reparameterize: x = F_inv(u), u_hat = F(x) -----------
    u = u_ref[...]                                                 # (TB, H)
    hi = jax.nn.sigmoid(jnp.dot(u.astype(bf16), einv_ref[...],
                                preferred_element_type=f32) + binv1_ref[...])
    xs = jnp.dot(hi.astype(bf16), ginv_ref[...],
                 preferred_element_type=f32) + binv2_ref[...]      # (TB, H)
    hf = jax.nn.sigmoid(jnp.dot(xs.astype(bf16), ef_ref[...],
                                preferred_element_type=f32) + bf1_ref[...])
    uh = jnp.dot(hf.astype(bf16), gf_ref[...],
                 preferred_element_type=f32) + bf2_ref[...]        # (TB, H)
    z = mu + var * xs                                              # reference: z = mu + var * x

    # ---------------- decode: fc2 ------------------------------------------
    d = jnp.tanh(jnp.dot(z.astype(bf16), wd1_ref[...],
                         preferred_element_type=f32) + bd1_ref[...])    # (TB, 128)

    @pl.when(first)
    def _wait_wd2():
        cp_wd2.wait()
    d = jnp.tanh(jnp.dot(d.astype(bf16), wd2_v[...],
                         preferred_element_type=f32) + bd2_ref[...])    # (TB, 256)

    @pl.when(first)
    def _wait_wd3():
        cp_wd3.wait()
    d = jnp.tanh(jnp.dot(d.astype(bf16), wd3_v[...],
                         preferred_element_type=f32) + bd3_ref[...])    # (TB, 512)

    @pl.when(first)
    def _wait_wd4():
        cp_wd4.wait()
    xrec_ref[...] = jnp.dot(d.astype(bf16), wd4_v[...],
                            preferred_element_type=f32) + bd4_ref[...]  # (TB, F)

    # Packed small outputs: one output buffer / one writeback per step.
    small_ref[0] = var
    small_ref[1] = xs
    small_ref[2] = uh


# ---------------------------------------------------------------- wrapper ---

@jax.jit
def vae_forward(x, u, p):
    """Returns (x_reconstructed, u, x_sample, u_hat, var) like VAE.forward."""
    input_feat = p['w1'].shape[0]
    H = p['wm2'].shape[1]
    xf = x.reshape(-1, input_feat)               # x.view(-1, input_feat)
    B = xf.shape[0]

    # Batch tiling: pad to a sublane multiple, at most 128 rows per step.
    TB = min(128, _round_up(B, 8))
    B_pad = _round_up(B, TB)
    if B_pad != B:
        xf = jnp.pad(xf, ((0, B_pad - B), (0, 0)))
        up = jnp.pad(u, ((0, B_pad - B), (0, 0)))
    else:
        up = u
    n_steps = B_pad // TB

    def tile(cols):
        return pl.BlockSpec((TB, cols), lambda i: (i, 0))

    def whole(arr):
        nd = arr.ndim
        return pl.BlockSpec(arr.shape, lambda i: (0,) * nd)

    auto_keys = ('w1', 'b1', 'b2', 'bml1', 'wm2', 'bm2', 'wl2', 'bl2',
                 'einv', 'binv1', 'ginv', 'binv2', 'ef', 'bf1', 'gf', 'bf2',
                 'wd1', 'bd1', 'bd2', 'bd3', 'bd4')
    hbm_keys = ('w2', 'wml1', 'wd2', 'wd3', 'wd4')

    in_specs = ([tile(input_feat), tile(H)]
                + [whole(p[k]) for k in auto_keys]
                + [pl.BlockSpec(memory_space=pl.ANY)] * len(hbm_keys))

    grid_spec = pltpu.PrefetchScalarGridSpec(
        num_scalar_prefetch=0,
        grid=(n_steps,),
        in_specs=in_specs,
        out_specs=(tile(input_feat),
                   pl.BlockSpec((3, TB, H), lambda i: (0, i, 0))),
        scratch_shapes=[
            pltpu.VMEM((512, 256), jnp.bfloat16),          # w2
            pltpu.VMEM((256, 256), jnp.bfloat16),          # wml1 (mu|logvar)
            pltpu.VMEM((128, 256), jnp.bfloat16),          # wd2
            pltpu.VMEM((256, 512), jnp.bfloat16),          # wd3
            pltpu.VMEM((512, input_feat), jnp.bfloat16),   # wd4
            pltpu.SemaphoreType.DMA((5,)),
        ],
    )

    x_rec_pad, small = pl.pallas_call(
        _vae_fused_kernel,
        out_shape=(jax.ShapeDtypeStruct((B_pad, input_feat), jnp.float32),
                   jax.ShapeDtypeStruct((3, B_pad, H), jnp.float32)),
        grid_spec=grid_spec,
        compiler_params=pltpu.CompilerParams(
            # TODO(synk): "arbitrary" keeps the step-0-gated weight DMA
            # correct on a single TC; for large B on v7x, switch to
            # ("parallel",) with per-core weight fetch to use both cores.
            dimension_semantics=("arbitrary",),
            vmem_limit_bytes=24 * 1024 * 1024),
    )(xf, up,
      *[p[k] for k in auto_keys],
      *[p[k] for k in hbm_keys])

    x_rec = x_rec_pad[:B]
    var = small[0, :B, :]
    x_samp = small[1, :B, :]
    u_hat = small[2, :B, :]

    # PyTorch returns u / x / u_hat in (B*hidden_dim, 1) column form.
    return (x_rec,
            u.reshape(-1, 1),
            x_samp.reshape(-1, 1),
            u_hat.reshape(-1, 1),
            var)


# ----------------------------------------------------------------- params ---

def init_params(key, input_feat, hidden_dim, dfr_hidden=DFR_HID):
    keys = iter(jax.random.split(key, 32))
    bf16 = jnp.bfloat16

    def linear(fan_in, fan_out):
        k1, k2 = jax.random.split(next(keys))
        lim = float(fan_in) ** -0.5
        w = jax.random.uniform(k1, (fan_in, fan_out), jnp.float32, -lim, lim)
        b = jax.random.uniform(k2, (1, fan_out), jnp.float32, -lim, lim)
        return w, b

    p = {}
    # encoder fc1
    w1, p['b1'] = linear(input_feat, 512)
    w2, p['b2'] = linear(512, 256)
    p['w1'] = w1.astype(bf16)
    p['w2'] = w2.astype(bf16)
    # fc_mu / fc_logvar (first layers merged along the output dim)
    wm1, bm1 = linear(256, 128)
    wm2, p['bm2'] = linear(128, hidden_dim)
    wl1, bl1 = linear(256, 128)
    wl2, p['bl2'] = linear(128, hidden_dim)
    p['wm2'] = wm2.astype(bf16)
    p['wl2'] = wl2.astype(bf16)
    p['wml1'] = jnp.concatenate([wm1, wl1], axis=1).astype(bf16)   # (256, 256)
    p['bml1'] = jnp.concatenate([bm1, bl1], axis=1)                # (1, 256)
    # decoder fc2
    wd1, p['bd1'] = linear(hidden_dim, 128)
    wd2, p['bd2'] = linear(128, 256)
    wd3, p['bd3'] = linear(256, 512)
    wd4, p['bd4'] = linear(512, input_feat)
    p['wd1'] = wd1.astype(bf16)
    p['wd2'] = wd2.astype(bf16)
    p['wd3'] = wd3.astype(bf16)
    p['wd4'] = wd4.astype(bf16)

    def dist_fun_blocks():
        # dist_fun: Linear(1, K) -> Sigmoid -> Linear(K, 1), shared across the
        # H latent scalars (u.view(-1,1)).  Embedded as block matmuls:
        #   E[h, h*K + k] = w_a[k]   (per-column scale)
        #   G[h*K + k, h] = w_b[k]   (block-diagonal reduction back to H)
        wa, ba = linear(1, dfr_hidden)          # (1, K), (1, K)
        wb, bb = linear(dfr_hidden, 1)          # (K, 1), (1, 1)
        H, K = hidden_dim, dfr_hidden
        E = jnp.zeros((H, H * K), jnp.float32)
        G = jnp.zeros((H * K, H), jnp.float32)
        for h in range(H):
            E = E.at[h, h * K:(h + 1) * K].set(wa[0])
            G = G.at[h * K:(h + 1) * K, h].set(wb[:, 0])
        b1t = jnp.tile(ba, (1, H))              # (1, H*K)
        b2t = jnp.tile(bb, (1, H))              # (1, H)
        return E.astype(bf16), b1t, G.astype(bf16), b2t

    p['einv'], p['binv1'], p['ginv'], p['binv2'] = dist_fun_blocks()   # F_inv
    p['ef'], p['bf1'], p['gf'], p['bf2'] = dist_fun_blocks()           # F
    return p


# ------------------------------------------------------------------- main ---

if __name__ == "__main__":
    B, C, Hs, Ws = 2, 4, 16, 16
    input_feat = C * Hs * Ws          # 1024
    hidden_dim = HIDDEN               # 8

    key = jax.random.PRNGKey(0)
    kx, kp, ku = jax.random.split(key, 3)

    x = jax.random.normal(kx, (B, C, Hs, Ws), jnp.float32)
    params = init_params(kp, input_feat, hidden_dim)
    # uniforms replacing torch.rand_like(mu) in reparameterize()
    u = jax.random.uniform(ku, (B, hidden_dim), dtype=jnp.float32)

    outs = jax.block_until_ready(vae_forward(x, u, params))
    x_rec, u_out, x_samp, u_hat, var = outs

    assert x_rec.shape == (B, input_feat)
    assert u_out.shape == (B * hidden_dim, 1)
    assert x_samp.shape == (B * hidden_dim, 1)
    assert u_hat.shape == (B * hidden_dim, 1)
    assert var.shape == (B, hidden_dim)
    assert bool(jnp.all(jnp.isfinite(x_rec)))
    assert bool(jnp.all(jnp.isfinite(x_samp)))
    assert bool(jnp.all(jnp.isfinite(u_hat)))
    assert bool(jnp.all(var > 0))

    print("KERNEL_OK")
</pallas_src>

<mosaic_0001>
module attributes {stable_mosaic.version = 11 : i64} {
  func.func @_vae_fused_kernel(%arg0: i32, %arg1: memref<8x1024xf32, #tpu.memory_space<vmem>>, %arg2: memref<8x8xf32, #tpu.memory_space<vmem>>, %arg3: memref<1024x512xbf16, #tpu.memory_space<vmem>>, %arg4: memref<1x512xf32, #tpu.memory_space<vmem>>, %arg5: memref<1x256xf32, #tpu.memory_space<vmem>>, %arg6: memref<1x256xf32, #tpu.memory_space<vmem>>, %arg7: memref<128x8xbf16, #tpu.memory_space<vmem>>, %arg8: memref<1x8xf32, #tpu.memory_space<vmem>>, %arg9: memref<128x8xbf16, #tpu.memory_space<vmem>>, %arg10: memref<1x8xf32, #tpu.memory_space<vmem>>, %arg11: memref<8x512xbf16, #tpu.memory_space<vmem>>, %arg12: memref<1x512xf32, #tpu.memory_space<vmem>>, %arg13: memref<512x8xbf16, #tpu.memory_space<vmem>>, %arg14: memref<1x8xf32, #tpu.memory_space<vmem>>, %arg15: memref<8x512xbf16, #tpu.memory_space<vmem>>, %arg16: memref<1x512xf32, #tpu.memory_space<vmem>>, %arg17: memref<512x8xbf16, #tpu.memory_space<vmem>>, %arg18: memref<1x8xf32, #tpu.memory_space<vmem>>, %arg19: memref<8x128xbf16, #tpu.memory_space<vmem>>, %arg20: memref<1x128xf32, #tpu.memory_space<vmem>>, %arg21: memref<1x256xf32, #tpu.memory_space<vmem>>, %arg22: memref<1x512xf32, #tpu.memory_space<vmem>>, %arg23: memref<1x1024xf32, #tpu.memory_space<vmem>>, %arg24: memref<512x256xbf16, #tpu.memory_space<any>>, %arg25: memref<256x256xbf16, #tpu.memory_space<any>>, %arg26: memref<128x256xbf16, #tpu.memory_space<any>>, %arg27: memref<256x512xbf16, #tpu.memory_space<any>>, %arg28: memref<512x1024xbf16, #tpu.memory_space<any>>, %arg29: memref<8x1024xf32, #tpu.memory_space<vmem>>, %arg30: memref<3x8x8xf32, #tpu.memory_space<vmem>>, %arg31: memref<512x256xbf16, #tpu.memory_space<vmem>>, %arg32: memref<256x256xbf16, #tpu.memory_space<vmem>>, %arg33: memref<128x256xbf16, #tpu.memory_space<vmem>>, %arg34: memref<256x512xbf16, #tpu.memory_space<vmem>>, %arg35: memref<512x1024xbf16, #tpu.memory_space<vmem>>, %arg36: memref<5x!tpu.dma_semaphore, #tpu.memory_space<semaphore_mem>>) attributes {dimension_semantics = [#tpu.dimension_semantics<arbitrary>], iteration_bounds = array<i64: 1>, scalar_prefetch = 0 : i64, scratch_operands = 6 : i64, tpu.core_type = #tpu.core_type<tc>, window_params = [{transform_indices = @transform_0, window_bounds = array<i64: 8, 1024>}, {transform_indices = @transform_1, window_bounds = array<i64: 8, 8>}, {pipeline_mode = #tpu.pipeline_mode<synchronous>, transform_indices = @transform_2, window_bounds = array<i64: 1024, 512>}, {pipeline_mode = #tpu.pipeline_mode<synchronous>, transform_indices = @transform_3, window_bounds = array<i64: 1, 512>}, {pipeline_mode = #tpu.pipeline_mode<synchronous>, transform_indices = @transform_4, window_bounds = array<i64: 1, 256>}, {pipeline_mode = #tpu.pipeline_mode<synchronous>, transform_indices = @transform_5, window_bounds = array<i64: 1, 256>}, {pipeline_mode = #tpu.pipeline_mode<synchronous>, transform_indices = @transform_6, window_bounds = array<i64: 128, 8>}, {pipeline_mode = #tpu.pipeline_mode<synchronous>, transform_indices = @transform_7, window_bounds = array<i64: 1, 8>}, {pipeline_mode = #tpu.pipeline_mode<synchronous>, transform_indices = @transform_8, window_bounds = array<i64: 128, 8>}, {pipeline_mode = #tpu.pipeline_mode<synchronous>, transform_indices = @transform_9, window_bounds = array<i64: 1, 8>}, {pipeline_mode = #tpu.pipeline_mode<synchronous>, transform_indices = @transform_10, window_bounds = array<i64: 8, 512>}, {pipeline_mode = #tpu.pipeline_mode<synchronous>, transform_indices = @transform_11, window_bounds = array<i64: 1, 512>}, {pipeline_mode = #tpu.pipeline_mode<synchronous>, transform_indices = @transform_12, window_bounds = array<i64: 512, 8>}, {pipeline_mode = #tpu.pipeline_mode<synchronous>, transform_indices = @transform_13, window_bounds = array<i64: 1, 8>}, {pipeline_mode = #tpu.pipeline_mode<synchronous>, transform_indices = @transform_14, window_bounds = array<i64: 8, 512>}, {pipeline_mode = #tpu.pipeline_mode<synchronous>, transform_indices = @transform_15, window_bounds = array<i64: 1, 512>}, {pipeline_mode = #tpu.pipeline_mode<synchronous>, transform_indices = @transform_16, window_bounds = array<i64: 512, 8>}, {pipeline_mode = #tpu.pipeline_mode<synchronous>, transform_indices = @transform_17, window_bounds = array<i64: 1, 8>}, {pipeline_mode = #tpu.pipeline_mode<synchronous>, transform_indices = @transform_18, window_bounds = array<i64: 8, 128>}, {pipeline_mode = #tpu.pipeline_mode<synchronous>, transform_indices = @transform_19, window_bounds = array<i64: 1, 128>}, {pipeline_mode = #tpu.pipeline_mode<synchronous>, transform_indices = @transform_20, window_bounds = array<i64: 1, 256>}, {pipeline_mode = #tpu.pipeline_mode<synchronous>, transform_indices = @transform_21, window_bounds = array<i64: 1, 512>}, {pipeline_mode = #tpu.pipeline_mode<synchronous>, transform_indices = @transform_22, window_bounds = array<i64: 1, 1024>}, {}, {}, {}, {}, {}, {transform_indices = @transform_28, window_bounds = array<i64: 8, 1024>}, {transform_indices = @transform_29, window_bounds = array<i64: 3, 8, 8>}]} {
    %c0_i32 = arith.constant 0 : i32
    %0 = arith.cmpi eq, %arg0, %c0_i32 : i32
    %1 = arith.extui %0 : i1 to i32
    %c0_i32_0 = arith.constant 0 : i32
    %c1_i32 = arith.constant 1 : i32
    %c2_i32 = arith.constant 2 : i32
    %c3_i32 = arith.constant 3 : i32
    %c4_i32 = arith.constant 4 : i32
    %c0_i32_1 = arith.constant 0 : i32
    %2 = arith.cmpi ne, %1, %c0_i32_1 : i32
    scf.if %2 {
      %128 = tpu.memref_slice %arg36[%c0_i32_0] : memref<5x!tpu.dma_semaphore, #tpu.memory_space<semaphore_mem>> -> memref<1x!tpu.dma_semaphore, #tpu.memory_space<semaphore_mem>>
      %129 = tpu.memref_squeeze %128 : memref<1x!tpu.dma_semaphore, #tpu.memory_space<semaphore_mem>> -> memref<!tpu.dma_semaphore, #tpu.memory_space<semaphore_mem>>
      tpu.enqueue_dma source(%arg24 : memref<512x256xbf16, #tpu.memory_space<any>>) target(%arg31 : memref<512x256xbf16, #tpu.memory_space<vmem>>) target_semaphore(%129 : memref<!tpu.dma_semaphore, #tpu.memory_space<semaphore_mem>>)
      %130 = tpu.memref_slice %arg36[%c1_i32] : memref<5x!tpu.dma_semaphore, #tpu.memory_space<semaphore_mem>> -> memref<1x!tpu.dma_semaphore, #tpu.memory_space<semaphore_mem>>
      %131 = tpu.memref_squeeze %130 : memref<1x!tpu.dma_semaphore, #tpu.memory_space<semaphore_mem>> -> memref<!tpu.dma_semaphore, #tpu.memory_space<semaphore_mem>>
      tpu.enqueue_dma source(%arg25 : memref<256x256xbf16, #tpu.memory_space<any>>) target(%arg32 : memref<256x256xbf16, #tpu.memory_space<vmem>>) target_semaphore(%131 : memref<!tpu.dma_semaphore, #tpu.memory_space<semaphore_mem>>)
      %132 = tpu.memref_slice %arg36[%c2_i32] : memref<5x!tpu.dma_semaphore, #tpu.memory_space<semaphore_mem>> -> memref<1x!tpu.dma_semaphore, #tpu.memory_space<semaphore_mem>>
      %133 = tpu.memref_squeeze %132 : memref<1x!tpu.dma_semaphore, #tpu.memory_space<semaphore_mem>> -> memref<!tpu.dma_semaphore, #tpu.memory_space<semaphore_mem>>
      tpu.enqueue_dma source(%arg26 : memref<128x256xbf16, #tpu.memory_space<any>>) target(%arg33 : memref<128x256xbf16, #tpu.memory_space<vmem>>) target_semaphore(%133 : memref<!tpu.dma_semaphore, #tpu.memory_space<semaphore_mem>>)
      %134 = tpu.memref_slice %arg36[%c3_i32] : memref<5x!tpu.dma_semaphore, #tpu.memory_space<semaphore_mem>> -> memref<1x!tpu.dma_semaphore, #tpu.memory_space<semaphore_mem>>
      %135 = tpu.memref_squeeze %134 : memref<1x!tpu.dma_semaphore, #tpu.memory_space<semaphore_mem>> -> memref<!tpu.dma_semaphore, #tpu.memory_space<semaphore_mem>>
      tpu.enqueue_dma source(%arg27 : memref<256x512xbf16, #tpu.memory_space<any>>) target(%arg34 : memref<256x512xbf16, #tpu.memory_space<vmem>>) target_semaphore(%135 : memref<!tpu.dma_semaphore, #tpu.memory_space<semaphore_mem>>)
      %136 = tpu.memref_slice %arg36[%c4_i32] : memref<5x!tpu.dma_semaphore, #tpu.memory_space<semaphore_mem>> -> memref<1x!tpu.dma_semaphore, #tpu.memory_space<semaphore_mem>>
      %137 = tpu.memref_squeeze %136 : memref<1x!tpu.dma_semaphore, #tpu.memory_space<semaphore_mem>> -> memref<!tpu.dma_semaphore, #tpu.memory_space<semaphore_mem>>
      tpu.enqueue_dma source(%arg28 : memref<512x1024xbf16, #tpu.memory_space<any>>) target(%arg35 : memref<512x1024xbf16, #tpu.memory_space<vmem>>) target_semaphore(%137 : memref<!tpu.dma_semaphore, #tpu.memory_space<semaphore_mem>>)
    } else {
    }
    %c0 = arith.constant 0 : index
    %c0_2 = arith.constant 0 : index
    %3 = vector.load %arg1[%c0, %c0_2] : memref<8x1024xf32, #tpu.memory_space<vmem>>, vector<8x1024xf32>
    %4 = arith.truncf %3 : vector<8x1024xf32> to vector<8x1024xbf16>
    %c0_3 = arith.constant 0 : index
    %c0_4 = arith.constant 0 : index
    %5 = vector.load %arg3[%c0_3, %c0_4] : memref<1024x512xbf16, #tpu.memory_space<vmem>>, vector<1024x512xbf16>
    %cst = arith.constant dense<0.000000e+00> : vector<8x512xf32>
    %6 = tpu.matmul %4, %5, %cst {dimension_numbers = #tpu.dot_dimension_numbers<[1], [0], [0], [1], [0, 0, 1, 1], [], []>} : vector<8x1024xbf16>, vector<1024x512xbf16>, vector<8x512xf32> -> vector<8x512xf32>
    %c0_5 = arith.constant 0 : index
    %c0_6 = arith.constant 0 : index
    %7 = vector.load %arg4[%c0_5, %c0_6] : memref<1x512xf32, #tpu.memory_space<vmem>>, vector<1x512xf32>
    %8 = vector.broadcast %7 : vector<1x512xf32> to vector<8x512xf32>
    %9 = arith.addf %6, %8 : vector<8x512xf32>
    %10 = math.tanh %9 : vector<8x512xf32>
    %11 = arith.extui %0 : i1 to i32
    %c0_i32_7 = arith.constant 0 : i32
    %c0_i32_8 = arith.constant 0 : i32
    %12 = arith.cmpi ne, %11, %c0_i32_8 : i32
    scf.if %12 {
      %128 = tpu.memref_slice %arg36[%c0_i32_7] : memref<5x!tpu.dma_semaphore, #tpu.memory_space<semaphore_mem>> -> memref<1x!tpu.dma_semaphore, #tpu.memory_space<semaphore_mem>>
      %129 = tpu.memref_squeeze %128 : memref<1x!tpu.dma_semaphore, #tpu.memory_space<semaphore_mem>> -> memref<!tpu.dma_semaphore, #tpu.memory_space<semaphore_mem>>
      tpu.wait_dma2 semaphore(%129 : memref<!tpu.dma_semaphore, #tpu.memory_space<semaphore_mem>>) src(%arg24 : memref<512x256xbf16, #tpu.memory_space<any>>) dst(%arg31 : memref<512x256xbf16, #tpu.memory_space<vmem>>)
    } else {
    }
    %13 = arith.truncf %10 : vector<8x512xf32> to vector<8x512xbf16>
    %c0_9 = arith.constant 0 : index
    %c0_10 = arith.constant 0 : index
    %14 = vector.load %arg31[%c0_9, %c0_10] : memref<512x256xbf16, #tpu.memory_space<vmem>>, vector<512x256xbf16>
    %cst_11 = arith.constant dense<0.000000e+00> : vector<8x256xf32>
    %15 = tpu.matmul %13, %14, %cst_11 {dimension_numbers = #tpu.dot_dimension_numbers<[1], [0], [0], [1], [0, 0, 1, 1], [], []>} : vector<8x512xbf16>, vector<512x256xbf16>, vector<8x256xf32> -> vector<8x256xf32>
    %c0_12 = arith.constant 0 : index
    %c0_13 = arith.constant 0 : index
    %16 = vector.load %arg5[%c0_12, %c0_13] : memref<1x256xf32, #tpu.memory_space<vmem>>, vector<1x256xf32>
    %17 = vector.broadcast %16 : vector<1x256xf32> to vector<8x256xf32>
    %18 = arith.addf %15, %17 : vector<8x256xf32>
    %cst_14 = arith.constant 0.000000e+00 : f32
    %19 = vector.broadcast %cst_14 : f32 to vector<8x256xf32>
    %20 = arith.maximumf %18, %19 : vector<8x256xf32>
    %21 = arith.extui %0 : i1 to i32
    %c1_i32_15 = arith.constant 1 : i32
    %c0_i32_16 = arith.constant 0 : i32
    %22 = arith.cmpi ne, %21, %c0_i32_16 : i32
    scf.if %22 {
      %128 = tpu.memref_slice %arg36[%c1_i32_15] : memref<5x!tpu.dma_semaphore, #tpu.memory_space<semaphore_mem>> -> memref<1x!tpu.dma_semaphore, #tpu.memory_space<semaphore_mem>>
      %129 = tpu.memref_squeeze %128 : memref<1x!tpu.dma_semaphore, #tpu.memory_space<semaphore_mem>> -> memref<!tpu.dma_semaphore, #tpu.memory_space<semaphore_mem>>
      tpu.wait_dma2 semaphore(%129 : memref<!tpu.dma_semaphore, #tpu.memory_space<semaphore_mem>>) src(%arg25 : memref<256x256xbf16, #tpu.memory_space<any>>) dst(%arg32 : memref<256x256xbf16, #tpu.memory_space<vmem>>)
    } else {
    }
    %23 = arith.truncf %20 : vector<8x256xf32> to vector<8x256xbf16>
    %c0_17 = arith.constant 0 : index
    %c0_18 = arith.constant 0 : index
    %24 = vector.load %arg32[%c0_17, %c0_18] : memref<256x256xbf16, #tpu.memory_space<vmem>>, vector<256x256xbf16>
    %cst_19 = arith.constant dense<0.000000e+00> : vector<8x256xf32>
    %25 = tpu.matmul %23, %24, %cst_19 {dimension_numbers = #tpu.dot_dimension_numbers<[1], [0], [0], [1], [0, 0, 1, 1], [], []>} : vector<8x256xbf16>, vector<256x256xbf16>, vector<8x256xf32> -> vector<8x256xf32>
    %c0_20 = arith.constant 0 : index
    %c0_21 = arith.constant 0 : index
    %26 = vector.load %arg6[%c0_20, %c0_21] : memref<1x256xf32, #tpu.memory_space<vmem>>, vector<1x256xf32>
    %27 = vector.broadcast %26 : vector<1x256xf32> to vector<8x256xf32>
    %28 = arith.addf %25, %27 : vector<8x256xf32>
    %29 = math.tanh %28 : vector<8x256xf32>
    %30 = arith.truncf %29 : vector<8x256xf32> to vector<8x256xbf16>
    %31 = vector.extract_strided_slice %30 {offsets = [0, 0], sizes = [8, 128], strides = [1, 1]} : vector<8x256xbf16> to vector<8x128xbf16>
    %c0_22 = arith.constant 0 : index
    %c0_23 = arith.constant 0 : index
    %32 = vector.load %arg7[%c0_22, %c0_23] : memref<128x8xbf16, #tpu.memory_space<vmem>>, vector<128x8xbf16>
    %cst_24 = arith.constant dense<0.000000e+00> : vector<8x8xf32>
    %33 = tpu.matmul %31, %32, %cst_24 {dimension_numbers = #tpu.dot_dimension_numbers<[1], [0], [0], [1], [0, 0, 1, 1], [], []>} : vector<8x128xbf16>, vector<128x8xbf16>, vector<8x8xf32> -> vector<8x8xf32>
    %c0_25 = arith.constant 0 : index
    %c0_26 = arith.constant 0 : index
    %34 = vector.load %arg8[%c0_25, %c0_26] : memref<1x8xf32, #tpu.memory_space<vmem>>, vector<1x8xf32>
    %35 = vector.broadcast %34 : vector<1x8xf32> to vector<8x8xf32>
    %36 = arith.addf %33, %35 : vector<8x8xf32>
    %37 = vector.extract_strided_slice %30 {offsets = [0, 128], sizes = [8, 128], strides = [1, 1]} : vector<8x256xbf16> to vector<8x128xbf16>
    %c0_27 = arith.constant 0 : index
    %c0_28 = arith.constant 0 : index
    %38 = vector.load %arg9[%c0_27, %c0_28] : memref<128x8xbf16, #tpu.memory_space<vmem>>, vector<128x8xbf16>
    %cst_29 = arith.constant dense<0.000000e+00> : vector<8x8xf32>
    %39 = tpu.matmul %37, %38, %cst_29 {dimension_numbers = #tpu.dot_dimension_numbers<[1], [0], [0], [1], [0, 0, 1, 1], [], []>} : vector<8x128xbf16>, vector<128x8xbf16>, vector<8x8xf32> -> vector<8x8xf32>
    %c0_30 = arith.constant 0 : index
    %c0_31 = arith.constant 0 : index
    %40 = vector.load %arg10[%c0_30, %c0_31] : memref<1x8xf32, #tpu.memory_space<vmem>>, vector<1x8xf32>
    %41 = vector.broadcast %40 : vector<1x8xf32> to vector<8x8xf32>
    %42 = arith.addf %39, %41 : vector<8x8xf32>
    %cst_32 = arith.constant -4.000000e+00 : f32
    %cst_33 = arith.constant 4.000000e+00 : f32
    %43 = vector.broadcast %cst_32 : f32 to vector<8x8xf32>
    %44 = arith.maximumf %43, %42 : vector<8x8xf32>
    %45 = vector.broadcast %cst_33 : f32 to vector<8x8xf32>
    %46 = arith.minimumf %45, %44 : vector<8x8xf32>
    %47 = math.exp %46 : vector<8x8xf32>
    %c0_34 = arith.constant 0 : index
    %c0_35 = arith.constant 0 : index
    %48 = vector.load %arg2[%c0_34, %c0_35] : memref<8x8xf32, #tpu.memory_space<vmem>>, vector<8x8xf32>
    %49 = arith.truncf %48 : vector<8x8xf32> to vector<8x8xbf16>
    %c0_36 = arith.constant 0 : index
    %c0_37 = arith.constant 0 : index
    %50 = vector.load %arg11[%c0_36, %c0_37] : memref<8x512xbf16, #tpu.memory_space<vmem>>, vector<8x512xbf16>
    %cst_38 = arith.constant dense<0.000000e+00> : vector<8x512xf32>
    %51 = tpu.matmul %49, %50, %cst_38 {dimension_numbers = #tpu.dot_dimension_numbers<[1], [0], [0], [1], [0, 0, 1, 1], [], []>} : vector<8x8xbf16>, vector<8x512xbf16>, vector<8x512xf32> -> vector<8x512xf32>
    %c0_39 = arith.constant 0 : index
    %c0_40 = arith.constant 0 : index
    %52 = vector.load %arg12[%c0_39, %c0_40] : memref<1x512xf32, #tpu.memory_space<vmem>>, vector<1x512xf32>
    %53 = vector.broadcast %52 : vector<1x512xf32> to vector<8x512xf32>
    %54 = arith.addf %51, %53 : vector<8x512xf32>
    %55 = arith.negf %54 : vector<8x512xf32>
    %56 = math.exp %55 : vector<8x512xf32>
    %cst_41 = arith.constant 1.000000e+00 : f32
    %57 = vector.broadcast %cst_41 : f32 to vector<8x512xf32>
    %58 = arith.addf %57, %56 : vector<8x512xf32>
    %59 = arith.divf %57, %58 : vector<8x512xf32>
    %60 = arith.truncf %59 : vector<8x512xf32> to vector<8x512xbf16>
    %c0_42 = arith.constant 0 : index
    %c0_43 = arith.constant 0 : index
    %61 = vector.load %arg13[%c0_42, %c0_43] : memref<512x8xbf16, #tpu.memory_space<vmem>>, vector<512x8xbf16>
    %cst_44 = arith.constant dense<0.000000e+00> : vector<8x8xf32>
    %62 = tpu.matmul %60, %61, %cst_44 {dimension_numbers = #tpu.dot_dimension_numbers<[1], [0], [0], [1], [0, 0, 1, 1], [], []>} : vector<8x512xbf16>, vector<512x8xbf16>, vector<8x8xf32> -> vector<8x8xf32>
    %c0_45 = arith.constant 0 : index
    %c0_46 = arith.constant 0 : index
    %63 = vector.load %arg14[%c0_45, %c0_46] : memref<1x8xf32, #tpu.memory_space<vmem>>, vector<1x8xf32>
    %64 = vector.broadcast %63 : vector<1x8xf32> to vector<8x8xf32>
    %65 = arith.addf %62, %64 : vector<8x8xf32>
    %66 = arith.truncf %65 : vector<8x8xf32> to vector<8x8xbf16>
    %c0_47 = arith.constant 0 : index
    %c0_48 = arith.constant 0 : index
    %67 = vector.load %arg15[%c0_47, %c0_48] : memref<8x512xbf16, #tpu.memory_space<vmem>>, vector<8x512xbf16>
    %cst_49 = arith.constant dense<0.000000e+00> : vector<8x512xf32>
    %68 = tpu.matmul %66, %67, %cst_49 {dimension_numbers = #tpu.dot_dimension_numbers<[1], [0], [0], [1], [0, 0, 1, 1], [], []>} : vector<8x8xbf16>, vector<8x512xbf16>, vector<8x512xf32> -> vector<8x512xf32>
    %c0_50 = arith.constant 0 : index
    %c0_51 = arith.constant 0 : index
    %69 = vector.load %arg16[%c0_50, %c0_51] : memref<1x512xf32, #tpu.memory_space<vmem>>, vector<1x512xf32>
    %70 = vector.broadcast %69 : vector<1x512xf32> to vector<8x512xf32>
    %71 = arith.addf %68, %70 : vector<8x512xf32>
    %72 = arith.negf %71 : vector<8x512xf32>
    %73 = math.exp %72 : vector<8x512xf32>
    %cst_52 = arith.constant 1.000000e+00 : f32
    %74 = vector.broadcast %cst_52 : f32 to vector<8x512xf32>
    %75 = arith.addf %74, %73 : vector<8x512xf32>
    %76 = arith.divf %74, %75 : vector<8x512xf32>
    %77 = arith.truncf %76 : vector<8x512xf32> to vector<8x512xbf16>
    %c0_53 = arith.constant 0 : index
    %c0_54 = arith.constant 0 : index
    %78 = vector.load %arg17[%c0_53, %c0_54] : memref<512x8xbf16, #tpu.memory_space<vmem>>, vector<512x8xbf16>
    %cst_55 = arith.constant dense<0.000000e+00> : vector<8x8xf32>
    %79 = tpu.matmul %77, %78, %cst_55 {dimension_numbers = #tpu.dot_dimension_numbers<[1], [0], [0], [1], [0, 0, 1, 1], [], []>} : vector<8x512xbf16>, vector<512x8xbf16>, vector<8x8xf32> -> vector<8x8xf32>
    %c0_56 = arith.constant 0 : index
    %c0_57 = arith.constant 0 : index
    %80 = vector.load %arg18[%c0_56, %c0_57] : memref<1x8xf32, #tpu.memory_space<vmem>>, vector<1x8xf32>
    %81 = vector.broadcast %80 : vector<1x8xf32> to vector<8x8xf32>
    %82 = arith.addf %79, %81 : vector<8x8xf32>
    %83 = arith.mulf %47, %65 : vector<8x8xf32>
    %84 = arith.addf %36, %83 : vector<8x8xf32>
    %85 = arith.truncf %84 : vector<8x8xf32> to vector<8x8xbf16>
    %c0_58 = arith.constant 0 : index
    %c0_59 = arith.constant 0 : index
    %86 = vector.load %arg19[%c0_58, %c0_59] : memref<8x128xbf16, #tpu.memory_space<vmem>>, vector<8x128xbf16>
    %cst_60 = arith.constant dense<0.000000e+00> : vector<8x128xf32>
    %87 = tpu.matmul %85, %86, %cst_60 {dimension_numbers = #tpu.dot_dimension_numbers<[1], [0], [0], [1], [0, 0, 1, 1], [], []>} : vector<8x8xbf16>, vector<8x128xbf16>, vector<8x128xf32> -> vector<8x128xf32>
    %c0_61 = arith.constant 0 : index
    %c0_62 = arith.constant 0 : index
    %88 = vector.load %arg20[%c0_61, %c0_62] : memref<1x128xf32, #tpu.memory_space<vmem>>, vector<1x128xf32>
    %89 = vector.broadcast %88 : vector<1x128xf32> to vector<8x128xf32>
    %90 = arith.addf %87, %89 : vector<8x128xf32>
    %91 = math.tanh %90 : vector<8x128xf32>
    %92 = arith.extui %0 : i1 to i32
    %c2_i32_63 = arith.constant 2 : i32
    %c0_i32_64 = arith.constant 0 : i32
    %93 = arith.cmpi ne, %92, %c0_i32_64 : i32
    scf.if %93 {
      %128 = tpu.memref_slice %arg36[%c2_i32_63] : memref<5x!tpu.dma_semaphore, #tpu.memory_space<semaphore_mem>> -> memref<1x!tpu.dma_semaphore, #tpu.memory_space<semaphore_mem>>
      %129 = tpu.memref_squeeze %128 : memref<1x!tpu.dma_semaphore, #tpu.memory_space<semaphore_mem>> -> memref<!tpu.dma_semaphore, #tpu.memory_space<semaphore_mem>>
      tpu.wait_dma2 semaphore(%129 : memref<!tpu.dma_semaphore, #tpu.memory_space<semaphore_mem>>) src(%arg26 : memref<128x256xbf16, #tpu.memory_space<any>>) dst(%arg33 : memref<128x256xbf16, #tpu.memory_space<vmem>>)
    } else {
    }
    %94 = arith.truncf %91 : vector<8x128xf32> to vector<8x128xbf16>
    %c0_65 = arith.constant 0 : index
    %c0_66 = arith.constant 0 : index
    %95 = vector.load %arg33[%c0_65, %c0_66] : memref<128x256xbf16, #tpu.memory_space<vmem>>, vector<128x256xbf16>
    %cst_67 = arith.constant dense<0.000000e+00> : vector<8x256xf32>
    %96 = tpu.matmul %94, %95, %cst_67 {dimension_numbers = #tpu.dot_dimension_numbers<[1], [0], [0], [1], [0, 0, 1, 1], [], []>} : vector<8x128xbf16>, vector<128x256xbf16>, vector<8x256xf32> -> vector<8x256xf32>
    %c0_68 = arith.constant 0 : index
    %c0_69 = arith.constant 0 : index
    %97 = vector.load %arg21[%c0_68, %c0_69] : memref<1x256xf32, #tpu.memory_space<vmem>>, vector<1x256xf32>
    %98 = vector.broadcast %97 : vector<1x256xf32> to vector<8x256xf32>
    %99 = arith.addf %96, %98 : vector<8x256xf32>
    %100 = math.tanh %99 : vector<8x256xf32>
    %101 = arith.extui %0 : i1 to i32
    %c3_i32_70 = arith.constant 3 : i32
    %c0_i32_71 = arith.constant 0 : i32
    %102 = arith.cmpi ne, %101, %c0_i32_71 : i32
    scf.if %102 {
      %128 = tpu.memref_slice %arg36[%c3_i32_70] : memref<5x!tpu.dma_semaphore, #tpu.memory_space<semaphore_mem>> -> memref<1x!tpu.dma_semaphore, #tpu.memory_space<semaphore_mem>>
      %129 = tpu.memref_squeeze %128 : memref<1x!tpu.dma_semaphore, #tpu.memory_space<semaphore_mem>> -> memref<!tpu.dma_semaphore, #tpu.memory_space<semaphore_mem>>
      tpu.wait_dma2 semaphore(%129 : memref<!tpu.dma_semaphore, #tpu.memory_space<semaphore_mem>>) src(%arg27 : memref<256x512xbf16, #tpu.memory_space<any>>) dst(%arg34 : memref<256x512xbf16, #tpu.memory_space<vmem>>)
    } else {
    }
    %103 = arith.truncf %100 : vector<8x256xf32> to vector<8x256xbf16>
    %c0_72 = arith.constant 0 : index
    %c0_73 = arith.constant 0 : index
    %104 = vector.load %arg34[%c0_72, %c0_73] : memref<256x512xbf16, #tpu.memory_space<vmem>>, vector<256x512xbf16>
    %cst_74 = arith.constant dense<0.000000e+00> : vector<8x512xf32>
    %105 = tpu.matmul %103, %104, %cst_74 {dimension_numbers = #tpu.dot_dimension_numbers<[1], [0], [0], [1], [0, 0, 1, 1], [], []>} : vector<8x256xbf16>, vector<256x512xbf16>, vector<8x512xf32> -> vector<8x512xf32>
    %c0_75 = arith.constant 0 : index
    %c0_76 = arith.constant 0 : index
    %106 = vector.load %arg22[%c0_75, %c0_76] : memref<1x512xf32, #tpu.memory_space<vmem>>, vector<1x512xf32>
    %107 = vector.broadcast %106 : vector<1x512xf32> to vector<8x512xf32>
    %108 = arith.addf %105, %107 : vector<8x512xf32>
    %109 = math.tanh %108 : vector<8x512xf32>
    %110 = arith.extui %0 : i1 to i32
    %c4_i32_77 = arith.constant 4 : i32
    %c0_i32_78 = arith.constant 0 : i32
    %111 = arith.cmpi ne, %110, %c0_i32_78 : i32
    scf.if %111 {
      %128 = tpu.memref_slice %arg36[%c4_i32_77] : memref<5x!tpu.dma_semaphore, #tpu.memory_space<semaphore_mem>> -> memref<1x!tpu.dma_semaphore, #tpu.memory_space<semaphore_mem>>
      %129 = tpu.memref_squeeze %128 : memref<1x!tpu.dma_semaphore, #tpu.memory_space<semaphore_mem>> -> memref<!tpu.dma_semaphore, #tpu.memory_space<semaphore_mem>>
      tpu.wait_dma2 semaphore(%129 : memref<!tpu.dma_semaphore, #tpu.memory_space<semaphore_mem>>) src(%arg28 : memref<512x1024xbf16, #tpu.memory_space<any>>) dst(%arg35 : memref<512x1024xbf16, #tpu.memory_space<vmem>>)
    } else {
    }
    %112 = arith.truncf %109 : vector<8x512xf32> to vector<8x512xbf16>
    %c0_79 = arith.constant 0 : index
    %c0_80 = arith.constant 0 : index
    %113 = vector.load %arg35[%c0_79, %c0_80] : memref<512x1024xbf16, #tpu.memory_space<vmem>>, vector<512x1024xbf16>
    %cst_81 = arith.constant dense<0.000000e+00> : vector<8x1024xf32>
    %114 = tpu.matmul %112, %113, %cst_81 {dimension_numbers = #tpu.dot_dimension_numbers<[1], [0], [0], [1], [0, 0, 1, 1], [], []>} : vector<8x512xbf16>, vector<512x1024xbf16>, vector<8x1024xf32> -> vector<8x1024xf32>
    %c0_82 = arith.constant 0 : index
    %c0_83 = arith.constant 0 : index
    %115 = vector.load %arg23[%c0_82, %c0_83] : memref<1x1024xf32, #tpu.memory_space<vmem>>, vector<1x1024xf32>
    %116 = vector.broadcast %115 : vector<1x1024xf32> to vector<8x1024xf32>
    %117 = arith.addf %114, %116 : vector<8x1024xf32>
    %c0_84 = arith.constant 0 : index
    %c0_85 = arith.constant 0 : index
    %118 = vector.load %arg29[%c0_84, %c0_85] : memref<8x1024xf32, #tpu.memory_space<vmem>>, vector<8x1024xf32>
    tpu.vector_store %arg29[%c0_84, %c0_85], %117 {strides = array<i32>} : memref<8x1024xf32, #tpu.memory_space<vmem>>, vector<8x1024xf32>,
    %c0_86 = arith.constant 0 : index
    %c0_87 = arith.constant 0 : index
    %c0_88 = arith.constant 0 : index
    %119 = vector.load %arg30[%c0_86, %c0_87, %c0_88] : memref<3x8x8xf32, #tpu.memory_space<vmem>>, vector<1x8x8xf32>
    %120 = vector.shape_cast %119 : vector<1x8x8xf32> to vector<8x8xf32>
    %121 = vector.shape_cast %47 : vector<8x8xf32> to vector<1x8x8xf32>
    tpu.vector_store %arg30[%c0_86, %c0_87, %c0_88], %121 {strides = array<i32>} : memref<3x8x8xf32, #tpu.memory_space<vmem>>, vector<1x8x8xf32>,
    %c1 = arith.constant 1 : index
    %c0_89 = arith.constant 0 : index
    %c0_90 = arith.constant 0 : index
    %122 = vector.load %arg30[%c1, %c0_89, %c0_90] : memref<3x8x8xf32, #tpu.memory_space<vmem>>, vector<1x8x8xf32>
    %123 = vector.shape_cast %122 : vector<1x8x8xf32> to vector<8x8xf32>
    %124 = vector.shape_cast %65 : vector<8x8xf32> to vector<1x8x8xf32>
    tpu.vector_store %arg30[%c1, %c0_89, %c0_90], %124 {strides = array<i32>} : memref<3x8x8xf32, #tpu.memory_space<vmem>>, vector<1x8x8xf32>,
    %c2 = arith.constant 2 : index
    %c0_91 = arith.constant 0 : index
    %c0_92 = arith.constant 0 : index
    %125 = vector.load %arg30[%c2, %c0_91, %c0_92] : memref<3x8x8xf32, #tpu.memory_space<vmem>>, vector<1x8x8xf32>
    %126 = vector.shape_cast %125 : vector<1x8x8xf32> to vector<8x8xf32>
    %127 = vector.shape_cast %82 : vector<8x8xf32> to vector<1x8x8xf32>
    tpu.vector_store %arg30[%c2, %c0_91, %c0_92], %127 {strides = array<i32>} : memref<3x8x8xf32, #tpu.memory_space<vmem>>, vector<1x8x8xf32>,
    return
  }
  func.func @transform_0(%arg0: i32) -> (i32, i32) {
    %c0_i32 = arith.constant 0 : i32
    %c0_i32_0 = arith.constant 0 : i32
    return %arg0, %c0_i32 : i32, i32
  }
  func.func @transform_1(%arg0: i32) -> (i32, i32) {
    %c0_i32 = arith.constant 0 : i32
    %c0_i32_0 = arith.constant 0 : i32
    return %arg0, %c0_i32 : i32, i32
  }
  func.func @transform_2(%arg0: i32) -> (i32, i32) {
    %c0_i32 = arith.constant 0 : i32
    %c0_i32_0 = arith.constant 0 : i32
    %c0_i32_1 = arith.constant 0 : i32
    return %c0_i32, %c0_i32_0 : i32, i32
  }
  func.func @transform_3(%arg0: i32) -> (i32, i32) {
    %c0_i32 = arith.constant 0 : i32
    %c0_i32_0 = arith.constant 0 : i32
    %c0_i32_1 = arith.constant 0 : i32
    return %c0_i32, %c0_i32_0 : i32, i32
  }
  func.func @transform_4(%arg0: i32) -> (i32, i32) {
    %c0_i32 = arith.constant 0 : i32
    %c0_i32_0 = arith.constant 0 : i32
    %c0_i32_1 = arith.constant 0 : i32
    return %c0_i32, %c0_i32_0 : i32, i32
  }
  func.func @transform_5(%arg0: i32) -> (i32, i32) {
    %c0_i32 = arith.constant 0 : i32
    %c0_i32_0 = arith.constant 0 : i32
    %c0_i32_1 = arith.constant 0 : i32
    return %c0_i32, %c0_i32_0 : i32, i32
  }
  func.func @transform_6(%arg0: i32) -> (i32, i32) {
    %c0_i32 = arith.constant 0 : i32
    %c0_i32_0 = arith.constant 0 : i32
    %c0_i32_1 = arith.constant 0 : i32
    return %c0_i32, %c0_i32_0 : i32, i32
  }
  func.func @transform_7(%arg0: i32) -> (i32, i32) {
    %c0_i32 = arith.constant 0 : i32
    %c0_i32_0 = arith.constant 0 : i32
    %c0_i32_1 = arith.constant 0 : i32
    return %c0_i32, %c0_i32_0 : i32, i32
  }
  func.func @transform_8(%arg0: i32) -> (i32, i32) {
    %c0_i32 = arith.constant 0 : i32
    %c0_i32_0 = arith.constant 0 : i32
    %c0_i32_1 = arith.constant 0 : i32
    return %c0_i32, %c0_i32_0 : i32, i32
  }
  func.func @transform_9(%arg0: i32) -> (i32, i32) {
    %c0_i32 = arith.constant 0 : i32
    %c0_i32_0 = arith.constant 0 : i32
    %c0_i32_1 = arith.constant 0 : i32
    return %c0_i32, %c0_i32_0 : i32, i32
  }
  func.func @transform_10(%arg0: i32) -> (i32, i32) {
    %c0_i32 = arith.constant 0 : i32
    %c0_i32_0 = arith.constant 0 : i32
    %c0_i32_1 = arith.constant 0 : i32
    return %c0_i32, %c0_i32_0 : i32, i32
  }
  func.func @transform_11(%arg0: i32) -> (i32, i32) {
    %c0_i32 = arith.constant 0 : i32
    %c0_i32_0 = arith.constant 0 : i32
    %c0_i32_1 = arith.constant 0 : i32
    return %c0_i32, %c0_i32_0 : i32, i32
  }
  func.func @transform_12(%arg0: i32) -> (i32, i32) {
    %c0_i32 = arith.constant 0 : i32
    %c0_i32_0 = arith.constant 0 : i32
    %c0_i32_1 = arith.constant 0 : i32
    return %c0_i32, %c0_i32_0 : i32, i32
  }
  func.func @transform_13(%arg0: i32) -> (i32, i32) {
    %c0_i32 = arith.constant 0 : i32
    %c0_i32_0 = arith.constant 0 : i32
    %c0_i32_1 = arith.constant 0 : i32
    return %c0_i32, %c0_i32_0 : i32, i32
  }
  func.func @transform_14(%arg0: i32) -> (i32, i32) {
    %c0_i32 = arith.constant 0 : i32
    %c0_i32_0 = arith.constant 0 : i32
    %c0_i32_1 = arith.constant 0 : i32
    return %c0_i32, %c0_i32_0 : i32, i32
  }
  func.func @transform_15(%arg0: i32) -> (i32, i32) {
    %c0_i32 = arith.constant 0 : i32
    %c0_i32_0 = arith.constant 0 : i32
    %c0_i32_1 = arith.constant 0 : i32
    return %c0_i32, %c0_i32_0 : i32, i32
  }
  func.func @transform_16(%arg0: i32) -> (i32, i32) {
    %c0_i32 = arith.constant 0 : i32
    %c0_i32_0 = arith.constant 0 : i32
    %c0_i32_1 = arith.constant 0 : i32
    return %c0_i32, %c0_i32_0 : i32, i32
  }
  func.func @transform_17(%arg0: i32) -> (i32, i32) {
    %c0_i32 = arith.constant 0 : i32
    %c0_i32_0 = arith.constant 0 : i32
    %c0_i32_1 = arith.constant 0 : i32
    return %c0_i32, %c0_i32_0 : i32, i32
  }
  func.func @transform_18(%arg0: i32) -> (i32, i32) {
    %c0_i32 = arith.constant 0 : i32
    %c0_i32_0 = arith.constant 0 : i32
    %c0_i32_1 = arith.constant 0 : i32
    return %c0_i32, %c0_i32_0 : i32, i32
  }
  func.func @transform_19(%arg0: i32) -> (i32, i32) {
    %c0_i32 = arith.constant 0 : i32
    %c0_i32_0 = arith.constant 0 : i32
    %c0_i32_1 = arith.constant 0 : i32
    return %c0_i32, %c0_i32_0 : i32, i32
  }
  func.func @transform_20(%arg0: i32) -> (i32, i32) {
    %c0_i32 = arith.constant 0 : i32
    %c0_i32_0 = arith.constant 0 : i32
    %c0_i32_1 = arith.constant 0 : i32
    return %c0_i32, %c0_i32_0 : i32, i32
  }
  func.func @transform_21(%arg0: i32) -> (i32, i32) {
    %c0_i32 = arith.constant 0 : i32
    %c0_i32_0 = arith.constant 0 : i32
    %c0_i32_1 = arith.constant 0 : i32
    return %c0_i32, %c0_i32_0 : i32, i32
  }
  func.func @transform_22(%arg0: i32) -> (i32, i32) {
    %c0_i32 = arith.constant 0 : i32
    %c0_i32_0 = arith.constant 0 : i32
    %c0_i32_1 = arith.constant 0 : i32
    return %c0_i32, %c0_i32_0 : i32, i32
  }
  func.func @transform_28(%arg0: i32) -> (i32, i32) {
    %c0_i32 = arith.constant 0 : i32
    %c0_i32_0 = arith.constant 0 : i32
    return %arg0, %c0_i32 : i32, i32
  }
  func.func @transform_29(%arg0: i32) -> (i32, i32, i32) {
    %c0_i32 = arith.constant 0 : i32
    %c0_i32_0 = arith.constant 0 : i32
    %c0_i32_1 = arith.constant 0 : i32
    return %c0_i32, %arg0, %c0_i32_0 : i32, i32, i32
  }
}

</mosaic_0001>

<bundles_post_ra>
// kernel: squeeze.4
= control target key start
LH: loop header
LB: loop body
LE: loop exit
PB: predicated region body
PF: predicated region fallthrough
CT: control target
= control target key end

     0   :  { %s85_s0 = inlined_call_operand.vmem [shape: f32[1,2,8], index: 0, kind: input, shape index: {}]   ;;  %s86_s1 = inlined_call_operand.hbm [shape: f32[16,1], index: 1, kind: output, shape index: {}]  }
   0x1   :  { %v5_v0 = vld [vmem:[%s85_s0] sm:$0x3] }
   0x2   :  { %6 = vst [vmem:[#allocation3] sm:$0x3] %v5_v0 }
   0x3   :  { %2 = vsyncpa [#allocation1], 0  ;;  %vm8_vm0 = vcmask 64512   ;;  %s58_s0 = smov 8   ;;  %vm14_vm1 = vcmask 130112   ;;  %s59_s8 = smov [#allocation0]  }
   0x4   :  { %s26_s9 = sshll.u32 %s59_s8, 4  ;;  %s27_s9 = int_to_ptr.vmem [resolvable:$true] %s26_s9 }
   0x5   :  { %s34_s10 = scalar_lea.vmem %s27_s9, 16  ;;  %s38_s11 = scalar_lea.vmem %s27_s9, 32 }
   0x6   :  { %p35_p0 = scmp.ne.s32.totalorder %s27_s9, %s34_s10  ;;  %p39_p1 = scmp.lt.s32.totalorder %s27_s9, %s27_s9 }
   0x7   :  { %p40_p2 = scmp.lt.s32.totalorder %s38_s11, %s34_s10 }
   0x9   :  { %v11_v1 = vld [vmem:[#allocation3 + $0x1] sm:$0x1]   ;;  %v7_v2 = vld [vmem:[#allocation3] sm:$0x1]   ;;  %p41_p3 = por %p40_p2, %p39_p1 }
   0xa   :  { %12 = vrot.lane.b32.xlu0 %v11_v1, %s58_s0  ;;  %9 = vst.msk [vmem:[#allocation2] sm:$0x1] %vm8_vm0, %v7_v2  }
   0xb   :  { %p42_p4 = pnand %p41_p3, %p35_p0 }
  0x7c   :  { %v13_v3 = vpop.permute.xlu0 %12  }
  0x7d   :  { %15 = vst.msk [vmem:[#allocation2] sm:$0x1] %vm14_vm1, %v13_v3  }
  0x84   :  { %v19_v4 = vld [vmem:[#allocation2] sm:$0x1] }
  0x85   :  { %21 = vst [vmem:[#allocation0] sm:$0x1] %v19_v4 }
  0x86   :  { %45 = shalt.err (!%p42_p4)
}
  0x87   :  { %s46_s14 = scalar_lea.hbm %s86_s1, 16 }
  0x88   :  { %p47_p5 = scmp.ne.s32.totalorder %s86_s1, %s46_s14  ;;  %p50_p6 = scmp.lt.u32.totalorder %s46_s14, %s86_s1 }
  0x8a   :  { %p52_p7 = pnand %p50_p6, %p47_p5 }
  0x8c   :  { %55 = shalt.err (!%p52_p7)
}
  0x8d   :  { %29 = dma.vmem_to_hbm [thread:$0]  %s27_s9, 16, %s86_s1, [#allocation1]  }
  0x8e   :  { %56 = dma.done.wait [#allocation1], 16  }
  0x8f   :  { %57 = vsyncadd [#allocation1], 4294967280 }
  0x90   :  { %31 = vsyncpa [#allocation1], 1 }

// kernel: vae_forward.1
= control target key start
LH: loop header
LB: loop body
LE: loop exit
PB: predicated region body
PF: predicated region fallthrough
CT: control target
= control target key end

     0   :  { %s7304_s6 = smov 1   ;;  %s7305_s10 = smov 2   ;;  %s8077_s0 = inlined_call_operand.smem [shape: u32[30], index: -1, kind: input, shape index: {}] }
   0x1   :  { %s7371_s5 = sld [smem:[%s8077_s0]]   ;;  %s7306_s14 = smov 3  }
   0x2   :  { %s7376_s9 = sld [smem:[%s8077_s0 + %s7304_s6]]   ;;  %s7307_s18 = smov 4  }
   0x3   :  { %s7381_s13 = sld [smem:[%s8077_s0 + %s7305_s10]]   ;;  %s7308_s22 = smov 5  }
   0x4   :  { %s7386_s17 = sld [smem:[%s8077_s0 + %s7306_s14]]   ;;  %s7309_s26 = smov 6  }
   0x5   :  { %s7391_s21 = sld [smem:[%s8077_s0 + %s7307_s18]]   ;;  %s7310_s30 = smov 7  }
   0x6   :  { %s7396_s25 = sld [smem:[%s8077_s0 + %s7308_s22]]   ;;  %s7311_s4 = smov 8  }
   0x7   :  { %8085 = sst [smem:[#allocation43_spill]] %s7371_s5  ;;  %s7312_s10 = smov 9  }
   0x8   :  { %8086 = sst [smem:[#allocation44_spill]] %s7376_s9  ;;  %s7313_s15 = smov 10  }
   0x9   :  { %s7401_s29 = sld [smem:[%s8077_s0 + %s7309_s26]]   ;;  %s7314_s20 = smov 11  }
   0xa   :  { %8087 = sst [smem:[#allocation45_spill]] %s7386_s17  ;;  %s7315_s26 = smov 12  }
   0xb   :  { %8088 = sst [smem:[#allocation46_spill]] %s7391_s21  ;;  %s7316_s1 = smov 13  }
   0xc   :  { %s7406_s3 = sld [smem:[%s8077_s0 + %s7310_s30]]   ;;  %s7317_s7 = smov 14  }
   0xd   :  { %s7411_s8 = sld [smem:[%s8077_s0 + %s7311_s4]]   ;;  %s7319_s22 = smov 16  }
   0xe   :  { %s7416_s14 = sld [smem:[%s8077_s0 + %s7312_s10]]   ;;  %s7320_s28 = smov 17  }
   0xf   :  { %8089 = sst [smem:[#allocation47_spill]] %s7401_s29 }
  0x10   :  { %s7421_s19 = sld [smem:[%s8077_s0 + %s7313_s15]]   ;;  %s7318_s15 = smov 15  }
  0x11   :  { %s7426_s24 = sld [smem:[%s8077_s0 + %s7314_s20]]  }
  0x12   :  { %s7431_s30 = sld [smem:[%s8077_s0 + %s7315_s26]]  }
  0x13   :  { %8090 = sst [smem:[#allocation48_spill]] %s7411_s8 }
  0x14   :  { %s7436_s6 = sld [smem:[%s8077_s0 + %s7316_s1]]  }
  0x15   :  { %s7441_s12 = sld [smem:[%s8077_s0 + %s7317_s7]]   ;;  %s7321_s7 = smov 18  }
  0x16   :  { %8091 = sst [smem:[#allocation49_spill]] %s7421_s19 }
  0x17   :  { %s7446_s20 = sld [smem:[%s8077_s0 + %s7318_s15]]   ;;  %s7322_s15 = smov 19  }
  0x18   :  { %8092 = sst [smem:[#allocation50_spill]] %s7431_s30 }
  0x19   :  { %s7451_s27 = sld [smem:[%s8077_s0 + %s7319_s22]]   ;;  %s7323_s22 = smov 20  }
  0x1a   :  { %s7456_s4 = sld [smem:[%s8077_s0 + %s7320_s28]]   ;;  %s7324_s28 = smov 21  }
  0x1b   :  { %8093 = sst [smem:[#allocation51_spill]] %s7441_s12 }
  0x1c   :  { %s7461_s12 = sld [smem:[%s8077_s0 + %s7321_s7]]   ;;  %s7325_s7 = smov 22  }
  0x1d   :  { %s7466_s8 = sld [smem:[%s8077_s0 + %s7322_s15]]   ;;  %s7326_s15 = smov 23  }
  0x1e   :  { %s7476_s30 = sld [smem:[%s8077_s0 + %s7324_s28]]   ;;  %s7328_s28 = smov 25  }
  0x1f   :  { %8094 = sst [smem:[#allocation52_spill]] %s7451_s27 }
  0x20   :  { %s7471_s27 = sld [smem:[%s8077_s0 + %s7323_s22]]   ;;  %s7327_s22 = smov 24  }
  0x21   :  { %s7481_s29 = sld [smem:[%s8077_s0 + %s7325_s7]]   ;;  %s7329_s7 = smov 26  }
  0x22   :  { %s7486_s9 = sld [smem:[%s8077_s0 + %s7326_s15]]   ;;  %s7330_s15 = smov 27  }
  0x23   :  { %s7496_s19 = sld [smem:[%s8077_s0 + %s7328_s28]]   ;;  %s7332_s28 = smov 29  }
  0x24   :  { %s7506_s21 = sld [smem:[%s8077_s0 + %s7330_s15]]  }
  0x25   :  { %s7516_s5 = sld [smem:[%s8077_s0 + %s7332_s28]]  }
  0x26   :  { %8095 = sst [smem:[#allocation53_spill]] %s7471_s27 }
  0x27   :  { %8096 = sst [smem:[#allocation54_spill]] %s7481_s29 }
  0x28   :  { %s7491_s27 = sld [smem:[%s8077_s0 + %s7327_s22]]   ;;  %s7331_s22 = smov 28  }
  0x29   :  { %s7501_s29 = sld [smem:[%s8077_s0 + %s7329_s7]]  }
  0x2a   :  { %s7511_s17 = sld [smem:[%s8077_s0 + %s7331_s22]]  }
  0x2b   :  { %65 = vsyncpa [#allocation9], 0 }
  0x2c   :  { %66 = vsyncpa [#allocation11], 0 }
  0x2d   :  { %67 = vsyncpa [#allocation14], 0 }
  0x2e   :  { %68 = vsyncpa [#allocation17], 0 }
  0x2f   :  { %69 = vsyncpa [#allocation20], 0 }
  0x30   :  { %70 = vsyncpa [#allocation23], 0  ;;  %s7333_s7 = smov [#allocation10]   ;;  %s7334_s11 = smov [#allocation13]  }
  0x31   :  { %s97_s10 = sshll.u32 %s7333_s7, 4  ;;  %s121_s15 = sshll.u32 %s7334_s11, 4  ;;  %s98_s10 = int_to_ptr.vmem [resolvable:$true] %s97_s10  ;;  %s122_s15 = int_to_ptr.vmem [resolvable:$true] %s121_s15 }
  0x32   :  { %s7040_s16 = scalar_lea.hbm %s7396_s25, 32 }
  0x33   :  { %p7041_p0 = scmp.ne.s32.totalorder %s7396_s25, %s7040_s16  ;;  %p7044_p1 = scmp.lt.u32.totalorder %s7040_s16, %s7396_s25 }
  0x35   :  { %p7046_p2 = pnand %p7044_p1, %p7041_p0 }
  0x37   :  { %7049 = shalt.err (!%p7046_p2)
}
  0x38   :  { %s7050_s0 = scalar_lea.vmem %s98_s10, 32  ;;  %p7055_p4 = scmp.lt.s32.totalorder %s98_s10, %s98_s10 }
  0x39   :  { %p7051_p3 = scmp.ne.s32.totalorder %s98_s10, %s7050_s0  ;;  %p7056_p5 = scmp.lt.s32.totalorder %s7050_s0, %s7050_s0 }
  0x3b   :  { %p7057_p6 = por %p7056_p5, %p7055_p4 }
  0x3d   :  { %p7058_p7 = pnand %p7057_p6, %p7051_p3 }
  0x3f   :  { %7061 = shalt.err (!%p7058_p7)
}
  0x40   :  { %100 = dma.hbm_to_vmem [thread:$0]  %s7396_s25, 32, %s98_s10, [#allocation11]  }
  0x41   :  { %s7062_s18 = scalar_lea.hbm %s7416_s14, 16 }
  0x42   :  { %p7063_p8 = scmp.ne.s32.totalorder %s7416_s14, %s7062_s18  ;;  %p7066_p9 = scmp.lt.u32.totalorder %s7062_s18, %s7416_s14 }
  0x44   :  { %p7068_p10 = pnand %p7066_p9, %p7063_p8 }
  0x46   :  { %7071 = shalt.err (!%p7068_p10)
}
  0x47   :  { %s7072_s22 = scalar_lea.vmem %s122_s15, 16  ;;  %s7076_s23 = scalar_lea.vmem %s122_s15, 32 }
  0x48   :  { %p7073_p11 = scmp.ne.s32.totalorder %s122_s15, %s7072_s22  ;;  %p7077_p12 = scmp.lt.s32.totalorder %s122_s15, %s122_s15 }
  0x49   :  { %p7078_p13 = scmp.lt.s32.totalorder %s7076_s23, %s7072_s22 }
  0x4b   :  { %p7079_p0 = por %p7078_p13, %p7077_p12 }
  0x4d   :  { %p7080_p1 = pnand %p7079_p0, %p7073_p11 }
  0x4f   :  { %7083 = shalt.err (!%p7080_p1)
}
  0x50   :  { %124 = dma.hbm_to_vmem [thread:$0]  %s7416_s14, 16, %s122_s15, [#allocation14]  }
  0x51   :  { %s7335_s26 = smov [#allocation16]   ;;  %s7336_s28 = smov [#allocation19]  }
  0x52   :  { %s145_s25 = sshll.u32 %s7335_s26, 4  ;;  %s169_s1 = sshll.u32 %s7336_s28, 4  ;;  %s146_s25 = int_to_ptr.vmem [resolvable:$true] %s145_s25  ;;  %s170_s1 = int_to_ptr.vmem [resolvable:$true] %s169_s1 }
  0x53   :  { %s7084_s2 = scalar_lea.hbm %s7436_s6, 16 }
  0x54   :  { %p7085_p2 = scmp.ne.s32.totalorder %s7436_s6, %s7084_s2  ;;  %p7088_p3 = scmp.lt.u32.totalorder %s7084_s2, %s7436_s6 }
  0x56   :  { %p7090_p4 = pnand %p7088_p3, %p7085_p2 }
  0x58   :  { %7093 = shalt.err (!%p7090_p4)
}
  0x59   :  { %s7094_s7 = scalar_lea.vmem %s146_s25, 16  ;;  %s7098_s10 = scalar_lea.vmem %s146_s25, 32 }
  0x5a   :  { %p7095_p5 = scmp.ne.s32.totalorder %s146_s25, %s7094_s7  ;;  %p7099_p6 = scmp.lt.s32.totalorder %s146_s25, %s146_s25 }
  0x5b   :  { %p7100_p7 = scmp.lt.s32.totalorder %s7098_s10, %s7094_s7 }
  0x5d   :  { %p7101_p8 = por %p7100_p7, %p7099_p6 }
  0x5f   :  { %p7102_p9 = pnand %p7101_p8, %p7095_p5 }
  0x61   :  { %7105 = shalt.err (!%p7102_p9)
}
  0x62   :  { %148 = dma.hbm_to_vmem [thread:$0]  %s7436_s6, 16, %s146_s25, [#allocation17]  }
  0x63   :  { %s7106_s14 = scalar_lea.hbm %s7456_s4, 16 }
  0x64   :  { %p7107_p10 = scmp.ne.s32.totalorder %s7456_s4, %s7106_s14  ;;  %p7110_p11 = scmp.lt.u32.totalorder %s7106_s14, %s7456_s4 }
  0x66   :  { %p7112_p12 = pnand %p7110_p11, %p7107_p10 }
  0x68   :  { %7115 = shalt.err (!%p7112_p12)
}
  0x69   :  { %s7116_s11 = scalar_lea.vmem %s170_s1, 16  ;;  %s7120_s15 = scalar_lea.vmem %s170_s1, 32 }
  0x6a   :  { %p7117_p13 = scmp.ne.s32.totalorder %s170_s1, %s7116_s11  ;;  %p7121_p0 = scmp.lt.s32.totalorder %s170_s1, %s170_s1 }
  0x6b   :  { %p7122_p1 = scmp.lt.s32.totalorder %s7120_s15, %s7116_s11 }
  0x6d   :  { %p7123_p2 = por %p7122_p1, %p7121_p0 }
  0x6f   :  { %p7124_p3 = pnand %p7123_p2, %p7117_p13 }
  0x71   :  { %7127 = shalt.err (!%p7124_p3)
}
  0x72   :  { %172 = dma.hbm_to_vmem [thread:$0]  %s7456_s4, 16, %s170_s1, [#allocation20]  }
  0x73   :  { %s7337_s16 = smov [#allocation22]   ;;  %s7338_s0 = smov [#allocation8]  }
  0x74   :  { %s189_s6 = sshll.u32 %s7337_s16, 4  ;;  %s80_s18 = sshll.u32 %s7338_s0, 4  ;;  %s190_s6 = int_to_ptr.vmem [resolvable:$true] %s189_s6  ;;  %s7534_s18 = int_to_ptr.vmem [resolvable:$true] %s80_s18 }
  0x75   :  { %s7128_s22 = scalar_lea.hbm %s7466_s8, 16 }
  0x76   :  { %p7129_p4 = scmp.ne.s32.totalorder %s7466_s8, %s7128_s22  ;;  %p7132_p5 = scmp.lt.u32.totalorder %s7128_s22, %s7466_s8 }
  0x78   :  { %p7134_p6 = pnand %p7132_p5, %p7129_p4 }
  0x7a   :  { %7137 = shalt.err (!%p7134_p6)
}
  0x7b   :  { %s7138_s23 = scalar_lea.vmem %s190_s6, 16  ;;  %s7142_s26 = scalar_lea.vmem %s190_s6, 32 }
  0x7c   :  { %p7139_p7 = scmp.ne.s32.totalorder %s190_s6, %s7138_s23  ;;  %p7143_p8 = scmp.lt.s32.totalorder %s190_s6, %s190_s6 }
  0x7d   :  { %p7144_p9 = scmp.lt.s32.totalorder %s7142_s26, %s7138_s23 }
  0x7f   :  { %p7145_p10 = por %p7144_p9, %p7143_p8 }
  0x81   :  { %p7146_p11 = pnand %p7145_p10, %p7139_p7 }
  0x83   :  { %7149 = shalt.err (!%p7146_p11)
}
  0x84   :  { %192 = dma.hbm_to_vmem [thread:$0]  %s7466_s8, 16, %s190_s6, [#allocation23]  }
  0x85   :  { %s7150_s4 = scalar_lea.hbm %s7381_s13, 32768 }
  0x86   :  { %p7151_p12 = scmp.ne.s32.totalorder %s7381_s13, %s7150_s4  ;;  %p7154_p13 = scmp.lt.u32.totalorder %s7150_s4, %s7381_s13 }
  0x88   :  { %p7156_p0 = pnand %p7154_p13, %p7151_p12 }
  0x8a   :  { %7159 = shalt.err (!%p7156_p0)
}
  0x8b   :  { %s7160_s25 = scalar_lea.vmem %s7534_s18, 32768  ;;  %p7165_p2 = scmp.lt.s32.totalorder %s7534_s18, %s7534_s18 }
  0x8c   :  { %p7161_p1 = scmp.ne.s32.totalorder %s7534_s18, %s7160_s25  ;;  %p7166_p3 = scmp.lt.s32.totalorder %s7160_s25, %s7160_s25 }
  0x8e   :  { %p7167_p4 = por %p7166_p3, %p7165_p2 }
  0x90   :  { %p7168_p5 = pnand %p7167_p4, %p7161_p1 }
  0x92   :  { %7171 = shalt.err (!%p7168_p5)
}
  0x93   :  { %s7339_s28 = smov 256   ;;  %s7340_s8 = smov 16  }
  0x94   :  { %86 = dma.hbm_to_vmem [thread:$0]  %s7381_s13, 32768, %s7534_s18, [#allocation9], %s7339_s28, %s7339_s28, %s7340_s8  }
  0x95   :  { %s7341_s1 = smov [#allocation12]   ;;  %s7342_s7 = smov [#allocation15]  }
  0x96   :  { %s109_s2 = sshll.u32 %s7341_s1, 4  ;;  %s133_s10 = sshll.u32 %s7342_s7, 4  ;;  %s110_s2 = int_to_ptr.vmem [resolvable:$true] %s109_s2  ;;  %s134_s10 = int_to_ptr.vmem [resolvable:$true] %s133_s10 }
  0x97   :  { %s7172_s14 = scalar_lea.hbm %s7406_s3, 16 }
  0x98   :  { %p7173_p6 = scmp.ne.s32.totalorder %s7406_s3, %s7172_s14  ;;  %p7176_p7 = scmp.lt.u32.totalorder %s7172_s14, %s7406_s3 }
  0x9a   :  { %p7178_p8 = pnand %p7176_p7, %p7173_p6 }
  0x9c   :  { %7181 = shalt.err (!%p7178_p8)
}
  0x9d   :  { %s7182_s11 = scalar_lea.vmem %s110_s2, 16  ;;  %s7186_s15 = scalar_lea.vmem %s110_s2, 32 }
  0x9e   :  { %p7183_p9 = scmp.ne.s32.totalorder %s110_s2, %s7182_s11  ;;  %p7187_p10 = scmp.lt.s32.totalorder %s110_s2, %s110_s2 }
  0x9f   :  { %p7188_p11 = scmp.lt.s32.totalorder %s7186_s15, %s7182_s11 }
  0xa1   :  { %p7189_p12 = por %p7188_p11, %p7187_p10 }
  0xa3   :  { %p7190_p13 = pnand %p7189_p12, %p7183_p9 }
  0xa5   :  { %7193 = shalt.err (!%p7190_p13)
}
  0xa6   :  { %112 = dma.hbm_to_vmem [thread:$0]  %s7406_s3, 16, %s110_s2, [#allocation11]  }
  0xa7   :  { %s7194_s13 = scalar_lea.hbm %s7426_s24, 64 }
  0xa8   :  { %p7195_p0 = scmp.ne.s32.totalorder %s7426_s24, %s7194_s13  ;;  %p7198_p1 = scmp.lt.u32.totalorder %s7194_s13, %s7426_s24 }
  0xaa   :  { %p7200_p2 = pnand %p7198_p1, %p7195_p0 }
  0xac   :  { %7203 = shalt.err (!%p7200_p2)
}
  0xad   :  { %s7204_s16 = scalar_lea.vmem %s134_s10, 64  ;;  %p7209_p4 = scmp.lt.s32.totalorder %s134_s10, %s134_s10 }
  0xae   :  { %p7205_p3 = scmp.ne.s32.totalorder %s134_s10, %s7204_s16  ;;  %p7210_p5 = scmp.lt.s32.totalorder %s7204_s16, %s7204_s16 }
  0xb0   :  { %p7211_p6 = por %p7210_p5, %p7209_p4 }
  0xb2   :  { %p7212_p7 = pnand %p7211_p6, %p7205_p3 }
  0xb4   :  { %7215 = shalt.err (!%p7212_p7)
}
  0xb5   :  { %136 = dma.hbm_to_vmem [thread:$0]  %s7426_s24, 64, %s134_s10, [#allocation14]  }
  0xb6   :  { %s7343_s6 = smov [#allocation18]   ;;  %s7344_s3 = smov [#allocation21]  }
  0xb7   :  { %s157_s0 = sshll.u32 %s7343_s6, 4  ;;  %s179_s18 = sshll.u32 %s7344_s3, 4  ;;  %s158_s0 = int_to_ptr.vmem [resolvable:$true] %s157_s0  ;;  %s180_s18 = int_to_ptr.vmem [resolvable:$true] %s179_s18 }
  0xb8   :  { %s7216_s22 = scalar_lea.hbm %s7446_s20, 64 }
  0xb9   :  { %p7217_p8 = scmp.ne.s32.totalorder %s7446_s20, %s7216_s22  ;;  %p7220_p9 = scmp.lt.u32.totalorder %s7216_s22, %s7446_s20 }
  0xbb   :  { %p7222_p10 = pnand %p7220_p9, %p7217_p8 }
  0xbd   :  { %7225 = shalt.err (!%p7222_p10)
}
  0xbe   :  { %s7226_s23 = scalar_lea.vmem %s158_s0, 64  ;;  %p7231_p12 = scmp.lt.s32.totalorder %s158_s0, %s158_s0 }
  0xbf   :  { %p7227_p11 = scmp.ne.s32.totalorder %s158_s0, %s7226_s23  ;;  %p7232_p13 = scmp.lt.s32.totalorder %s7226_s23, %s7226_s23 }
  0xc1   :  { %p7233_p0 = por %p7232_p13, %p7231_p12 }
  0xc3   :  { %p7234_p1 = pnand %p7233_p0, %p7227_p11 }
  0xc5   :  { %7237 = shalt.err (!%p7234_p1)
}
  0xc6   :  { %160 = dma.hbm_to_vmem [thread:$0]  %s7446_s20, 64, %s158_s0, [#allocation17]  }
  0xc7   :  { %s7238_s24 = scalar_lea.hbm %s7461_s12, 64 }
  0xc8   :  { %p7239_p2 = scmp.ne.s32.totalorder %s7461_s12, %s7238_s24  ;;  %p7242_p3 = scmp.lt.u32.totalorder %s7238_s24, %s7461_s12 }
  0xca   :  { %p7244_p4 = pnand %p7242_p3, %p7239_p2 }
  0xcc   :  { %7247 = shalt.err (!%p7244_p4)
}
  0xcd   :  { %s7248_s26 = scalar_lea.vmem %s180_s18, 64  ;;  %p7253_p6 = scmp.lt.s32.totalorder %s180_s18, %s180_s18 }
  0xce   :  { %p7249_p5 = scmp.ne.s32.totalorder %s180_s18, %s7248_s26  ;;  %p7254_p7 = scmp.lt.s32.totalorder %s7248_s26, %s7248_s26 }
  0xd0   :  { %p7255_p8 = por %p7254_p7, %p7253_p6 }
  0xd2   :  { %p7256_p9 = pnand %p7255_p8, %p7249_p5 }
  0xd4   :  { %7259 = shalt.err (!%p7256_p9)
}
  0xd5   :  { %182 = dma.hbm_to_vmem [thread:$0]  %s7461_s12, 64, %s180_s18, [#allocation20]  }
  0xd6   :  { %s7345_s4 = smov [#allocation24]   ;;  %s7260_s20 = scalar_lea.hbm %s7476_s30, 64 }
  0xd7   :  { %s201_s25 = sshll.u32 %s7345_s4, 4  ;;  %p7261_p10 = scmp.ne.s32.totalorder %s7476_s30, %s7260_s20  ;;  %s202_s25 = int_to_ptr.vmem [resolvable:$true] %s201_s25 }
  0xd8   :  { %p7264_p11 = scmp.lt.u32.totalorder %s7260_s20, %s7476_s30 }
  0xda   :  { %p7266_p12 = pnand %p7264_p11, %p7261_p10 }
  0xdc   :  { %7269 = shalt.err (!%p7266_p12)
}
  0xdd   :  { %s7270_s28 = scalar_lea.vmem %s202_s25, 64  ;;  %p7275_p0 = scmp.lt.s32.totalorder %s202_s25, %s202_s25 }
  0xde   :  { %p7271_p13 = scmp.ne.s32.totalorder %s202_s25, %s7270_s28  ;;  %p7276_p1 = scmp.lt.s32.totalorder %s7270_s28, %s7270_s28 }
  0xe0   :  { %p7277_p2 = por %p7276_p1, %p7275_p0 }
  0xe2   :  { %p7278_p3 = pnand %p7277_p2, %p7271_p13 }
  0xe4   :  { %7281 = shalt.err (!%p7278_p3)
}
  0xe5   :  { %204 = dma.hbm_to_vmem [thread:$0]  %s7476_s30, 64, %s202_s25, [#allocation23]  }
  0xe6   :  { %7282 = dma.done.wait [#allocation9], 32768  }
  0xe7   :  { %7283 = vsyncadd [#allocation9], 4294934528 }
  0xe8   :  { %7284 = dma.done.wait [#allocation11], 48  }
  0xe9   :  { %7285 = vsyncadd [#allocation11], 4294967248 }
  0xea   :  { %7286 = dma.done.wait [#allocation14], 80  }
  0xeb   :  { %7287 = vsyncadd [#allocation14], 4294967216 }
  0xec   :  { %7288 = dma.done.wait [#allocation17], 80  }
  0xed   :  { %7289 = vsyncadd [#allocation17], 4294967216 }
  0xee   :  { %7290 = dma.done.wait [#allocation20], 80  }
  0xef   :  { %7291 = vsyncadd [#allocation20], 4294967216 }
  0xf0   :  { %7292 = dma.done.wait [#allocation23], 80  }
  0xf1   :  { %7293 = vsyncadd [#allocation23], 4294967216 }
  0xf2   :  { %v262_v0 = vld [vmem:[%s7486_s9] sm:$0xf]  ;;  %v264_v1 = vld [vmem:[%s7486_s9 + $0x8] sm:$0xf]  ;;  %v266_v2 = vld [vmem:[%s7486_s9 + $0x4] sm:$0xf] }
  0xf3   :  { %263 = vst [vmem:[#allocation2] sm:$0xf] %v262_v0  ;;  %265 = vst [vmem:[#allocation2 + $0x4] sm:$0xf] %v264_v1  ;;  %v268_v3 = vld [vmem:[%s7486_s9 + $0xc] sm:$0xf] }
  0xf4   :  { %267 = vst [vmem:[#allocation2 + $0x8] sm:$0xf] %v266_v2  ;;  %v270_v4 = vld [vmem:[%s7486_s9 + $0x10] sm:$0xf]  ;;  %v272_v5 = vld [vmem:[%s7486_s9 + $0x18] sm:$0xf] }
  0xf5   :  { %269 = vst [vmem:[#allocation2 + $0xc] sm:$0xf] %v268_v3  ;;  %271 = vst [vmem:[#allocation2 + $0x10] sm:$0xf] %v270_v4  ;;  %v274_v6 = vld [vmem:[%s7486_s9 + $0x14] sm:$0xf] }
  0xf6   :  { %273 = vst [vmem:[#allocation2 + $0x14] sm:$0xf] %v272_v5  ;;  %v276_v7 = vld [vmem:[%s7486_s9 + $0x1c] sm:$0xf]  ;;  %v278_v8 = vld [vmem:[%s7486_s9 + $0x20] sm:$0xf] }
  0xf7   :  { %275 = vst [vmem:[#allocation2 + $0x18] sm:$0xf] %v274_v6  ;;  %277 = vst [vmem:[#allocation2 + $0x1c] sm:$0xf] %v276_v7  ;;  %v280_v9 = vld [vmem:[%s7486_s9 + $0x28] sm:$0xf] }
  0xf8   :  { %279 = vst [vmem:[#allocation2 + $0x20] sm:$0xf] %v278_v8  ;;  %v282_v10 = vld [vmem:[%s7486_s9 + $0x24] sm:$0xf]  ;;  %v284_v11 = vld [vmem:[%s7486_s9 + $0x2c] sm:$0xf] }
  0xf9   :  { %281 = vst [vmem:[#allocation2 + $0x24] sm:$0xf] %v280_v9  ;;  %283 = vst [vmem:[#allocation2 + $0x28] sm:$0xf] %v282_v10  ;;  %v286_v12 = vld [vmem:[%s7486_s9 + $0x30] sm:$0xf] }
  0xfa   :  { %285 = vst [vmem:[#allocation2 + $0x2c] sm:$0xf] %v284_v11  ;;  %v288_v13 = vld [vmem:[%s7486_s9 + $0x38] sm:$0xf]  ;;  %v290_v14 = vld [vmem:[%s7486_s9 + $0x34] sm:$0xf] }
  0xfb   :  { %287 = vst [vmem:[#allocation2 + $0x30] sm:$0xf] %v286_v12  ;;  %289 = vst [vmem:[#allocation2 + $0x34] sm:$0xf] %v288_v13  ;;  %v292_v15 = vld [vmem:[%s7486_s9 + $0x3c] sm:$0xf] }
  0xfc   :  { %291 = vst [vmem:[#allocation2 + $0x38] sm:$0xf] %v290_v14  ;;  %v294_v16 = vld [vmem:[%s7486_s9 + $0x40] sm:$0xf]  ;;  %v296_v17 = vld [vmem:[%s7486_s9 + $0x48] sm:$0xf] }
  0xfd   :  { %293 = vst [vmem:[#allocation2 + $0x3c] sm:$0xf] %v292_v15  ;;  %295 = vst [vmem:[#allocation2 + $0x40] sm:$0xf] %v294_v16  ;;  %v298_v18 = vld [vmem:[%s7486_s9 + $0x44] sm:$0xf] }
  0xfe   :  { %297 = vst [vmem:[#allocation2 + $0x44] sm:$0xf] %v296_v17  ;;  %v300_v19 = vld [vmem:[%s7486_s9 + $0x4c] sm:$0xf]  ;;  %v302_v20 = vld [vmem:[%s7486_s9 + $0x50] sm:$0xf] }
  0xff   :  { %299 = vst [vmem:[#allocation2 + $0x48] sm:$0xf] %v298_v18  ;;  %301 = vst [vmem:[#allocation2 + $0x4c] sm:$0xf] %v300_v19  ;;  %v304_v21 = vld [vmem:[%s7486_s9 + $0x58] sm:$0xf] }
 0x100   :  { %303 = vst [vmem:[#allocation2 + $0x50] sm:$0xf] %v302_v20  ;;  %v306_v22 = vld [vmem:[%s7486_s9 + $0x54] sm:$0xf]  ;;  %v308_v23 = vld [vmem:[%s7486_s9 + $0x5c] sm:$0xf] }
 0x101   :  { %305 = vst [vmem:[#allocation2 + $0x54] sm:$0xf] %v304_v21  ;;  %307 = vst [vmem:[#allocation2 + $0x58] sm:$0xf] %v306_v22  ;;  %v310_v24 = vld [vmem:[%s7486_s9 + $0x60] sm:$0xf] }
 0x102   :  { %309 = vst [vmem:[#allocation2 + $0x5c] sm:$0xf] %v308_v23  ;;  %v312_v25 = vld [vmem:[%s7486_s9 + $0x68] sm:$0xf]  ;;  %v314_v26 = vld [vmem:[%s7486_s9 + $0x64] sm:$0xf] }
 0x103   :  { %311 = vst [vmem:[#allocation2 + $0x60] sm:$0xf] %v310_v24  ;;  %313 = vst [vmem:[#allocation2 + $0x64] sm:$0xf] %v312_v25  ;;  %v316_v27 = vld [vmem:[%s7486_s9 + $0x6c] sm:$0xf] }
 0x104   :  { %315 = vst [vmem:[#allocation2 + $0x68] sm:$0xf] %v314_v26  ;;  %v318_v28 = vld [vmem:[%s7486_s9 + $0x70] sm:$0xf]  ;;  %v320_v29 = vld [vmem:[%s7486_s9 + $0x78] sm:$0xf] }
 0x105   :  { %317 = vst [vmem:[#allocation2 + $0x6c] sm:$0xf] %v316_v27  ;;  %319 = vst [vmem:[#allocation2 + $0x70] sm:$0xf] %v318_v28  ;;  %v322_v30 = vld [vmem:[%s7486_s9 + $0x74] sm:$0xf] }
 0x106   :  { %321 = vst [vmem:[#allocation2 + $0x74] sm:$0xf] %v320_v29  ;;  %v324_v31 = vld [vmem:[%s7486_s9 + $0x7c] sm:$0xf]  ;;  %v326_v32 = vld [vmem:[%s7486_s9 + $0x80] sm:$0xf] }
 0x107   :  { %323 = vst [vmem:[#allocation2 + $0x78] sm:$0xf] %v322_v30  ;;  %325 = vst [vmem:[#allocation2 + $0x7c] sm:$0xf] %v324_v31  ;;  %v328_v33 = vld [vmem:[%s7486_s9 + $0x88] sm:$0xf] }
 0x108   :  { %327 = vst [vmem:[#allocation2 + $0x80] sm:$0xf] %v326_v32  ;;  %v330_v34 = vld [vmem:[%s7486_s9 + $0x84] sm:$0xf]  ;;  %v332_v35 = vld [vmem:[%s7486_s9 + $0x8c] sm:$0xf] }
 0x109   :  { %329 = vst [vmem:[#allocation2 + $0x84] sm:$0xf] %v328_v33  ;;  %331 = vst [vmem:[#allocation2 + $0x88] sm:$0xf] %v330_v34  ;;  %v334_v36 = vld [vmem:[%s7486_s9 + $0x90] sm:$0xf] }
 0x10a   :  { %333 = vst [vmem:[#allocation2 + $0x8c] sm:$0xf] %v332_v35  ;;  %v336_v37 = vld [vmem:[%s7486_s9 + $0x98] sm:$0xf]  ;;  %v338_v38 = vld [vmem:[%s7486_s9 + $0x94] sm:$0xf] }
 0x10b   :  { %335 = vst [vmem:[#allocation2 + $0x90] sm:$0xf] %v334_v36  ;;  %337 = vst [vmem:[#allocation2 + $0x94] sm:$0xf] %v336_v37  ;;  %v340_v39 = vld [vmem:[%s7486_s9 + $0x9c] sm:$0xf] }
 0x10c   :  { %339 = vst [vmem:[#allocation2 + $0x98] sm:$0xf] %v338_v38  ;;  %v342_v40 = vld [vmem:[%s7486_s9 + $0xa0] sm:$0xf]  ;;  %v344_v41 = vld [vmem:[%s7486_s9 + $0xa8] sm:$0xf] }
 0x10d   :  { %341 = vst [vmem:[#allocation2 + $0x9c] sm:$0xf] %v340_v39  ;;  %343 = vst [vmem:[#allocation2 + $0xa0] sm:$0xf] %v342_v40  ;;  %v346_v42 = vld [vmem:[%s7486_s9 + $0xa4] sm:$0xf] }
 0x10e   :  { %345 = vst [vmem:[#allocation2 + $0xa4] sm:$0xf] %v344_v41  ;;  %v348_v43 = vld [vmem:[%s7486_s9 + $0xac] sm:$0xf]  ;;  %v350_v44 = vld [vmem:[%s7486_s9 + $0xb0] sm:$0xf] }
 0x10f   :  { %347 = vst [vmem:[#allocation2 + $0xa8] sm:$0xf] %v346_v42  ;;  %349 = vst [vmem:[#allocation2 + $0xac] sm:$0xf] %v348_v43  ;;  %v352_v45 = vld [vmem:[%s7486_s9 + $0xb8] sm:$0xf] }
 0x110   :  { %351 = vst [vmem:[#allocation2 + $0xb0] sm:$0xf] %v350_v44  ;;  %v354_v46 = vld [vmem:[%s7486_s9 + $0xb4] sm:$0xf]  ;;  %v356_v47 = vld [vmem:[%s7486_s9 + $0xbc] sm:$0xf] }
 0x111   :  { %353 = vst [vmem:[#allocation2 + $0xb4] sm:$0xf] %v352_v45  ;;  %355 = vst [vmem:[#allocation2 + $0xb8] sm:$0xf] %v354_v46  ;;  %v358_v48 = vld [vmem:[%s7486_s9 + $0xc0] sm:$0xf] }
 0x112   :  { %357 = vst [vmem:[#allocation2 + $0xbc] sm:$0xf] %v356_v47  ;;  %v360_v49 = vld [vmem:[%s7486_s9 + $0xc8] sm:$0xf]  ;;  %v362_v50 = vld [vmem:[%s7486_s9 + $0xc4] sm:$0xf] }
 0x113   :  { %359 = vst [vmem:[#allocation2 + $0xc0] sm:$0xf] %v358_v48  ;;  %361 = vst [vmem:[#allocation2 + $0xc4] sm:$0xf] %v360_v49  ;;  %v364_v51 = vld [vmem:[%s7486_s9 + $0xcc] sm:$0xf] }
 0x114   :  { %363 = vst [vmem:[#allocation2 + $0xc8] sm:$0xf] %v362_v50  ;;  %v366_v52 = vld [vmem:[%s7486_s9 + $0xd0] sm:$0xf]  ;;  %v368_v53 = vld [vmem:[%s7486_s9 + $0xd8] sm:$0xf] }
 0x115   :  { %365 = vst [vmem:[#allocation2 + $0xcc] sm:$0xf] %v364_v51  ;;  %367 = vst [vmem:[#allocation2 + $0xd0] sm:$0xf] %v366_v52  ;;  %v370_v54 = vld [vmem:[%s7486_s9 + $0xd4] sm:$0xf] }
 0x116   :  { %369 = vst [vmem:[#allocation2 + $0xd4] sm:$0xf] %v368_v53  ;;  %v372_v55 = vld [vmem:[%s7486_s9 + $0xdc] sm:$0xf]  ;;  %v374_v56 = vld [vmem:[%s7486_s9 + $0xe0] sm:$0xf] }
 0x117   :  { %371 = vst [vmem:[#allocation2 + $0xd8] sm:$0xf] %v370_v54  ;;  %373 = vst [vmem:[#allocation2 + $0xdc] sm:$0xf] %v372_v55  ;;  %v376_v57 = vld [vmem:[%s7486_s9 + $0xe8] sm:$0xf] }
 0x118   :  { %375 = vst [vmem:[#allocation2 + $0xe0] sm:$0xf] %v374_v56  ;;  %v378_v58 = vld [vmem:[%s7486_s9 + $0xe4] sm:$0xf]  ;;  %v380_v59 = vld [vmem:[%s7486_s9 + $0xec] sm:$0xf] }
 0x119   :  { %377 = vst [vmem:[#allocation2 + $0xe4] sm:$0xf] %v376_v57  ;;  %379 = vst [vmem:[#allocation2 + $0xe8] sm:$0xf] %v378_v58  ;;  %v382_v60 = vld [vmem:[%s7486_s9 + $0xf0] sm:$0xf] }
 0x11a   :  { %381 = vst [vmem:[#allocation2 + $0xec] sm:$0xf] %v380_v59  ;;  %v384_v61 = vld [vmem:[%s7486_s9 + $0xf8] sm:$0xf]  ;;  %v386_v62 = vld [vmem:[%s7486_s9 + $0xf4] sm:$0xf] }
 0x11b   :  { %383 = vst [vmem:[#allocation2 + $0xf0] sm:$0xf] %v382_v60  ;;  %385 = vst [vmem:[#allocation2 + $0xf4] sm:$0xf] %v384_v61  ;;  %v388_v63 = vld [vmem:[%s7486_s9 + $0xfc] sm:$0xf] }
 0x11c   :  { %387 = vst [vmem:[#allocation2 + $0xf8] sm:$0xf] %v386_v62  ;;  %v390_v0 = vld [vmem:[%s7486_s9 + $0x100] sm:$0xf]  ;;  %v392_v1 = vld [vmem:[%s7486_s9 + $0x108] sm:$0xf] }
 0x11d   :  { %389 = vst [vmem:[#allocation2 + $0xfc] sm:$0xf] %v388_v63  ;;  %391 = vst [vmem:[#allocation2 + $0x100] sm:$0xf] %v390_v0  ;;  %v394_v2 = vld [vmem:[%s7486_s9 + $0x104] sm:$0xf] }
 0x11e   :  { %393 = vst [vmem:[#allocation2 + $0x104] sm:$0xf] %v392_v1  ;;  %v396_v3 = vld [vmem:[%s7486_s9 + $0x10c] sm:$0xf]  ;;  %v398_v4 = vld [vmem:[%s7486_s9 + $0x110] sm:$0xf] }
 0x11f   :  { %395 = vst [vmem:[#allocation2 + $0x108] sm:$0xf] %v394_v2  ;;  %397 = vst [vmem:[#allocation2 + $0x10c] sm:$0xf] %v396_v3  ;;  %v400_v5 = vld [vmem:[%s7486_s9 + $0x118] sm:$0xf] }
 0x120   :  { %399 = vst [vmem:[#allocation2 + $0x110] sm:$0xf] %v398_v4  ;;  %v402_v6 = vld [vmem:[%s7486_s9 + $0x114] sm:$0xf]  ;;  %v404_v7 = vld [vmem:[%s7486_s9 + $0x11c] sm:$0xf] }
 0x121   :  { %401 = vst [vmem:[#allocation2 + $0x114] sm:$0xf] %v400_v5  ;;  %403 = vst [vmem:[#allocation2 + $0x118] sm:$0xf] %v402_v6  ;;  %v406_v8 = vld [vmem:[%s7486_s9 + $0x120] sm:$0xf] }
 0x122   :  { %405 = vst [vmem:[#allocation2 + $0x11c] sm:$0xf] %v404_v7  ;;  %v408_v9 = vld [vmem:[%s7486_s9 + $0x128] sm:$0xf]  ;;  %v410_v10 = vld [vmem:[%s7486_s9 + $0x124] sm:$0xf] }
 0x123   :  { %407 = vst [vmem:[#allocation2 + $0x120] sm:$0xf] %v406_v8  ;;  %409 = vst [vmem:[#allocation2 + $0x124] sm:$0xf] %v408_v9  ;;  %v412_v11 = vld [vmem:[%s7486_s9 + $0x12c] sm:$0xf] }
 0x124   :  { %411 = vst [vmem:[#allocation2 + $0x128] sm:$0xf] %v410_v10  ;;  %v414_v12 = vld [vmem:[%s7486_s9 + $0x130] sm:$0xf]  ;;  %v416_v13 = vld [vmem:[%s7486_s9 + $0x138] sm:$0xf] }
 0x125   :  { %413 = vst [vmem:[#allocation2 + $0x12c] sm:$0xf] %v412_v11  ;;  %415 = vst [vmem:[#allocation2 + $0x130] sm:$0xf] %v414_v12  ;;  %v418_v14 = vld [vmem:[%s7486_s9 + $0x134] sm:$0xf] }
 0x126   :  { %417 = vst [vmem:[#allocation2 + $0x134] sm:$0xf] %v416_v13  ;;  %v420_v15 = vld [vmem:[%s7486_s9 + $0x13c] sm:$0xf]  ;;  %v422_v16 = vld [vmem:[%s7486_s9 + $0x140] sm:$0xf] }
 0x127   :  { %419 = vst [vmem:[#allocation2 + $0x138] sm:$0xf] %v418_v14  ;;  %421 = vst [vmem:[#allocation2 + $0x13c] sm:$0xf] %v420_v15  ;;  %v424_v17 = vld [vmem:[%s7486_s9 + $0x148] sm:$0xf] }
 0x128   :  { %423 = vst [vmem:[#allocation2 + $0x140] sm:$0xf] %v422_v16  ;;  %v426_v18 = vld [vmem:[%s7486_s9 + $0x144] sm:$0xf]  ;;  %v428_v19 = vld [vmem:[%s7486_s9 + $0x14c] sm:$0xf] }
 0x129   :  { %425 = vst [vmem:[#allocation2 + $0x144] sm:$0xf] %v424_v17  ;;  %427 = vst [vmem:[#allocation2 + $0x148] sm:$0xf] %v426_v18  ;;  %v430_v20 = vld [vmem:[%s7486_s9 + $0x150] sm:$0xf] }
 0x12a   :  { %429 = vst [vmem:[#allocation2 + $0x14c] sm:$0xf] %v428_v19  ;;  %v432_v21 = vld [vmem:[%s7486_s9 + $0x158] sm:$0xf]  ;;  %v434_v22 = vld [vmem:[%s7486_s9 + $0x154] sm:$0xf] }
 0x12b   :  { %431 = vst [vmem:[#allocation2 + $0x150] sm:$0xf] %v430_v20  ;;  %433 = vst [vmem:[#allocation2 + $0x154] sm:$0xf] %v432_v21  ;;  %v436_v23 = vld [vmem:[%s7486_s9 + $0x15c] sm:$0xf] }
 0x12c   :  { %435 = vst [vmem:[#allocation2 + $0x158] sm:$0xf] %v434_v22  ;;  %v438_v24 = vld [vmem:[%s7486_s9 + $0x160] sm:$0xf]  ;;  %v440_v25 = vld [vmem:[%s7486_s9 + $0x168] sm:$0xf] }
 0x12d   :  { %437 = vst [vmem:[#allocation2 + $0x15c] sm:$0xf] %v436_v23  ;;  %439 = vst [vmem:[#allocation2 + $0x160] sm:$0xf] %v438_v24  ;;  %v442_v26 = vld [vmem:[%s7486_s9 + $0x164] sm:$0xf] }
 0x12e   :  { %441 = vst [vmem:[#allocation2 + $0x164] sm:$0xf] %v440_v25  ;;  %v444_v27 = vld [vmem:[%s7486_s9 + $0x16c] sm:$0xf]  ;;  %v446_v28 = vld [vmem:[%s7486_s9 + $0x170] sm:$0xf] }
 0x12f   :  { %443 = vst [vmem:[#allocation2 + $0x168] sm:$0xf] %v442_v26  ;;  %445 = vst [vmem:[#allocation2 + $0x16c] sm:$0xf] %v444_v27  ;;  %v448_v29 = vld [vmem:[%s7486_s9 + $0x178] sm:$0xf] }
 0x130   :  { %447 = vst [vmem:[#allocation2 + $0x170] sm:$0xf] %v446_v28  ;;  %v450_v30 = vld [vmem:[%s7486_s9 + $0x174] sm:$0xf]  ;;  %v452_v31 = vld [vmem:[%s7486_s9 + $0x17c] sm:$0xf] }
 0x131   :  { %449 = vst [vmem:[#allocation2 + $0x174] sm:$0xf] %v448_v29  ;;  %451 = vst [vmem:[#allocation2 + $0x178] sm:$0xf] %v450_v30  ;;  %v454_v32 = vld [vmem:[%s7486_s9 + $0x180] sm:$0xf] }
 0x132   :  { %453 = vst [vmem:[#allocation2 + $0x17c] sm:$0xf] %v452_v31  ;;  %v456_v33 = vld [vmem:[%s7486_s9 + $0x188] sm:$0xf]  ;;  %v458_v34 = vld [vmem:[%s7486_s9 + $0x184] sm:$0xf] }
 0x133   :  { %455 = vst [vmem:[#allocation2 + $0x180] sm:$0xf] %v454_v32  ;;  %457 = vst [vmem:[#allocation2 + $0x184] sm:$0xf] %v456_v33  ;;  %v460_v35 = vld [vmem:[%s7486_s9 + $0x18c] sm:$0xf] }
 0x134   :  { %459 = vst [vmem:[#allocation2 + $0x188] sm:$0xf] %v458_v34  ;;  %v462_v36 = vld [vmem:[%s7486_s9 + $0x190] sm:$0xf]  ;;  %v464_v37 = vld [vmem:[%s7486_s9 + $0x198] sm:$0xf] }
 0x135   :  { %461 = vst [vmem:[#allocation2 + $0x18c] sm:$0xf] %v460_v35  ;;  %463 = vst [vmem:[#allocation2 + $0x190] sm:$0xf] %v462_v36  ;;  %v466_v38 = vld [vmem:[%s7486_s9 + $0x194] sm:$0xf] }
 0x136   :  { %465 = vst [vmem:[#allocation2 + $0x194] sm:$0xf] %v464_v37  ;;  %v468_v39 = vld [vmem:[%s7486_s9 + $0x19c] sm:$0xf]  ;;  %v470_v40 = vld [vmem:[%s7486_s9 + $0x1a0] sm:$0xf] }
 0x137   :  { %467 = vst [vmem:[#allocation2 + $0x198] sm:$0xf] %v466_v38  ;;  %469 = vst [vmem:[#allocation2 + $0x19c] sm:$0xf] %v468_v39  ;;  %v472_v41 = vld [vmem:[%s7486_s9 + $0x1a8] sm:$0xf] }
 0x138   :  { %471 = vst [vmem:[#allocation2 + $0x1a0] sm:$0xf] %v470_v40  ;;  %v474_v42 = vld [vmem:[%s7486_s9 + $0x1a4] sm:$0xf]  ;;  %v476_v43 = vld [vmem:[%s7486_s9 + $0x1ac] sm:$0xf] }
 0x139   :  { %473 = vst [vmem:[#allocation2 + $0x1a4] sm:$0xf] %v472_v41  ;;  %475 = vst [vmem:[#allocation2 + $0x1a8] sm:$0xf] %v474_v42  ;;  %v478_v44 = vld [vmem:[%s7486_s9 + $0x1b0] sm:$0xf] }
 0x13a   :  { %477 = vst [vmem:[#allocation2 + $0x1ac] sm:$0xf] %v476_v43  ;;  %v480_v45 = vld [vmem:[%s7486_s9 + $0x1b8] sm:$0xf]  ;;  %v482_v46 = vld [vmem:[%s7486_s9 + $0x1b4] sm:$0xf] }
 0x13b   :  { %479 = vst [vmem:[#allocation2 + $0x1b0] sm:$0xf] %v478_v44  ;;  %481 = vst [vmem:[#allocation2 + $0x1b4] sm:$0xf] %v480_v45  ;;  %v484_v47 = vld [vmem:[%s7486_s9 + $0x1bc] sm:$0xf] }
 0x13c   :  { %483 = vst [vmem:[#allocation2 + $0x1b8] sm:$0xf] %v482_v46  ;;  %v486_v48 = vld [vmem:[%s7486_s9 + $0x1c0] sm:$0xf]  ;;  %v488_v49 = vld [vmem:[%s7486_s9 + $0x1c8] sm:$0xf] }
 0x13d   :  { %485 = vst [vmem:[#allocation2 + $0x1bc] sm:$0xf] %v484_v47  ;;  %487 = vst [vmem:[#allocation2 + $0x1c0] sm:$0xf] %v486_v48  ;;  %v490_v50 = vld [vmem:[%s7486_s9 + $0x1c4] sm:$0xf] }
 0x13e   :  { %489 = vst [vmem:[#allocation2 + $0x1c4] sm:$0xf] %v488_v49  ;;  %v492_v51 = vld [vmem:[%s7486_s9 + $0x1cc] sm:$0xf]  ;;  %v494_v52 = vld [vmem:[%s7486_s9 + $0x1d0] sm:$0xf] }
 0x13f   :  { %491 = vst [vmem:[#allocation2 + $0x1c8] sm:$0xf] %v490_v50  ;;  %493 = vst [vmem:[#allocation2 + $0x1cc] sm:$0xf] %v492_v51  ;;  %v496_v53 = vld [vmem:[%s7486_s9 + $0x1d8] sm:$0xf] }
 0x140   :  { %495 = vst [vmem:[#allocation2 + $0x1d0] sm:$0xf] %v494_v52  ;;  %v498_v54 = vld [vmem:[%s7486_s9 + $0x1d4] sm:$0xf]  ;;  %v500_v55 = vld [vmem:[%s7486_s9 + $0x1dc] sm:$0xf] }
 0x141   :  { %497 = vst [vmem:[#allocation2 + $0x1d4] sm:$0xf] %v496_v53  ;;  %499 = vst [vmem:[#allocation2 + $0x1d8] sm:$0xf] %v498_v54  ;;  %v502_v56 = vld [vmem:[%s7486_s9 + $0x1e0] sm:$0xf] }
 0x142   :  { %501 = vst [vmem:[#allocation2 + $0x1dc] sm:$0xf] %v500_v55  ;;  %v504_v57 = vld [vmem:[%s7486_s9 + $0x1e8] sm:$0xf]  ;;  %v506_v58 = vld [vmem:[%s7486_s9 + $0x1e4] sm:$0xf] }
 0x143   :  { %503 = vst [vmem:[#allocation2 + $0x1e0] sm:$0xf] %v502_v56  ;;  %505 = vst [vmem:[#allocation2 + $0x1e4] sm:$0xf] %v504_v57  ;;  %v508_v59 = vld [vmem:[%s7486_s9 + $0x1ec] sm:$0xf] }
 0x144   :  { %507 = vst [vmem:[#allocation2 + $0x1e8] sm:$0xf] %v506_v58  ;;  %v510_v60 = vld [vmem:[%s7486_s9 + $0x1f0] sm:$0xf]  ;;  %v512_v61 = vld [vmem:[%s7486_s9 + $0x1f8] sm:$0xf] }
 0x145   :  { %509 = vst [vmem:[#allocation2 + $0x1ec] sm:$0xf] %v508_v59  ;;  %511 = vst [vmem:[#allocation2 + $0x1f0] sm:$0xf] %v510_v60  ;;  %v514_v62 = vld [vmem:[%s7486_s9 + $0x1f4] sm:$0xf] }
 0x146   :  { %513 = vst [vmem:[#allocation2 + $0x1f4] sm:$0xf] %v512_v61  ;;  %v516_v63 = vld [vmem:[%s7486_s9 + $0x1fc] sm:$0xf]  ;;  %515 = vst [vmem:[#allocation2 + $0x1f8] sm:$0xf] %v514_v62 }
 0x147   :  { %517 = vst [vmem:[#allocation2 + $0x1fc] sm:$0xf] %v516_v63 }
 0x148   :  { %804 = vsyncadd [#allocation7], 8192  ;;  %v823_v0 = vld [vmem:[%s7491_s27] sm:$0xf]  ;;  %v825_v1 = vld [vmem:[%s7491_s27 + $0x8] sm:$0xf] }
 0x149   :  { %824 = vst [vmem:[#allocation3] sm:$0xf] %v823_v0  ;;  %826 = vst [vmem:[#allocation3 + $0x4] sm:$0xf] %v825_v1  ;;  %v827_v2 = vld [vmem:[%s7491_s27 + $0x4] sm:$0xf] }
 0x14a   :  { %v829_v3 = vld [vmem:[%s7491_s27 + $0xc] sm:$0xf]  ;;  %v831_v4 = vld [vmem:[%s7491_s27 + $0x10] sm:$0xf]  ;;  %828 = vst [vmem:[#allocation3 + $0x8] sm:$0xf] %v827_v2 }
 0x14b   :  { %830 = vst [vmem:[#allocation3 + $0xc] sm:$0xf] %v829_v3  ;;  %832 = vst [vmem:[#allocation3 + $0x10] sm:$0xf] %v831_v4  ;;  %v833_v5 = vld [vmem:[%s7491_s27 + $0x18] sm:$0xf] }
 0x14c   :  { %v835_v6 = vld [vmem:[%s7491_s27 + $0x14] sm:$0xf]  ;;  %v837_v7 = vld [vmem:[%s7491_s27 + $0x1c] sm:$0xf]  ;;  %834 = vst [vmem:[#allocation3 + $0x14] sm:$0xf] %v833_v5 }
 0x14d   :  { %836 = vst [vmem:[#allocation3 + $0x18] sm:$0xf] %v835_v6  ;;  %838 = vst [vmem:[#allocation3 + $0x1c] sm:$0xf] %v837_v7  ;;  %v839_v8 = vld [vmem:[%s7491_s27 + $0x20] sm:$0xf] }
 0x14e   :  { %v841_v9 = vld [vmem:[%s7491_s27 + $0x28] sm:$0xf]  ;;  %v843_v10 = vld [vmem:[%s7491_s27 + $0x24] sm:$0xf]  ;;  %840 = vst [vmem:[#allocation3 + $0x20] sm:$0xf] %v839_v8 }
 0x14f   :  { %842 = vst [vmem:[#allocation3 + $0x24] sm:$0xf] %v841_v9  ;;  %844 = vst [vmem:[#allocation3 + $0x28] sm:$0xf] %v843_v10  ;;  %v845_v11 = vld [vmem:[%s7491_s27 + $0x2c] sm:$0xf] }
 0x150   :  { %v847_v12 = vld [vmem:[%s7491_s27 + $0x30] sm:$0xf]  ;;  %v849_v13 = vld [vmem:[%s7491_s27 + $0x38] sm:$0xf]  ;;  %846 = vst [vmem:[#allocation3 + $0x2c] sm:$0xf] %v845_v11 }
 0x151   :  { %848 = vst [vmem:[#allocation3 + $0x30] sm:$0xf] %v847_v12  ;;  %850 = vst [vmem:[#allocation3 + $0x34] sm:$0xf] %v849_v13  ;;  %v851_v14 = vld [vmem:[%s7491_s27 + $0x34] sm:$0xf] }
 0x152   :  { %v853_v15 = vld [vmem:[%s7491_s27 + $0x3c] sm:$0xf]  ;;  %v855_v16 = vld [vmem:[%s7491_s27 + $0x40] sm:$0xf]  ;;  %852 = vst [vmem:[#allocation3 + $0x38] sm:$0xf] %v851_v14 }
 0x153   :  { %854 = vst [vmem:[#allocation3 + $0x3c] sm:$0xf] %v853_v15  ;;  %856 = vst [vmem:[#allocation3 + $0x40] sm:$0xf] %v855_v16  ;;  %v857_v17 = vld [vmem:[%s7491_s27 + $0x48] sm:$0xf] }
 0x154   :  { %v859_v18 = vld [vmem:[%s7491_s27 + $0x44] sm:$0xf]  ;;  %v861_v19 = vld [vmem:[%s7491_s27 + $0x4c] sm:$0xf]  ;;  %858 = vst [vmem:[#allocation3 + $0x44] sm:$0xf] %v857_v17 }
 0x155   :  { %860 = vst [vmem:[#allocation3 + $0x48] sm:$0xf] %v859_v18  ;;  %862 = vst [vmem:[#allocation3 + $0x4c] sm:$0xf] %v861_v19  ;;  %v863_v20 = vld [vmem:[%s7491_s27 + $0x50] sm:$0xf] }
 0x156   :  { %v865_v21 = vld [vmem:[%s7491_s27 + $0x58] sm:$0xf]  ;;  %v867_v22 = vld [vmem:[%s7491_s27 + $0x54] sm:$0xf]  ;;  %864 = vst [vmem:[#allocation3 + $0x50] sm:$0xf] %v863_v20 }
 0x157   :  { %866 = vst [vmem:[#allocation3 + $0x54] sm:$0xf] %v865_v21  ;;  %868 = vst [vmem:[#allocation3 + $0x58] sm:$0xf] %v867_v22  ;;  %v869_v23 = vld [vmem:[%s7491_s27 + $0x5c] sm:$0xf] }
 0x158   :  { %v871_v24 = vld [vmem:[%s7491_s27 + $0x60] sm:$0xf]  ;;  %v873_v25 = vld [vmem:[%s7491_s27 + $0x68] sm:$0xf]  ;;  %870 = vst [vmem:[#allocation3 + $0x5c] sm:$0xf] %v869_v23 }
 0x159   :  { %872 = vst [vmem:[#allocation3 + $0x60] sm:$0xf] %v871_v24  ;;  %874 = vst [vmem:[#allocation3 + $0x64] sm:$0xf] %v873_v25  ;;  %v875_v26 = vld [vmem:[%s7491_s27 + $0x64] sm:$0xf] }
 0x15a   :  { %v877_v27 = vld [vmem:[%s7491_s27 + $0x6c] sm:$0xf]  ;;  %v879_v28 = vld [vmem:[%s7491_s27 + $0x70] sm:$0xf]  ;;  %876 = vst [vmem:[#allocation3 + $0x68] sm:$0xf] %v875_v26 }
 0x15b   :  { %878 = vst [vmem:[#allocation3 + $0x6c] sm:$0xf] %v877_v27  ;;  %880 = vst [vmem:[#allocation3 + $0x70] sm:$0xf] %v879_v28  ;;  %v881_v29 = vld [vmem:[%s7491_s27 + $0x78] sm:$0xf] }
 0x15c   :  { %v883_v30 = vld [vmem:[%s7491_s27 + $0x74] sm:$0xf]  ;;  %v885_v31 = vld [vmem:[%s7491_s27 + $0x7c] sm:$0xf]  ;;  %882 = vst [vmem:[#allocation3 + $0x74] sm:$0xf] %v881_v29 }
 0x15d   :  { %884 = vst [vmem:[#allocation3 + $0x78] sm:$0xf] %v883_v30  ;;  %886 = vst [vmem:[#allocation3 + $0x7c] sm:$0xf] %v885_v31  ;;  %v887_v32 = vld [vmem:[%s7491_s27 + $0x80] sm:$0xf] }
 0x15e   :  { %v889_v33 = vld [vmem:[%s7491_s27 + $0x88] sm:$0xf]  ;;  %v891_v34 = vld [vmem:[%s7491_s27 + $0x84] sm:$0xf]  ;;  %888 = vst [vmem:[#allocation3 + $0x80] sm:$0xf] %v887_v32 }
 0x15f   :  { %890 = vst [vmem:[#allocation3 + $0x84] sm:$0xf] %v889_v33  ;;  %892 = vst [vmem:[#allocation3 + $0x88] sm:$0xf] %v891_v34  ;;  %v893_v35 = vld [vmem:[%s7491_s27 + $0x8c] sm:$0xf] }
 0x160   :  { %v895_v36 = vld [vmem:[%s7491_s27 + $0x90] sm:$0xf]  ;;  %v897_v37 = vld [vmem:[%s7491_s27 + $0x98] sm:$0xf]  ;;  %894 = vst [vmem:[#allocation3 + $0x8c] sm:$0xf] %v893_v35 }
 0x161   :  { %896 = vst [vmem:[#allocation3 + $0x90] sm:$0xf] %v895_v36  ;;  %898 = vst [vmem:[#allocation3 + $0x94] sm:$0xf] %v897_v37  ;;  %v899_v38 = vld [vmem:[%s7491_s27 + $0x94] sm:$0xf] }
 0x162   :  { %v901_v39 = vld [vmem:[%s7491_s27 + $0x9c] sm:$0xf]  ;;  %v903_v40 = vld [vmem:[%s7491_s27 + $0xa0] sm:$0xf]  ;;  %900 = vst [vmem:[#allocation3 + $0x98] sm:$0xf] %v899_v38 }
 0x163   :  { %902 = vst [vmem:[#allocation3 + $0x9c] sm:$0xf] %v901_v39  ;;  %904 = vst [vmem:[#allocation3 + $0xa0] sm:$0xf] %v903_v40  ;;  %v905_v41 = vld [vmem:[%s7491_s27 + $0xa8] sm:$0xf] }
 0x164   :  { %v907_v42 = vld [vmem:[%s7491_s27 + $0xa4] sm:$0xf]  ;;  %v909_v43 = vld [vmem:[%s7491_s27 + $0xac] sm:$0xf]  ;;  %906 = vst [vmem:[#allocation3 + $0xa4] sm:$0xf] %v905_v41 }
 0x165   :  { %908 = vst [vmem:[#allocation3 + $0xa8] sm:$0xf] %v907_v42  ;;  %910 = vst [vmem:[#allocation3 + $0xac] sm:$0xf] %v909_v43  ;;  %v911_v44 = vld [vmem:[%s7491_s27 + $0xb0] sm:$0xf] }
 0x166   :  { %v913_v45 = vld [vmem:[%s7491_s27 + $0xb8] sm:$0xf]  ;;  %v915_v46 = vld [vmem:[%s7491_s27 + $0xb4] sm:$0xf]  ;;  %912 = vst [vmem:[#allocation3 + $0xb0] sm:$0xf] %v911_v44 }
 0x167   :  { %914 = vst [vmem:[#allocation3 + $0xb4] sm:$0xf] %v913_v45  ;;  %916 = vst [vmem:[#allocation3 + $0xb8] sm:$0xf] %v915_v46  ;;  %v917_v47 = vld [vmem:[%s7491_s27 + $0xbc] sm:$0xf] }
 0x168   :  { %v919_v48 = vld [vmem:[%s7491_s27 + $0xc0] sm:$0xf]  ;;  %v921_v49 = vld [vmem:[%s7491_s27 + $0xc8] sm:$0xf]  ;;  %918 = vst [vmem:[#allocation3 + $0xbc] sm:$0xf] %v917_v47 }
 0x169   :  { %920 = vst [vmem:[#allocation3 + $0xc0] sm:$0xf] %v919_v48  ;;  %922 = vst [vmem:[#allocation3 + $0xc4] sm:$0xf] %v921_v49  ;;  %v923_v50 = vld [vmem:[%s7491_s27 + $0xc4] sm:$0xf] }
 0x16a   :  { %v925_v51 = vld [vmem:[%s7491_s27 + $0xcc] sm:$0xf]  ;;  %v927_v52 = vld [vmem:[%s7491_s27 + $0xd0] sm:$0xf]  ;;  %924 = vst [vmem:[#allocation3 + $0xc8] sm:$0xf] %v923_v50 }
 0x16b   :  { %926 = vst [vmem:[#allocation3 + $0xcc] sm:$0xf] %v925_v51  ;;  %928 = vst [vmem:[#allocation3 + $0xd0] sm:$0xf] %v927_v52  ;;  %v929_v53 = vld [vmem:[%s7491_s27 + $0xd8] sm:$0xf] }
 0x16c   :  { %v931_v54 = vld [vmem:[%s7491_s27 + $0xd4] sm:$0xf]  ;;  %v933_v55 = vld [vmem:[%s7491_s27 + $0xdc] sm:$0xf]  ;;  %930 = vst [vmem:[#allocation3 + $0xd4] sm:$0xf] %v929_v53 }
 0x16d   :  { %932 = vst [vmem:[#allocation3 + $0xd8] sm:$0xf] %v931_v54  ;;  %934 = vst [vmem:[#allocation3 + $0xdc] sm:$0xf] %v933_v55  ;;  %v935_v56 = vld [vmem:[%s7491_s27 + $0xe0] sm:$0xf] }
 0x16e   :  { %v937_v57 = vld [vmem:[%s7491_s27 + $0xe8] sm:$0xf]  ;;  %v939_v58 = vld [vmem:[%s7491_s27 + $0xe4] sm:$0xf]  ;;  %936 = vst [vmem:[#allocation3 + $0xe0] sm:$0xf] %v935_v56 }
 0x16f   :  { %938 = vst [vmem:[#allocation3 + $0xe4] sm:$0xf] %v937_v57  ;;  %940 = vst [vmem:[#allocation3 + $0xe8] sm:$0xf] %v939_v58  ;;  %v941_v59 = vld [vmem:[%s7491_s27 + $0xec] sm:$0xf] }
 0x170   :  { %v943_v60 = vld [vmem:[%s7491_s27 + $0xf0] sm:$0xf]  ;;  %v945_v61 = vld [vmem:[%s7491_s27 + $0xf8] sm:$0xf]  ;;  %942 = vst [vmem:[#allocation3 + $0xec] sm:$0xf] %v941_v59 }
 0x171   :  { %944 = vst [vmem:[#allocation3 + $0xf0] sm:$0xf] %v943_v60  ;;  %946 = vst [vmem:[#allocation3 + $0xf4] sm:$0xf] %v945_v61  ;;  %v947_v62 = vld [vmem:[%s7491_s27 + $0xf4] sm:$0xf] }
 0x172   :  { %v949_v63 = vld [vmem:[%s7491_s27 + $0xfc] sm:$0xf]  ;;  %948 = vst [vmem:[#allocation3 + $0xf8] sm:$0xf] %v947_v62 }
 0x173   :  { %950 = vst [vmem:[#allocation3 + $0xfc] sm:$0xf] %v949_v63 }
 0x174   :  { %1109 = vsyncadd [#allocation7 + $0x1], 4096  ;;  %v1128_v0 = vld [vmem:[%s7496_s19] sm:$0xf]  ;;  %v1130_v1 = vld [vmem:[%s7496_s19 + $0x8] sm:$0xf] }
 0x175   :  { %1129 = vst [vmem:[#allocation4] sm:$0xf] %v1128_v0  ;;  %1131 = vst [vmem:[#allocation4 + $0x4] sm:$0xf] %v1130_v1  ;;  %v1132_v2 = vld [vmem:[%s7496_s19 + $0x4] sm:$0xf] }
 0x176   :  { %v1134_v3 = vld [vmem:[%s7496_s19 + $0xc] sm:$0xf]  ;;  %v1136_v4 = vld [vmem:[%s7496_s19 + $0x10] sm:$0xf]  ;;  %1133 = vst [vmem:[#allocation4 + $0x8] sm:$0xf] %v1132_v2 }
 0x177   :  { %1135 = vst [vmem:[#allocation4 + $0xc] sm:$0xf] %v1134_v3  ;;  %1137 = vst [vmem:[#allocation4 + $0x10] sm:$0xf] %v1136_v4  ;;  %v1138_v5 = vld [vmem:[%s7496_s19 + $0x18] sm:$0xf] }
 0x178   :  { %v1140_v6 = vld [vmem:[%s7496_s19 + $0x14] sm:$0xf]  ;;  %v1142_v7 = vld [vmem:[%s7496_s19 + $0x1c] sm:$0xf]  ;;  %1139 = vst [vmem:[#allocation4 + $0x14] sm:$0xf] %v1138_v5 }
 0x179   :  { %1141 = vst [vmem:[#allocation4 + $0x18] sm:$0xf] %v1140_v6  ;;  %1143 = vst [vmem:[#allocation4 + $0x1c] sm:$0xf] %v1142_v7  ;;  %v1144_v8 = vld [vmem:[%s7496_s19 + $0x20] sm:$0xf] }
 0x17a   :  { %v1146_v9 = vld [vmem:[%s7496_s19 + $0x28] sm:$0xf]  ;;  %v1148_v10 = vld [vmem:[%s7496_s19 + $0x24] sm:$0xf]  ;;  %1145 = vst [vmem:[#allocation4 + $0x20] sm:$0xf] %v1144_v8 }
 0x17b   :  { %1147 = vst [vmem:[#allocation4 + $0x24] sm:$0xf] %v1146_v9  ;;  %1149 = vst [vmem:[#allocation4 + $0x28] sm:$0xf] %v1148_v10  ;;  %v1150_v11 = vld [vmem:[%s7496_s19 + $0x2c] sm:$0xf] }
 0x17c   :  { %v1152_v12 = vld [vmem:[%s7496_s19 + $0x30] sm:$0xf]  ;;  %v1154_v13 = vld [vmem:[%s7496_s19 + $0x38] sm:$0xf]  ;;  %1151 = vst [vmem:[#allocation4 + $0x2c] sm:$0xf] %v1150_v11 }
 0x17d   :  { %1153 = vst [vmem:[#allocation4 + $0x30] sm:$0xf] %v1152_v12  ;;  %1155 = vst [vmem:[#allocation4 + $0x34] sm:$0xf] %v1154_v13  ;;  %v1156_v14 = vld [vmem:[%s7496_s19 + $0x34] sm:$0xf] }
 0x17e   :  { %v1158_v15 = vld [vmem:[%s7496_s19 + $0x3c] sm:$0xf]  ;;  %v1160_v16 = vld [vmem:[%s7496_s19 + $0x40] sm:$0xf]  ;;  %1157 = vst [vmem:[#allocation4 + $0x38] sm:$0xf] %v1156_v14 }
 0x17f   :  { %1159 = vst [vmem:[#allocation4 + $0x3c] sm:$0xf] %v1158_v15  ;;  %1161 = vst [vmem:[#allocation4 + $0x40] sm:$0xf] %v1160_v16  ;;  %v1162_v17 = vld [vmem:[%s7496_s19 + $0x48] sm:$0xf] }
 0x180   :  { %v1164_v18 = vld [vmem:[%s7496_s19 + $0x44] sm:$0xf]  ;;  %v1166_v19 = vld [vmem:[%s7496_s19 + $0x4c] sm:$0xf]  ;;  %1163 = vst [vmem:[#allocation4 + $0x44] sm:$0xf] %v1162_v17 }
 0x181   :  { %1165 = vst [vmem:[#allocation4 + $0x48] sm:$0xf] %v1164_v18  ;;  %1167 = vst [vmem:[#allocation4 + $0x4c] sm:$0xf] %v1166_v19  ;;  %v1168_v20 = vld [vmem:[%s7496_s19 + $0x50] sm:$0xf] }
 0x182   :  { %v1170_v21 = vld [vmem:[%s7496_s19 + $0x58] sm:$0xf]  ;;  %v1172_v22 = vld [vmem:[%s7496_s19 + $0x54] sm:$0xf]  ;;  %1169 = vst [vmem:[#allocation4 + $0x50] sm:$0xf] %v1168_v20 }
 0x183   :  { %1171 = vst [vmem:[#allocation4 + $0x54] sm:$0xf] %v1170_v21  ;;  %1173 = vst [vmem:[#allocation4 + $0x58] sm:$0xf] %v1172_v22  ;;  %v1174_v23 = vld [vmem:[%s7496_s19 + $0x5c] sm:$0xf] }
 0x184   :  { %v1176_v24 = vld [vmem:[%s7496_s19 + $0x60] sm:$0xf]  ;;  %v1178_v25 = vld [vmem:[%s7496_s19 + $0x68] sm:$0xf]  ;;  %1175 = vst [vmem:[#allocation4 + $0x5c] sm:$0xf] %v1174_v23 }
 0x185   :  { %1177 = vst [vmem:[#allocation4 + $0x60] sm:$0xf] %v1176_v24  ;;  %1179 = vst [vmem:[#allocation4 + $0x64] sm:$0xf] %v1178_v25  ;;  %v1180_v26 = vld [vmem:[%s7496_s19 + $0x64] sm:$0xf] }
 0x186   :  { %v1182_v27 = vld [vmem:[%s7496_s19 + $0x6c] sm:$0xf]  ;;  %v1184_v28 = vld [vmem:[%s7496_s19 + $0x70] sm:$0xf]  ;;  %1181 = vst [vmem:[#allocation4 + $0x68] sm:$0xf] %v1180_v26 }
 0x187   :  { %1183 = vst [vmem:[#allocation4 + $0x6c] sm:$0xf] %v1182_v27  ;;  %1185 = vst [vmem:[#allocation4 + $0x70] sm:$0xf] %v1184_v28  ;;  %v1186_v29 = vld [vmem:[%s7496_s19 + $0x78] sm:$0xf] }
 0x188   :  { %v1188_v30 = vld [vmem:[%s7496_s19 + $0x74] sm:$0xf]  ;;  %v1190_v31 = vld [vmem:[%s7496_s19 + $0x7c] sm:$0xf]  ;;  %1187 = vst [vmem:[#allocation4 + $0x74] sm:$0xf] %v1186_v29 }
 0x189   :  { %1189 = vst [vmem:[#allocation4 + $0x78] sm:$0xf] %v1188_v30  ;;  %1191 = vst [vmem:[#allocation4 + $0x7c] sm:$0xf] %v1190_v31 }
 0x18a   :  { %1286 = vsyncadd [#allocation7 + $0x2], 2048  ;;  %s1292_s9 = sld [smem:[#allocation0]]   ;;  %s7346_s30 = smov [#allocation5]  }
 0x18b   :  { %s1300_s12 = sshll.u32 %s7346_s30, 4  ;;  %s7347_s27 = smov 512   ;;  %s1301_s12 = int_to_ptr.vmem [resolvable:$true] %s1300_s12 }
 0x18c   :  { %1304 = sst [smem:[#allocation29]] %s7347_s27  ;;  %s7348_s8 = smov 4  }
 0x18d   :  { %1306 = sst [smem:[#allocation29 + $0x1]] %s7347_s27  ;;  %s7349_s1 = smov 64  }
 0x18e   :  { %1308 = sst [smem:[#allocation29 + $0x2]] %s7348_s8  ;;  %s7350_s2 = smov 128  }
 0x18f   :  { %1310 = sst [smem:[#allocation29 + $0x3]] %s7349_s1  ;;  %s7351_s10 = smov 2  }
 0x190   :  { %s5859_s19 = sshll.u32 %s1292_s9, 26  ;;  %1312 = sst [smem:[#allocation29 + $0x4]] %s7350_s2 }
 0x191   :  { %s7796_s7 = sadd.s32 134217728, %s5859_s19  ;;  %1314 = sst [smem:[#allocation29 + $0x5]] %s7351_s10 }
 0x192   :  { %s7352_s14 = smov 256   ;;  %1318 = sst [smem:[#allocation29 + $0x7]] %s7349_s1 }
 0x193   :  { %1316 = sst [smem:[#allocation29 + $0x6]] %s7352_s14  ;;  %s7353_s11 = smov [#allocation7 + $0x3]  }
 0x194   :  { %1320 = sst [smem:[#allocation29 + $0x8]] %s7348_s8  ;;  %s7354_s15 = smov [#allocation28]  }
 0x195   :  { %1322 = dma.general %s7501_s29, 8192, %s1301_s12, %s7353_s11, %s7354_s15, [#allocation29], %s7796_s7, 0  }
 0x196   :  { %s7355_s13 = smov 1024   ;;  %s7356_s16 = smov 8  }
 0x197   :  { %1339 = sst [smem:[#allocation31]] %s7355_s13  ;;  %s7357_s6 = smov [#allocation6]  }
 0x198   :  { %1341 = sst [smem:[#allocation31 + $0x1]] %s7355_s13  ;;  %s1335_s0 = sshll.u32 %s7357_s6, 4  ;;  %s1336_s0 = int_to_ptr.vmem [resolvable:$true] %s1335_s0 }
 0x199   :  { %1343 = sst [smem:[#allocation31 + $0x2]] %s7356_s16  ;;  %s7358_s3 = smov [#allocation7 + $0x4]  }
 0x19a   :  { %1345 = sst [smem:[#allocation31 + $0x3]] %s7349_s1  ;;  %s7359_s29 = smov [#allocation30]  }
 0x19b   :  { %1347 = sst [smem:[#allocation31 + $0x4]] %s7350_s2 }
 0x19c   :  { %1349 = sst [smem:[#allocation31 + $0x5]] %s7351_s10 }
 0x19d   :  { %1351 = sst [smem:[#allocation31 + $0x6]] %s7347_s27 }
 0x19e   :  { %1353 = sst [smem:[#allocation31 + $0x7]] %s7349_s1 }
 0x19f   :  { %1355 = sst [smem:[#allocation31 + $0x8]] %s7348_s8 }
 0x1a0   :  { %1357 = dma.general %s7506_s21, 32768, %s1336_s0, %s7358_s3, %s7359_s29, [#allocation31], %s7796_s7, 0  }
 0x1a1   :  { %v6508_v32 = vld [vmem:[#allocation8 + $0x4] ss:$16 sps:$4 sm:$0xff]   ;;  %v6510_v33 = vld [vmem:[#allocation8 + $0xc] ss:$16 sps:$4 sm:$0xff]   ;;  %v6512_v34 = vld [vmem:[#allocation8] ss:$16 sps:$4 sm:$0xff]  }
 0x1a2   :  { %2932 = vmatprep.subr.bf16.mxu0 %v6508_v32  ;;  %v6513_v35 = vld [vmem:[#allocation8 + $0x8] ss:$16 sps:$4 sm:$0xff]   ;;  %3096 = vmatprep.subr.bf16.mxu1 %v6510_v33  ;;  %v6514_v36 = vld [vmem:[#allocation8 + $0x24] ss:$16 sps:$4 sm:$0xff]   ;;  %v6516_v37 = vld [vmem:[#allocation8 + $0x2c] ss:$16 sps:$4 sm:$0xff]  }
 0x1a3   :  { %2933 = vmatpush1.bf16.msra.mxu0 %v6512_v34  ;;  %3097 = vmatpush1.bf16.msra.mxu1 %v6513_v35  ;;  %v6518_v38 = vld [vmem:[#allocation8 + $0x20] ss:$16 sps:$4 sm:$0xff]   ;;  %v6519_v39 = vld [vmem:[#allocation8 + $0x28] ss:$16 sps:$4 sm:$0xff]   ;;  %v6520_v40 = vld [vmem:[#allocation8 + $0x44] ss:$16 sps:$4 sm:$0xff]  }
 0x1a4   :  { %2934 = vmatprep.subr.bf16.mxu0 %v6514_v36  ;;  %3098 = vmatprep.subr.bf16.mxu1 %v6516_v37  ;;  %v6522_v41 = vld [vmem:[#allocation8 + $0x4c] ss:$16 sps:$4 sm:$0xff]   ;;  %v6524_v42 = vld [vmem:[#allocation8 + $0x40] ss:$16 sps:$4 sm:$0xff]   ;;  %v6525_v43 = vld [vmem:[#allocation8 + $0x48] ss:$16 sps:$4 sm:$0xff]  }
 0x1a5   :  { %v6526_v44 = vld [vmem:[#allocation8 + $0x64] ss:$16 sps:$4 sm:$0xff]   ;;  %v6528_v45 = vld [vmem:[#allocation8 + $0x6c] ss:$16 sps:$4 sm:$0xff]   ;;  %v6530_v46 = vld [vmem:[#allocation8 + $0x60] ss:$16 sps:$4 sm:$0xff]  }
 0x1a6   :  { %v6531_v47 = vld [vmem:[#allocation8 + $0x68] ss:$16 sps:$4 sm:$0xff]   ;;  %v6532_v48 = vld [vmem:[#allocation8 + $0x84] ss:$16 sps:$4 sm:$0xff]   ;;  %v6534_v49 = vld [vmem:[#allocation8 + $0x8c] ss:$16 sps:$4 sm:$0xff]  }
 0x1a7   :  { %2935 = vmatpush1.bf16.msra.mxu0 %v6518_v38  ;;  %3099 = vmatpush1.bf16.msra.mxu1 %v6519_v39  ;;  %v6536_v50 = vld [vmem:[#allocation8 + $0x80] ss:$16 sps:$4 sm:$0xff]   ;;  %v6537_v51 = vld [vmem:[#allocation8 + $0x88] ss:$16 sps:$4 sm:$0xff]   ;;  %v6538_v52 = vld [vmem:[#allocation8 + $0xa4] ss:$16 sps:$4 sm:$0xff]  }
 0x1a8   :  { %2936 = vmatprep.subr.bf16.mxu0 %v6520_v40  ;;  %3100 = vmatprep.subr.bf16.mxu1 %v6522_v41  ;;  %v6540_v53 = vld [vmem:[#allocation8 + $0xac] ss:$16 sps:$4 sm:$0xff]   ;;  %v6542_v54 = vld [vmem:[#allocation8 + $0xa0] ss:$16 sps:$4 sm:$0xff]   ;;  %v6543_v55 = vld [vmem:[#allocation8 + $0xa8] ss:$16 sps:$4 sm:$0xff]  }
 0x1a9   :  { %v6544_v56 = vld [vmem:[#allocation8 + $0xc4] ss:$16 sps:$4 sm:$0xff]   ;;  %v6546_v57 = vld [vmem:[#allocation8 + $0xcc] ss:$16 sps:$4 sm:$0xff]   ;;  %v6548_v58 = vld [vmem:[#allocation8 + $0xc0] ss:$16 sps:$4 sm:$0xff]  }
 0x1aa   :  { %v6549_v59 = vld [vmem:[#allocation8 + $0xc8] ss:$16 sps:$4 sm:$0xff]   ;;  %v6550_v60 = vld [vmem:[#allocation8 + $0xe4] ss:$16 sps:$4 sm:$0xff]   ;;  %v6552_v61 = vld [vmem:[#allocation8 + $0xec] ss:$16 sps:$4 sm:$0xff]  }
 0x1ab   :  { %2937 = vmatpush1.bf16.msra.mxu0 %v6524_v42  ;;  %3101 = vmatpush1.bf16.msra.mxu1 %v6525_v43  ;;  %v6554_v62 = vld [vmem:[#allocation8 + $0xe0] ss:$16 sps:$4 sm:$0xff]   ;;  %v6555_v63 = vld [vmem:[#allocation8 + $0xe8] ss:$16 sps:$4 sm:$0xff]   ;;  %v6556_v0 = vld [vmem:[#allocation8 + $0x104] ss:$16 sps:$4 sm:$0xff]  }
 0x1ac   :  { %2938 = vmatprep.subr.bf16.mxu0 %v6526_v44  ;;  %3102 = vmatprep.subr.bf16.mxu1 %v6528_v45  ;;  %v6558_v1 = vld [vmem:[#allocation8 + $0x10c] ss:$16 sps:$4 sm:$0xff]   ;;  %v6560_v2 = vld [vmem:[#allocation8 + $0x100] ss:$16 sps:$4 sm:$0xff]   ;;  %v6561_v3 = vld [vmem:[#allocation8 + $0x108] ss:$16 sps:$4 sm:$0xff]  }
 0x1ad   :  { %v6562_v4 = vld [vmem:[#allocation8 + $0x124] ss:$16 sps:$4 sm:$0xff]   ;;  %v6564_v5 = vld [vmem:[#allocation8 + $0x12c] ss:$16 sps:$4 sm:$0xff]   ;;  %v6566_v6 = vld [vmem:[#allocation8 + $0x120] ss:$16 sps:$4 sm:$0xff]  }
 0x1ae   :  { %s8097_s21 = sld [smem:[#allocation43_spill]]  ;;  %v6567_v7 = vld [vmem:[#allocation8 + $0x128] ss:$16 sps:$4 sm:$0xff]   ;;  %v6568_v8 = vld [vmem:[#allocation8 + $0x144] ss:$16 sps:$4 sm:$0xff]   ;;  %s8098_s18 = sld [smem:[#allocation45_spill]] }
 0x1af   :  { %2939 = vmatpush1.bf16.msra.mxu0 %v6530_v46  ;;  %3103 = vmatpush1.bf16.msra.mxu1 %v6531_v47  ;;  %v6570_v9 = vld [vmem:[#allocation8 + $0x14c] ss:$16 sps:$4 sm:$0xff]   ;;  %v6572_v10 = vld [vmem:[#allocation8 + $0x140] ss:$16 sps:$4 sm:$0xff]   ;;  %v6573_v11 = vld [vmem:[#allocation8 + $0x148] ss:$16 sps:$4 sm:$0xff]  }
 0x1b0   :  { %2940 = vmatprep.subr.bf16.mxu0 %v6532_v48  ;;  %3104 = vmatprep.subr.bf16.mxu1 %v6534_v49  ;;  %v6574_v12 = vld [vmem:[#allocation8 + $0x164] ss:$16 sps:$4 sm:$0xff]   ;;  %v6576_v13 = vld [vmem:[#allocation8 + $0x16c] ss:$16 sps:$4 sm:$0xff]   ;;  %v6578_v15 = vld [vmem:[#allocation8 + $0x160] ss:$16 sps:$4 sm:$0xff]  }
 0x1b1   :  { %v6579_v17 = vld [vmem:[#allocation8 + $0x168] ss:$16 sps:$4 sm:$0xff]   ;;  %v6580_v18 = vld [vmem:[#allocation8 + $0x184] ss:$16 sps:$4 sm:$0xff]   ;;  %v6582_v19 = vld [vmem:[#allocation8 + $0x18c] ss:$16 sps:$4 sm:$0xff]  }
 0x1b2   :  { %v6584_v20 = vld [vmem:[#allocation8 + $0x180] ss:$16 sps:$4 sm:$0xff]   ;;  %v6585_v21 = vld [vmem:[#allocation8 + $0x188] ss:$16 sps:$4 sm:$0xff]   ;;  %v6586_v22 = vld [vmem:[#allocation8 + $0x1a4] ss:$16 sps:$4 sm:$0xff]  }
 0x1b3   :  { %2941 = vmatpush1.bf16.msra.mxu0 %v6536_v50  ;;  %3105 = vmatpush1.bf16.msra.mxu1 %v6537_v51  ;;  %v6588_v23 = vld [vmem:[#allocation8 + $0x1ac] ss:$16 sps:$4 sm:$0xff]   ;;  %v6590_v24 = vld [vmem:[#allocation8 + $0x1a0] ss:$16 sps:$4 sm:$0xff]   ;;  %v6591_v25 = vld [vmem:[#allocation8 + $0x1a8] ss:$16 sps:$4 sm:$0xff]  }
 0x1b4   :  { %2942 = vmatprep.subr.bf16.mxu0 %v6538_v52  ;;  %3106 = vmatprep.subr.bf16.mxu1 %v6540_v53  ;;  %v1359_v14 = vld [vmem:[%s8097_s21 + $0x8] sm:$0xff]  ;;  %v6592_v26 = vld [vmem:[#allocation8 + $0x1c4] ss:$16 sps:$4 sm:$0xff]   ;;  %v6596_v28 = vld [vmem:[#allocation8 + $0x1c0] ss:$16 sps:$4 sm:$0xff]  }
 0x1b5   :  { %v1367_v16 = vpack.c.bf16 %v1359_v14, %v1359_v14  ;;  %v6594_v27 = vld [vmem:[#allocation8 + $0x1cc] ss:$16 sps:$4 sm:$0xff]   ;;  %v6597_v29 = vld [vmem:[#allocation8 + $0x1c8] ss:$16 sps:$4 sm:$0xff]   ;;  %v6598_v30 = vld [vmem:[#allocation8 + $0x1e4] ss:$16 sps:$4 sm:$0xff]  }
 0x1b6   :  { %v6600_v31 = vld [vmem:[#allocation8 + $0x1ec] ss:$16 sps:$4 sm:$0xff]   ;;  %v6602_v32 = vld [vmem:[#allocation8 + $0x1e0] ss:$16 sps:$4 sm:$0xff]   ;;  %v6603_v33 = vld [vmem:[#allocation8 + $0x1e8] ss:$16 sps:$4 sm:$0xff]  }
 0x1b7   :  { %2943 = vmatpush1.bf16.msra.mxu0 %v6542_v54  ;;  %3107 = vmatpush1.bf16.msra.mxu1 %v6543_v55  ;;  %v1358_v34 = vld [vmem:[%s8097_s21] sm:$0xff]  ;;  %v6609_v36 = vld [vmem:[#allocation8 + $0x20c] ss:$16 sps:$4 sm:$0xff]   ;;  %v6607_v39 = vld [vmem:[#allocation8 + $0x208] ss:$16 sps:$4 sm:$0xff]  }
 0x1b8   :  { %2944 = vmatprep.subr.bf16.mxu0 %v6544_v56  ;;  %3108 = vmatprep.subr.bf16.mxu1 %v6546_v57  ;;  %v6606_v35 = vld [vmem:[#allocation8 + $0x204] ss:$16 sps:$4 sm:$0xff]   ;;  %v1366_v37 = vpack.c.bf16 %v1358_v34, %v1358_v34  ;;  %v6604_v38 = vld [vmem:[#allocation8 + $0x200] ss:$16 sps:$4 sm:$0xff]   ;;  %v6615_v41 = vld [vmem:[#allocation8 + $0x22c] ss:$16 sps:$4 sm:$0xff]  }
 0x1b9   :  { %2964 = vmatprep.mubr.bf16.mxu0 %v1367_v16  ;;  %3128 = vmatprep.mubr.bf16.mxu1 %v1367_v16  ;;  %v6612_v40 = vld [vmem:[#allocation8 + $0x224] ss:$16 sps:$4 sm:$0xff]   ;;  %v6610_v42 = vld [vmem:[#allocation8 + $0x220] ss:$16 sps:$4 sm:$0xff]   ;;  %v6613_v43 = vld [vmem:[#allocation8 + $0x228] ss:$16 sps:$4 sm:$0xff]  }
 0x1ba   :  { %v6618_v44 = vld [vmem:[#allocation8 + $0x244] ss:$16 sps:$4 sm:$0xff]   ;;  %v6621_v45 = vld [vmem:[#allocation8 + $0x24c] ss:$16 sps:$4 sm:$0xff]   ;;  %v6616_v46 = vld [vmem:[#allocation8 + $0x240] ss:$16 sps:$4 sm:$0xff]  }
 0x1bb   :  { %2945 = vmatpush1.bf16.msra.mxu0 %v6548_v58  ;;  %3109 = vmatpush1.bf16.msra.mxu1 %v6549_v59  ;;  %v6619_v47 = vld [vmem:[#allocation8 + $0x248] ss:$16 sps:$4 sm:$0xff]   ;;  %v6624_v48 = vld [vmem:[#allocation8 + $0x264] ss:$16 sps:$4 sm:$0xff]   ;;  %v6627_v49 = vld [vmem:[#allocation8 + $0x26c] ss:$16 sps:$4 sm:$0xff]  }
 0x1bc   :  { %2946 = vmatprep.subr.bf16.mxu0 %v6550_v60  ;;  %3110 = vmatprep.subr.bf16.mxu1 %v6552_v61  ;;  %v6622_v50 = vld [vmem:[#allocation8 + $0x260] ss:$16 sps:$4 sm:$0xff]   ;;  %v6625_v51 = vld [vmem:[#allocation8 + $0x268] ss:$16 sps:$4 sm:$0xff]   ;;  %v6630_v52 = vld [vmem:[#allocation8 + $0x284] ss:$16 sps:$4 sm:$0xff]  }
 0x1bd   :  { %v6633_v53 = vld [vmem:[#allocation8 + $0x28c] ss:$16 sps:$4 sm:$0xff]   ;;  %v6628_v54 = vld [vmem:[#allocation8 + $0x280] ss:$16 sps:$4 sm:$0xff]   ;;  %v6631_v55 = vld [vmem:[#allocation8 + $0x288] ss:$16 sps:$4 sm:$0xff]  }
 0x1be   :  { %v6636_v56 = vld [vmem:[#allocation8 + $0x2a4] ss:$16 sps:$4 sm:$0xff]   ;;  %v6639_v57 = vld [vmem:[#allocation8 + $0x2ac] ss:$16 sps:$4 sm:$0xff]   ;;  %v6634_v58 = vld [vmem:[#allocation8 + $0x2a0] ss:$16 sps:$4 sm:$0xff]  }
 0x1bf   :  { %2947 = vmatpush1.bf16.msra.mxu0 %v6554_v62  ;;  %3111 = vmatpush1.bf16.msra.mxu1 %v6555_v63  ;;  %v6637_v59 = vld [vmem:[#allocation8 + $0x2a8] ss:$16 sps:$4 sm:$0xff]   ;;  %v6642_v60 = vld [vmem:[#allocation8 + $0x2c4] ss:$16 sps:$4 sm:$0xff]   ;;  %v6645_v61 = vld [vmem:[#allocation8 + $0x2cc] ss:$16 sps:$4 sm:$0xff]  }
 0x1c0   :  { %2948 = vmatprep.subr.bf16.mxu0 %v6556_v0  ;;  %3112 = vmatprep.subr.bf16.mxu1 %v6558_v1  ;;  %v1361_v62 = vld [vmem:[%s8097_s21 + $0x18] sm:$0xff]  ;;  %v6640_v63 = vld [vmem:[#allocation8 + $0x2c0] ss:$16 sps:$4 sm:$0xff]   ;;  %v6666_v14 = vld [vmem:[#allocation8 + $0x344] ss:$16 sps:$4 sm:$0xff]  }
 0x1c1   :  { %v1369_v0 = vpack.c.bf16 %v1361_v62, %v1361_v62  ;;  %v6643_v1 = vld [vmem:[#allocation8 + $0x2c8] ss:$16 sps:$4 sm:$0xff]   ;;  %v6664_v16 = vld [vmem:[#allocation8 + $0x340] ss:$16 sps:$4 sm:$0xff]   ;;  %v6696_v34 = vld [vmem:[#allocation8 + $0x3e4] ss:$16 sps:$4 sm:$0xff]  }
 0x1c2   :  { %v6732_v62 = vld [vmem:[#allocation8 + $0x4a4] ss:$16 sps:$4 sm:$0xff]  }
 0x1c3   :  { %2949 = vmatpush1.bf16.msra.mxu0 %v6560_v2  ;;  %3113 = vmatpush1.bf16.msra.mxu1 %v6561_v3  ;;  %v6648_v2 = vld [vmem:[#allocation8 + $0x2e4] ss:$16 sps:$4 sm:$0xff]   ;;  %v6651_v3 = vld [vmem:[#allocation8 + $0x2ec] ss:$16 sps:$4 sm:$0xff]  }
 0x1c4   :  { %2950 = vmatprep.subr.bf16.mxu0 %v6562_v4  ;;  %3114 = vmatprep.subr.bf16.mxu1 %v6564_v5  ;;  %v6646_v4 = vld [vmem:[#allocation8 + $0x2e0] ss:$16 sps:$4 sm:$0xff]   ;;  %v6649_v5 = vld [vmem:[#allocation8 + $0x2e8] ss:$16 sps:$4 sm:$0xff]  }
 0x1c7   :  { %2951 = vmatpush1.bf16.msra.mxu0 %v6566_v6  ;;  %3115 = vmatpush1.bf16.msra.mxu1 %v6567_v7  ;;  %v6654_v6 = vld [vmem:[#allocation8 + $0x304] ss:$16 sps:$4 sm:$0xff]   ;;  %v6657_v7 = vld [vmem:[#allocation8 + $0x30c] ss:$16 sps:$4 sm:$0xff]  }
 0x1c8   :  { %2952 = vmatprep.subr.bf16.mxu0 %v6568_v8  ;;  %3116 = vmatprep.subr.bf16.mxu1 %v6570_v9  ;;  %v6652_v8 = vld [vmem:[#allocation8 + $0x300] ss:$16 sps:$4 sm:$0xff]   ;;  %v6655_v9 = vld [vmem:[#allocation8 + $0x308] ss:$16 sps:$4 sm:$0xff]  }
 0x1cb   :  { %2953 = vmatpush1.bf16.msra.mxu0 %v6572_v10  ;;  %3117 = vmatpush1.bf16.msra.mxu1 %v6573_v11  ;;  %v6660_v10 = vld [vmem:[#allocation8 + $0x324] ss:$16 sps:$4 sm:$0xff]   ;;  %v6663_v11 = vld [vmem:[#allocation8 + $0x32c] ss:$16 sps:$4 sm:$0xff]  }
 0x1cc   :  { %2954 = vmatprep.subr.bf16.mxu0 %v6574_v12  ;;  %3118 = vmatprep.subr.bf16.mxu1 %v6576_v13  ;;  %v6658_v12 = vld [vmem:[#allocation8 + $0x320] ss:$16 sps:$4 sm:$0xff]   ;;  %v6661_v13 = vld [vmem:[#allocation8 + $0x328] ss:$16 sps:$4 sm:$0xff]  }
 0x1cf   :  { %2955 = vmatpush1.bf16.msra.mxu0 %v6578_v15  ;;  %3119 = vmatpush1.bf16.msra.mxu1 %v6579_v17  ;;  %v6669_v15 = vld [vmem:[#allocation8 + $0x34c] ss:$16 sps:$4 sm:$0xff]   ;;  %v6667_v17 = vld [vmem:[#allocation8 + $0x348] ss:$16 sps:$4 sm:$0xff]  }
 0x1d0   :  { %2956 = vmatprep.subr.bf16.mxu0 %v6580_v18  ;;  %3120 = vmatprep.subr.bf16.mxu1 %v6582_v19  ;;  %v6672_v18 = vld [vmem:[#allocation8 + $0x364] ss:$16 sps:$4 sm:$0xff]   ;;  %v6675_v19 = vld [vmem:[#allocation8 + $0x36c] ss:$16 sps:$4 sm:$0xff]  }
 0x1d3   :  { %2957 = vmatpush1.bf16.msra.mxu0 %v6584_v20  ;;  %3121 = vmatpush1.bf16.msra.mxu1 %v6585_v21  ;;  %v6670_v20 = vld [vmem:[#allocation8 + $0x360] ss:$16 sps:$4 sm:$0xff]   ;;  %v6673_v21 = vld [vmem:[#allocation8 + $0x368] ss:$16 sps:$4 sm:$0xff]  }
 0x1d4   :  { %2958 = vmatprep.subr.bf16.mxu0 %v6586_v22  ;;  %3122 = vmatprep.subr.bf16.mxu1 %v6588_v23  ;;  %v6678_v22 = vld [vmem:[#allocation8 + $0x384] ss:$16 sps:$4 sm:$0xff]   ;;  %v6681_v23 = vld [vmem:[#allocation8 + $0x38c] ss:$16 sps:$4 sm:$0xff]  }
 0x1d7   :  { %2959 = vmatpush1.bf16.msra.mxu0 %v6590_v24  ;;  %3123 = vmatpush1.bf16.msra.mxu1 %v6591_v25  ;;  %v6676_v24 = vld [vmem:[#allocation8 + $0x380] ss:$16 sps:$4 sm:$0xff]   ;;  %v6679_v25 = vld [vmem:[#allocation8 + $0x388] ss:$16 sps:$4 sm:$0xff]  }
 0x1d8   :  { %2960 = vmatprep.subr.bf16.mxu0 %v6592_v26  ;;  %3124 = vmatprep.subr.bf16.mxu1 %v6594_v27  ;;  %v6684_v26 = vld [vmem:[#allocation8 + $0x3a4] ss:$16 sps:$4 sm:$0xff]   ;;  %v6687_v27 = vld [vmem:[#allocation8 + $0x3ac] ss:$16 sps:$4 sm:$0xff]  }
 0x1db   :  { %2961 = vmatpush1.bf16.msra.mxu0 %v6596_v28  ;;  %3125 = vmatpush1.bf16.msra.mxu1 %v6597_v29  ;;  %v6682_v28 = vld [vmem:[#allocation8 + $0x3a0] ss:$16 sps:$4 sm:$0xff]   ;;  %v6685_v29 = vld [vmem:[#allocation8 + $0x3a8] ss:$16 sps:$4 sm:$0xff]  }
 0x1dc   :  { %2962 = vmatprep.subr.bf16.mxu0 %v6598_v30  ;;  %3126 = vmatprep.subr.bf16.mxu1 %v6600_v31  ;;  %v6690_v30 = vld [vmem:[#allocation8 + $0x3c4] ss:$16 sps:$4 sm:$0xff]   ;;  %v6693_v31 = vld [vmem:[#allocation8 + $0x3cc] ss:$16 sps:$4 sm:$0xff]  }
 0x1df   :  { %2963 = vmatpush1.bf16.msra.mxu0 %v6602_v32  ;;  %3127 = vmatpush1.bf16.msra.mxu1 %v6603_v33  ;;  %v6688_v32 = vld [vmem:[#allocation8 + $0x3c0] ss:$16 sps:$4 sm:$0xff]   ;;  %v6691_v33 = vld [vmem:[#allocation8 + $0x3c8] ss:$16 sps:$4 sm:$0xff]  }
 0x1e0   :  { %2973 = vmatprep.subr.bf16.mxu0 %v6606_v35  ;;  %3137 = vmatprep.subr.bf16.mxu1 %v6609_v36  ;;  %v6699_v35 = vld [vmem:[#allocation8 + $0x3ec] ss:$16 sps:$4 sm:$0xff]   ;;  %v6694_v36 = vld [vmem:[#allocation8 + $0x3e0] ss:$16 sps:$4 sm:$0xff]  }
 0x1e2   :  { %2965 = vmatmul.mubr.bf16.vlgmr.msra.gmra.mrb[0].mxu0 %v1366_v37  ;;  %3129 = vmatmul.mubr.bf16.vlgmr.msra.gmra.mrb[0].mxu1 %v1366_v37  ;;  %v6697_v37 = vld [vmem:[#allocation8 + $0x3e8] ss:$16 sps:$4 sm:$0xff]  }
 0x1e3   :  { %2974 = vmatpush1.bf16.msra.mxu0 %v6604_v38  ;;  %3138 = vmatpush1.bf16.msra.mxu1 %v6607_v39  ;;  %v6702_v38 = vld [vmem:[#allocation8 + $0x404] ss:$16 sps:$4 sm:$0xff]  }
 0x1e4   :  { %2975 = vmatprep.subr.bf16.mxu0 %v6612_v40  ;;  %3139 = vmatprep.subr.bf16.mxu1 %v6615_v41  ;;  %v1360_v39 = vld [vmem:[%s8097_s21 + $0x10] sm:$0xff]  ;;  %v6705_v40 = vld [vmem:[#allocation8 + $0x40c] ss:$16 sps:$4 sm:$0xff]  }
 0x1e5   :  { %3005 = vmatprep.mubr.bf16.mxu0 %v1369_v0  ;;  %3169 = vmatprep.mubr.bf16.mxu1 %v1369_v0  ;;  %v6700_v41 = vld [vmem:[#allocation8 + $0x400] ss:$16 sps:$4 sm:$0xff]  }
 0x1e6   :  { %v6730_v0 = vld [vmem:[#allocation8 + $0x4a0] ss:$16 sps:$4 sm:$0xff]  }
 0x1e7   :  { %2976 = vmatpush1.bf16.msra.mxu0 %v6610_v42  ;;  %3140 = vmatpush1.bf16.msra.mxu1 %v6613_v43  ;;  %v6703_v42 = vld [vmem:[#allocation8 + $0x408] ss:$16 sps:$4 sm:$0xff]   ;;  %v1368_v43 = vpack.c.bf16 %v1360_v39, %v1360_v39  ;;  %v6795_v39 = vld [vmem:[#allocation8 + $0x5ec] ss:$16 sps:$4 sm:$0xff]  }
 0x1e8   :  { %2977 = vmatprep.subr.bf16.mxu0 %v6618_v44  ;;  %3141 = vmatprep.subr.bf16.mxu1 %v6621_v45  ;;  %v6708_v44 = vld [vmem:[#allocation8 + $0x424] ss:$16 sps:$4 sm:$0xff]   ;;  %v6711_v45 = vld [vmem:[#allocation8 + $0x42c] ss:$16 sps:$4 sm:$0xff]  }
 0x1eb   :  { %2978 = vmatpush1.bf16.msra.mxu0 %v6616_v46  ;;  %3142 = vmatpush1.bf16.msra.mxu1 %v6619_v47  ;;  %v1363_v46 = vld [vmem:[%s8097_s21 + $0x28] sm:$0xff] }
 0x1ec   :  { %2979 = vmatprep.subr.bf16.mxu0 %v6624_v48  ;;  %3143 = vmatprep.subr.bf16.mxu1 %v6627_v49  ;;  %v1371_v47 = vpack.c.bf16 %v1363_v46, %v1363_v46  ;;  %v6706_v48 = vld [vmem:[#allocation8 + $0x420] ss:$16 sps:$4 sm:$0xff]   ;;  %v6709_v49 = vld [vmem:[#allocation8 + $0x428] ss:$16 sps:$4 sm:$0xff]  }
 0x1ed   :  { %v1365_v46 = vld [vmem:[%s8097_s21 + $0x38] sm:$0xff] }
 0x1ef   :  { %2980 = vmatpush1.bf16.msra.mxu0 %v6622_v50  ;;  %3144 = vmatpush1.bf16.msra.mxu1 %v6625_v51  ;;  %v6714_v50 = vld [vmem:[#allocation8 + $0x444] ss:$16 sps:$4 sm:$0xff]   ;;  %v6717_v51 = vld [vmem:[#allocation8 + $0x44c] ss:$16 sps:$4 sm:$0xff]  }
 0x1f0   :  { %2981 = vmatprep.subr.bf16.mxu0 %v6630_v52  ;;  %3145 = vmatprep.subr.bf16.mxu1 %v6633_v53  ;;  %v6712_v52 = vld [vmem:[#allocation8 + $0x440] ss:$16 sps:$4 sm:$0xff]   ;;  %v6715_v53 = vld [vmem:[#allocation8 + $0x448] ss:$16 sps:$4 sm:$0xff]  }
 0x1f3   :  { %2982 = vmatpush1.bf16.msra.mxu0 %v6628_v54  ;;  %3146 = vmatpush1.bf16.msra.mxu1 %v6631_v55  ;;  %v6720_v54 = vld [vmem:[#allocation8 + $0x464] ss:$16 sps:$4 sm:$0xff]   ;;  %v6723_v55 = vld [vmem:[#allocation8 + $0x46c] ss:$16 sps:$4 sm:$0xff]  }
 0x1f4   :  { %2983 = vmatprep.subr.bf16.mxu0 %v6636_v56  ;;  %3147 = vmatprep.subr.bf16.mxu1 %v6639_v57  ;;  %v6718_v56 = vld [vmem:[#allocation8 + $0x460] ss:$16 sps:$4 sm:$0xff]   ;;  %v6721_v57 = vld [vmem:[#allocation8 + $0x468] ss:$16 sps:$4 sm:$0xff]  }
 0x1f7   :  { %2984 = vmatpush1.bf16.msra.mxu0 %v6634_v58  ;;  %3148 = vmatpush1.bf16.msra.mxu1 %v6637_v59  ;;  %v6726_v58 = vld [vmem:[#allocation8 + $0x484] ss:$16 sps:$4 sm:$0xff]   ;;  %v6729_v59 = vld [vmem:[#allocation8 + $0x48c] ss:$16 sps:$4 sm:$0xff]  }
 0x1f8   :  { %2985 = vmatprep.subr.bf16.mxu0 %v6642_v60  ;;  %3149 = vmatprep.subr.bf16.mxu1 %v6645_v61  ;;  %v6724_v60 = vld [vmem:[#allocation8 + $0x480] ss:$16 sps:$4 sm:$0xff]   ;;  %v6727_v61 = vld [vmem:[#allocation8 + $0x488] ss:$16 sps:$4 sm:$0xff]  }
 0x1fb   :  { %2986 = vmatpush1.bf16.msra.mxu0 %v6640_v63  ;;  %3150 = vmatpush1.bf16.msra.mxu1 %v6643_v1  ;;  %v6735_v63 = vld [vmem:[#allocation8 + $0x4ac] ss:$16 sps:$4 sm:$0xff]   ;;  %v6733_v1 = vld [vmem:[#allocation8 + $0x4a8] ss:$16 sps:$4 sm:$0xff]  }
 0x1fc   :  { %2987 = vmatprep.subr.bf16.mxu0 %v6648_v2  ;;  %3151 = vmatprep.subr.bf16.mxu1 %v6651_v3  ;;  %v6738_v2 = vld [vmem:[#allocation8 + $0x4c4] ss:$16 sps:$4 sm:$0xff]   ;;  %v6741_v3 = vld [vmem:[#allocation8 + $0x4cc] ss:$16 sps:$4 sm:$0xff]  }
 0x1ff   :  { %2988 = vmatpush1.bf16.msra.mxu0 %v6646_v4  ;;  %3152 = vmatpush1.bf16.msra.mxu1 %v6649_v5  ;;  %v6736_v4 = vld [vmem:[#allocation8 + $0x4c0] ss:$16 sps:$4 sm:$0xff]   ;;  %v6739_v5 = vld [vmem:[#allocation8 + $0x4c8] ss:$16 sps:$4 sm:$0xff]  }
 0x200   :  { %2989 = vmatprep.subr.bf16.mxu0 %v6654_v6  ;;  %3153 = vmatprep.subr.bf16.mxu1 %v6657_v7  ;;  %v6744_v6 = vld [vmem:[#allocation8 + $0x4e4] ss:$16 sps:$4 sm:$0xff]   ;;  %v6747_v7 = vld [vmem:[#allocation8 + $0x4ec] ss:$16 sps:$4 sm:$0xff]  }
 0x203   :  { %2990 = vmatpush1.bf16.msra.mxu0 %v6652_v8  ;;  %3154 = vmatpush1.bf16.msra.mxu1 %v6655_v9  ;;  %v6742_v8 = vld [vmem:[#allocation8 + $0x4e0] ss:$16 sps:$4 sm:$0xff]   ;;  %v6745_v9 = vld [vmem:[#allocation8 + $0x4e8] ss:$16 sps:$4 sm:$0xff]  }
 0x204   :  { %2991 = vmatprep.subr.bf16.mxu0 %v6660_v10  ;;  %3155 = vmatprep.subr.bf16.mxu1 %v6663_v11  ;;  %v6750_v10 = vld [vmem:[#allocation8 + $0x504] ss:$16 sps:$4 sm:$0xff]   ;;  %v6753_v11 = vld [vmem:[#allocation8 + $0x50c] ss:$16 sps:$4 sm:$0xff]  }
 0x207   :  { %2992 = vmatpush1.bf16.msra.mxu0 %v6658_v12  ;;  %3156 = vmatpush1.bf16.msra.mxu1 %v6661_v13  ;;  %v6748_v12 = vld [vmem:[#allocation8 + $0x500] ss:$16 sps:$4 sm:$0xff]   ;;  %v6751_v13 = vld [vmem:[#allocation8 + $0x508] ss:$16 sps:$4 sm:$0xff]  }
 0x208   :  { %2993 = vmatprep.subr.bf16.mxu0 %v6666_v14  ;;  %3157 = vmatprep.subr.bf16.mxu1 %v6669_v15  ;;  %v6756_v14 = vld [vmem:[#allocation8 + $0x524] ss:$16 sps:$4 sm:$0xff]   ;;  %v6759_v15 = vld [vmem:[#allocation8 + $0x52c] ss:$16 sps:$4 sm:$0xff]  }
 0x20b   :  { %2994 = vmatpush1.bf16.msra.mxu0 %v6664_v16  ;;  %3158 = vmatpush1.bf16.msra.mxu1 %v6667_v17  ;;  %v6754_v16 = vld [vmem:[#allocation8 + $0x520] ss:$16 sps:$4 sm:$0xff]   ;;  %v6757_v17 = vld [vmem:[#allocation8 + $0x528] ss:$16 sps:$4 sm:$0xff]  }
 0x20c   :  { %2995 = vmatprep.subr.bf16.mxu0 %v6672_v18  ;;  %3159 = vmatprep.subr.bf16.mxu1 %v6675_v19  ;;  %v6762_v18 = vld [vmem:[#allocation8 + $0x544] ss:$16 sps:$4 sm:$0xff]   ;;  %v6765_v19 = vld [vmem:[#allocation8 + $0x54c] ss:$16 sps:$4 sm:$0xff]  }
 0x20f   :  { %2996 = vmatpush1.bf16.msra.mxu0 %v6670_v20  ;;  %3160 = vmatpush1.bf16.msra.mxu1 %v6673_v21  ;;  %v6760_v20 = vld [vmem:[#allocation8 + $0x540] ss:$16 sps:$4 sm:$0xff]   ;;  %v6763_v21 = vld [vmem:[#allocation8 + $0x548] ss:$16 sps:$4 sm:$0xff]  }
 0x210   :  { %2997 = vmatprep.subr.bf16.mxu0 %v6678_v22  ;;  %3161 = vmatprep.subr.bf16.mxu1 %v6681_v23  ;;  %v6768_v22 = vld [vmem:[#allocation8 + $0x564] ss:$16 sps:$4 sm:$0xff]   ;;  %v6771_v23 = vld [vmem:[#allocation8 + $0x56c] ss:$16 sps:$4 sm:$0xff]  }
 0x213   :  { %2998 = vmatpush1.bf16.msra.mxu0 %v6676_v24  ;;  %3162 = vmatpush1.bf16.msra.mxu1 %v6679_v25  ;;  %v6766_v24 = vld [vmem:[#allocation8 + $0x560] ss:$16 sps:$4 sm:$0xff]   ;;  %v6769_v25 = vld [vmem:[#allocation8 + $0x568] ss:$16 sps:$4 sm:$0xff]  }
 0x214   :  { %2999 = vmatprep.subr.bf16.mxu0 %v6684_v26  ;;  %3163 = vmatprep.subr.bf16.mxu1 %v6687_v27  ;;  %v6774_v26 = vld [vmem:[#allocation8 + $0x584] ss:$16 sps:$4 sm:$0xff]   ;;  %v6777_v27 = vld [vmem:[#allocation8 + $0x58c] ss:$16 sps:$4 sm:$0xff]  }
 0x217   :  { %3000 = vmatpush1.bf16.msra.mxu0 %v6682_v28  ;;  %3164 = vmatpush1.bf16.msra.mxu1 %v6685_v29  ;;  %v6772_v28 = vld [vmem:[#allocation8 + $0x580] ss:$16 sps:$4 sm:$0xff]   ;;  %v6775_v29 = vld [vmem:[#allocation8 + $0x588] ss:$16 sps:$4 sm:$0xff]  }
 0x218   :  { %3001 = vmatprep.subr.bf16.mxu0 %v6690_v30  ;;  %3165 = vmatprep.subr.bf16.mxu1 %v6693_v31  ;;  %v6780_v30 = vld [vmem:[#allocation8 + $0x5a4] ss:$16 sps:$4 sm:$0xff]   ;;  %v6783_v31 = vld [vmem:[#allocation8 + $0x5ac] ss:$16 sps:$4 sm:$0xff]  }
 0x21b   :  { %3002 = vmatpush1.bf16.msra.mxu0 %v6688_v32  ;;  %3166 = vmatpush1.bf16.msra.mxu1 %v6691_v33  ;;  %v6778_v32 = vld [vmem:[#allocation8 + $0x5a0] ss:$16 sps:$4 sm:$0xff]   ;;  %v6781_v33 = vld [vmem:[#allocation8 + $0x5a8] ss:$16 sps:$4 sm:$0xff]  }
 0x21c   :  { %3003 = vmatprep.subr.bf16.mxu0 %v6696_v34  ;;  %3167 = vmatprep.subr.bf16.mxu1 %v6699_v35  ;;  %v6786_v34 = vld [vmem:[#allocation8 + $0x5c4] ss:$16 sps:$4 sm:$0xff]   ;;  %v6789_v35 = vld [vmem:[#allocation8 + $0x5cc] ss:$16 sps:$4 sm:$0xff]  }
 0x21f   :  { %3004 = vmatpush1.bf16.msra.mxu0 %v6694_v36  ;;  %3168 = vmatpush1.bf16.msra.mxu1 %v6697_v37  ;;  %v6784_v36 = vld [vmem:[#allocation8 + $0x5c0] ss:$16 sps:$4 sm:$0xff]   ;;  %v6787_v37 = vld [vmem:[#allocation8 + $0x5c8] ss:$16 sps:$4 sm:$0xff]  }
 0x220   :  { %3014 = vmatprep.subr.bf16.mxu0 %v6702_v38  ;;  %3178 = vmatprep.subr.bf16.mxu1 %v6705_v40  ;;  %v6792_v38 = vld [vmem:[#allocation8 + $0x5e4] ss:$16 sps:$4 sm:$0xff]   ;;  %v6790_v40 = vld [vmem:[#allocation8 + $0x5e0] ss:$16 sps:$4 sm:$0xff]  }
 0x222   :  { %3006 = vmatmul.mubr.bf16.vlgmr.msra.gmra.mrb[0].mxu0 %v1368_v43  ;;  %3170 = vmatmul.mubr.bf16.vlgmr.msra.gmra.mrb[0].mxu1 %v1368_v43  ;;  %v6798_v43 = vld [vmem:[#allocation8 + $0x604] ss:$16 sps:$4 sm:$0xff]  }
 0x223   :  { %3015 = vmatpush1.bf16.msra.mxu0 %v6700_v41  ;;  %3179 = vmatpush1.bf16.msra.mxu1 %v6703_v42  ;;  %v6793_v41 = vld [vmem:[#allocation8 + $0x5e8] ss:$16 sps:$4 sm:$0xff]   ;;  %v1362_v42 = vld [vmem:[%s8097_s21 + $0x20] sm:$0xff] }
 0x224   :  { %3016 = vmatprep.subr.bf16.mxu0 %v6708_v44  ;;  %3180 = vmatprep.subr.bf16.mxu1 %v6711_v45  ;;  %v6801_v44 = vld [vmem:[#allocation8 + $0x60c] ss:$16 sps:$4 sm:$0xff]   ;;  %v1370_v45 = vpack.c.bf16 %v1362_v42, %v1362_v42  ;;  %v6888_v42 = vld [vmem:[#allocation8 + $0x7e4] ss:$16 sps:$4 sm:$0xff]  }
 0x225   :  { %3046 = vmatprep.mubr.bf16.mxu0 %v1371_v47  ;;  %3210 = vmatprep.mubr.bf16.mxu1 %v1371_v47  ;;  %v6796_v47 = vld [vmem:[#allocation8 + $0x600] ss:$16 sps:$4 sm:$0xff]  }
 0x227   :  { %3017 = vmatpush1.bf16.msra.mxu0 %v6706_v48  ;;  %3181 = vmatpush1.bf16.msra.mxu1 %v6709_v49  ;;  %v6799_v48 = vld [vmem:[#allocation8 + $0x608] ss:$16 sps:$4 sm:$0xff]   ;;  %v6804_v49 = vld [vmem:[#allocation8 + $0x624] ss:$16 sps:$4 sm:$0xff]  }
 0x228   :  { %3018 = vmatprep.subr.bf16.mxu0 %v6714_v50  ;;  %3182 = vmatprep.subr.bf16.mxu1 %v6717_v51  ;;  %v6807_v50 = vld [vmem:[#allocation8 + $0x62c] ss:$16 sps:$4 sm:$0xff]   ;;  %v1373_v51 = vpack.c.bf16 %v1365_v46, %v1365_v46  ;;  %v1364_v46 = vld [vmem:[%s8097_s21 + $0x30] sm:$0xff] }
 0x22b   :  { %3019 = vmatpush1.bf16.msra.mxu0 %v6712_v52  ;;  %3183 = vmatpush1.bf16.msra.mxu1 %v6715_v53  ;;  %v6802_v52 = vld [vmem:[#allocation8 + $0x620] ss:$16 sps:$4 sm:$0xff]   ;;  %v6805_v53 = vld [vmem:[#allocation8 + $0x628] ss:$16 sps:$4 sm:$0xff]  }
 0x22c   :  { %3020 = vmatprep.subr.bf16.mxu0 %v6720_v54  ;;  %3184 = vmatprep.subr.bf16.mxu1 %v6723_v55  ;;  %v6810_v54 = vld [vmem:[#allocation8 + $0x644] ss:$16 sps:$4 sm:$0xff]   ;;  %v6813_v55 = vld [vmem:[#allocation8 + $0x64c] ss:$16 sps:$4 sm:$0xff]  }
 0x22f   :  { %3021 = vmatpush1.bf16.msra.mxu0 %v6718_v56  ;;  %3185 = vmatpush1.bf16.msra.mxu1 %v6721_v57  ;;  %v6808_v56 = vld [vmem:[#allocation8 + $0x640] ss:$16 sps:$4 sm:$0xff]   ;;  %v6811_v57 = vld [vmem:[#allocation8 + $0x648] ss:$16 sps:$4 sm:$0xff]  }
 0x230   :  { %3022 = vmatprep.subr.bf16.mxu0 %v6726_v58  ;;  %3186 = vmatprep.subr.bf16.mxu1 %v6729_v59  ;;  %v6816_v58 = vld [vmem:[#allocation8 + $0x664] ss:$16 sps:$4 sm:$0xff]   ;;  %v6819_v59 = vld [vmem:[#allocation8 + $0x66c] ss:$16 sps:$4 sm:$0xff]  }
 0x233   :  { %3023 = vmatpush1.bf16.msra.mxu0 %v6724_v60  ;;  %3187 = vmatpush1.bf16.msra.mxu1 %v6727_v61  ;;  %v6814_v60 = vld [vmem:[#allocation8 + $0x660] ss:$16 sps:$4 sm:$0xff]   ;;  %v6817_v61 = vld [vmem:[#allocation8 + $0x668] ss:$16 sps:$4 sm:$0xff]  }
 0x234   :  { %3024 = vmatprep.subr.bf16.mxu0 %v6732_v62  ;;  %3188 = vmatprep.subr.bf16.mxu1 %v6735_v63  ;;  %v6822_v62 = vld [vmem:[#allocation8 + $0x684] ss:$16 sps:$4 sm:$0xff]   ;;  %v6825_v63 = vld [vmem:[#allocation8 + $0x68c] ss:$16 sps:$4 sm:$0xff]  }
 0x237   :  { %3025 = vmatpush1.bf16.msra.mxu0 %v6730_v0  ;;  %3189 = vmatpush1.bf16.msra.mxu1 %v6733_v1  ;;  %v6820_v0 = vld [vmem:[#allocation8 + $0x680] ss:$16 sps:$4 sm:$0xff]   ;;  %v6823_v1 = vld [vmem:[#allocation8 + $0x688] ss:$16 sps:$4 sm:$0xff]  }
 0x238   :  { %3026 = vmatprep.subr.bf16.mxu0 %v6738_v2  ;;  %3190 = vmatprep.subr.bf16.mxu1 %v6741_v3  ;;  %v6828_v2 = vld [vmem:[#allocation8 + $0x6a4] ss:$16 sps:$4 sm:$0xff]   ;;  %v6831_v3 = vld [vmem:[#allocation8 + $0x6ac] ss:$16 sps:$4 sm:$0xff]  }
 0x23b   :  { %3027 = vmatpush1.bf16.msra.mxu0 %v6736_v4  ;;  %3191 = vmatpush1.bf16.msra.mxu1 %v6739_v5  ;;  %v6826_v4 = vld [vmem:[#allocation8 + $0x6a0] ss:$16 sps:$4 sm:$0xff]   ;;  %v6829_v5 = vld [vmem:[#allocation8 + $0x6a8] ss:$16 sps:$4 sm:$0xff]  }
 0x23c   :  { %3028 = vmatprep.subr.bf16.mxu0 %v6744_v6  ;;  %3192 = vmatprep.subr.bf16.mxu1 %v6747_v7  ;;  %v6834_v6 = vld [vmem:[#allocation8 + $0x6c4] ss:$16 sps:$4 sm:$0xff]   ;;  %v6837_v7 = vld [vmem:[#allocation8 + $0x6cc] ss:$16 sps:$4 sm:$0xff]  }
 0x23f   :  { %3029 = vmatpush1.bf16.msra.mxu0 %v6742_v8  ;;  %3193 = vmatpush1.bf16.msra.mxu1 %v6745_v9  ;;  %v6832_v8 = vld [vmem:[#allocation8 + $0x6c0] ss:$16 sps:$4 sm:$0xff]   ;;  %v6835_v9 = vld [vmem:[#allocation8 + $0x6c8] ss:$16 sps:$4 sm:$0xff]  }
 0x240   :  { %3030 = vmatprep.subr.bf16.mxu0 %v6750_v10  ;;  %3194 = vmatprep.subr.bf16.mxu1 %v6753_v11  ;;  %v6840_v10 = vld [vmem:[#allocation8 + $0x6e4] ss:$16 sps:$4 sm:$0xff]   ;;  %v6843_v11 = vld [vmem:[#allocation8 + $0x6ec] ss:$16 sps:$4 sm:$0xff]  }
 0x243   :  { %3031 = vmatpush1.bf16.msra.mxu0 %v6748_v12  ;;  %3195 = vmatpush1.bf16.msra.mxu1 %v6751_v13  ;;  %v6838_v12 = vld [vmem:[#allocation8 + $0x6e0] ss:$16 sps:$4 sm:$0xff]   ;;  %v6841_v13 = vld [vmem:[#allocation8 + $0x6e8] ss:$16 sps:$4 sm:$0xff]  }
 0x244   :  { %3032 = vmatprep.subr.bf16.mxu0 %v6756_v14  ;;  %3196 = vmatprep.subr.bf16.mxu1 %v6759_v15  ;;  %v6846_v14 = vld [vmem:[#allocation8 + $0x704] ss:$16 sps:$4 sm:$0xff]   ;;  %v6849_v15 = vld [vmem:[#allocation8 + $0x70c] ss:$16 sps:$4 sm:$0xff]  }
 0x247   :  { %3033 = vmatpush1.bf16.msra.mxu0 %v6754_v16  ;;  %3197 = vmatpush1.bf16.msra.mxu1 %v6757_v17  ;;  %v6844_v16 = vld [vmem:[#allocation8 + $0x700] ss:$16 sps:$4 sm:$0xff]   ;;  %v6847_v17 = vld [vmem:[#allocation8 + $0x708] ss:$16 sps:$4 sm:$0xff]  }
 0x248   :  { %3034 = vmatprep.subr.bf16.mxu0 %v6762_v18  ;;  %3198 = vmatprep.subr.bf16.mxu1 %v6765_v19  ;;  %v6852_v18 = vld [vmem:[#allocation8 + $0x724] ss:$16 sps:$4 sm:$0xff]   ;;  %v6855_v19 = vld [vmem:[#allocation8 + $0x72c] ss:$16 sps:$4 sm:$0xff]  }
 0x24b   :  { %3035 = vmatpush1.bf16.msra.mxu0 %v6760_v20  ;;  %3199 = vmatpush1.bf16.msra.mxu1 %v6763_v21  ;;  %v6850_v20 = vld [vmem:[#allocation8 + $0x720] ss:$16 sps:$4 sm:$0xff]   ;;  %v6853_v21 = vld [vmem:[#allocation8 + $0x728] ss:$16 sps:$4 sm:$0xff]  }
 0x24c   :  { %3036 = vmatprep.subr.bf16.mxu0 %v6768_v22  ;;  %3200 = vmatprep.subr.bf16.mxu1 %v6771_v23  ;;  %v6858_v22 = vld [vmem:[#allocation8 + $0x744] ss:$16 sps:$4 sm:$0xff]   ;;  %v6861_v23 = vld [vmem:[#allocation8 + $0x74c] ss:$16 sps:$4 sm:$0xff]  }
 0x24f   :  { %3037 = vmatpush1.bf16.msra.mxu0 %v6766_v24  ;;  %3201 = vmatpush1.bf16.msra.mxu1 %v6769_v25  ;;  %v6856_v24 = vld [vmem:[#allocation8 + $0x740] ss:$16 sps:$4 sm:$0xff]   ;;  %v6859_v25 = vld [vmem:[#allocation8 + $0x748] ss:$16 sps:$4 sm:$0xff]  }
 0x250   :  { %3038 = vmatprep.subr.bf16.mxu0 %v6774_v26  ;;  %3202 = vmatprep.subr.bf16.mxu1 %v6777_v27  ;;  %v6864_v26 = vld [vmem:[#allocation8 + $0x764] ss:$16 sps:$4 sm:$0xff]   ;;  %v6867_v27 = vld [vmem:[#allocation8 + $0x76c] ss:$16 sps:$4 sm:$0xff]  }
 0x253   :  { %3039 = vmatpush1.bf16.msra.mxu0 %v6772_v28  ;;  %3203 = vmatpush1.bf16.msra.mxu1 %v6775_v29  ;;  %v6862_v28 = vld [vmem:[#allocation8 + $0x760] ss:$16 sps:$4 sm:$0xff]   ;;  %v6865_v29 = vld [vmem:[#allocation8 + $0x768] ss:$16 sps:$4 sm:$0xff]  }
 0x254   :  { %3040 = vmatprep.subr.bf16.mxu0 %v6780_v30  ;;  %3204 = vmatprep.subr.bf16.mxu1 %v6783_v31  ;;  %v6870_v30 = vld [vmem:[#allocation8 + $0x784] ss:$16 sps:$4 sm:$0xff]   ;;  %v6873_v31 = vld [vmem:[#allocation8 + $0x78c] ss:$16 sps:$4 sm:$0xff]  }
 0x257   :  { %3041 = vmatpush1.bf16.msra.mxu0 %v6778_v32  ;;  %3205 = vmatpush1.bf16.msra.mxu1 %v6781_v33  ;;  %v6868_v32 = vld [vmem:[#allocation8 + $0x780] ss:$16 sps:$4 sm:$0xff]   ;;  %v6871_v33 = vld [vmem:[#allocation8 + $0x788] ss:$16 sps:$4 sm:$0xff]  }
 0x258   :  { %3042 = vmatprep.subr.bf16.mxu0 %v6786_v34  ;;  %3206 = vmatprep.subr.bf16.mxu1 %v6789_v35  ;;  %v6876_v34 = vld [vmem:[#allocation8 + $0x7a4] ss:$16 sps:$4 sm:$0xff]   ;;  %v6879_v35 = vld [vmem:[#allocation8 + $0x7ac] ss:$16 sps:$4 sm:$0xff]  }
 0x25b   :  { %3043 = vmatpush1.bf16.msra.mxu0 %v6784_v36  ;;  %3207 = vmatpush1.bf16.msra.mxu1 %v6787_v37  ;;  %v6874_v36 = vld [vmem:[#allocation8 + $0x7a0] ss:$16 sps:$4 sm:$0xff]   ;;  %v6877_v37 = vld [vmem:[#allocation8 + $0x7a8] ss:$16 sps:$4 sm:$0xff]  }
 0x25c   :  { %3044 = vmatprep.subr.bf16.mxu0 %v6792_v38  ;;  %3208 = vmatprep.subr.bf16.mxu1 %v6795_v39  ;;  %v6882_v38 = vld [vmem:[#allocation8 + $0x7c4] ss:$16 sps:$4 sm:$0xff]   ;;  %v6885_v39 = vld [vmem:[#allocation8 + $0x7cc] ss:$16 sps:$4 sm:$0xff]  }
 0x25f   :  { %3045 = vmatpush1.bf16.msra.mxu0 %v6790_v40  ;;  %3209 = vmatpush1.bf16.msra.mxu1 %v6793_v41  ;;  %v6880_v40 = vld [vmem:[#allocation8 + $0x7c0] ss:$16 sps:$4 sm:$0xff]   ;;  %v6883_v41 = vld [vmem:[#allocation8 + $0x7c8] ss:$16 sps:$4 sm:$0xff]  }
 0x260   :  { %3055 = vmatprep.subr.bf16.mxu0 %v6798_v43  ;;  %3219 = vmatprep.subr.bf16.mxu1 %v6801_v44  ;;  %v6891_v43 = vld [vmem:[#allocation8 + $0x7ec] ss:$16 sps:$4 sm:$0xff]   ;;  %v6886_v44 = vld [vmem:[#allocation8 + $0x7e0] ss:$16 sps:$4 sm:$0xff]  }
 0x262   :  { %3047 = vmatmul.mubr.bf16.vlgmr.msra.gmra.mrb[0].mxu0 %v1370_v45  ;;  %3211 = vmatmul.mubr.bf16.vlgmr.msra.gmra.mrb[0].mxu1 %v1370_v45  ;;  %v6889_v45 = vld [vmem:[#allocation8 + $0x7e8] ss:$16 sps:$4 sm:$0xff]  }
 0x263   :  { %3056 = vmatpush1.bf16.msra.mxu0 %v6796_v47  ;;  %3220 = vmatpush1.bf16.msra.mxu1 %v6799_v48  ;;  %v1372_v47 = vpack.c.bf16 %v1364_v46, %v1364_v46  ;;  %v1632_v48 = vlaneseq }
 0x264   :  { %3057 = vmatprep.subr.bf16.mxu0 %v6804_v49  ;;  %3221 = vmatprep.subr.bf16.mxu1 %v6807_v50 }
 0x265   :  { %3087 = vmatprep.mubr.bf16.mxu0 %v1373_v51  ;;  %3251 = vmatprep.mubr.bf16.mxu1 %v1373_v51  ;;  %v7813_v49 = vshrl.u32 %v1632_v48, 7 }
 0x267   :  { %3058 = vmatpush1.bf16.msra.mxu0 %v6802_v52  ;;  %3222 = vmatpush1.bf16.msra.mxu1 %v6805_v53  ;;  %v7816_v50 = vsub.s32 0, %v7813_v49  ;;  %v7819_v51 = vsub.s32 2, %v7813_v49  ;;  %v1630_v52 = vld [vmem:[%s8098_s18] sm:$0xf]  ;;  %v7823_v53 = vsub.s32 1, %v7813_v49 }
 0x268   :  { %3059 = vmatprep.subr.bf16.mxu0 %v6810_v54  ;;  %3223 = vmatprep.subr.bf16.mxu1 %v6813_v55  ;;  %v7826_v54 = vsub.s32 3, %v7813_v49 }
 0x269   :  { %v1635_v55 = vrot.slane %v1630_v52, %v7816_v50 }
 0x26b   :  { %3060 = vmatpush1.bf16.msra.mxu0 %v6808_v56  ;;  %3224 = vmatpush1.bf16.msra.mxu1 %v6811_v57  ;;  %v1643_v56 = vrot.slane %v1630_v52, %v7819_v51  ;;  %v1639_v57 = vrot.slane %v1630_v52, %v7823_v53 }
 0x26c   :  { %3061 = vmatprep.subr.bf16.mxu0 %v6816_v58  ;;  %3225 = vmatprep.subr.bf16.mxu1 %v6819_v59  ;;  %v1647_v58 = vrot.slane %v1630_v52, %v7826_v54 }
 0x26f   :  { %3062 = vmatpush1.bf16.msra.mxu0 %v6814_v60  ;;  %3226 = vmatpush1.bf16.msra.mxu1 %v6817_v61 }
 0x270   :  { %3063 = vmatprep.subr.bf16.mxu0 %v6822_v62  ;;  %3227 = vmatprep.subr.bf16.mxu1 %v6825_v63 }
 0x273   :  { %3064 = vmatpush1.bf16.msra.mxu0 %v6820_v0  ;;  %3228 = vmatpush1.bf16.msra.mxu1 %v6823_v1 }
 0x274   :  { %3065 = vmatprep.subr.bf16.mxu0 %v6828_v2  ;;  %3229 = vmatprep.subr.bf16.mxu1 %v6831_v3 }
 0x277   :  { %3066 = vmatpush1.bf16.msra.mxu0 %v6826_v4  ;;  %3230 = vmatpush1.bf16.msra.mxu1 %v6829_v5 }
 0x278   :  { %3067 = vmatprep.subr.bf16.mxu0 %v6834_v6  ;;  %3231 = vmatprep.subr.bf16.mxu1 %v6837_v7 }
 0x27b   :  { %3068 = vmatpush1.bf16.msra.mxu0 %v6832_v8  ;;  %3232 = vmatpush1.bf16.msra.mxu1 %v6835_v9 }
 0x27c   :  { %3069 = vmatprep.subr.bf16.mxu0 %v6840_v10  ;;  %3233 = vmatprep.subr.bf16.mxu1 %v6843_v11 }
 0x27f   :  { %3070 = vmatpush1.bf16.msra.mxu0 %v6838_v12  ;;  %3234 = vmatpush1.bf16.msra.mxu1 %v6841_v13 }
 0x280   :  { %3071 = vmatprep.subr.bf16.mxu0 %v6846_v14  ;;  %3235 = vmatprep.subr.bf16.mxu1 %v6849_v15 }
 0x283   :  { %3072 = vmatpush1.bf16.msra.mxu0 %v6844_v16  ;;  %3236 = vmatpush1.bf16.msra.mxu1 %v6847_v17 }
 0x284   :  { %3073 = vmatprep.subr.bf16.mxu0 %v6852_v18  ;;  %3237 = vmatprep.subr.bf16.mxu1 %v6855_v19 }
 0x287   :  { %3074 = vmatpush1.bf16.msra.mxu0 %v6850_v20  ;;  %3238 = vmatpush1.bf16.msra.mxu1 %v6853_v21 }
 0x288   :  { %3075 = vmatprep.subr.bf16.mxu0 %v6858_v22  ;;  %3239 = vmatprep.subr.bf16.mxu1 %v6861_v23 }
 0x28b   :  { %3076 = vmatpush1.bf16.msra.mxu0 %v6856_v24  ;;  %3240 = vmatpush1.bf16.msra.mxu1 %v6859_v25 }
 0x28c   :  { %3077 = vmatprep.subr.bf16.mxu0 %v6864_v26  ;;  %3241 = vmatprep.subr.bf16.mxu1 %v6867_v27 }
 0x28f   :  { %3078 = vmatpush1.bf16.msra.mxu0 %v6862_v28  ;;  %3242 = vmatpush1.bf16.msra.mxu1 %v6865_v29 }
 0x290   :  { %3079 = vmatprep.subr.bf16.mxu0 %v6870_v30  ;;  %3243 = vmatprep.subr.bf16.mxu1 %v6873_v31 }
 0x293   :  { %3080 = vmatpush1.bf16.msra.mxu0 %v6868_v32  ;;  %3244 = vmatpush1.bf16.msra.mxu1 %v6871_v33 }
 0x294   :  { %3081 = vmatprep.subr.bf16.mxu0 %v6876_v34  ;;  %3245 = vmatprep.subr.bf16.mxu1 %v6879_v35 }
 0x297   :  { %3082 = vmatpush1.bf16.msra.mxu0 %v6874_v36  ;;  %3246 = vmatpush1.bf16.msra.mxu1 %v6877_v37 }
 0x298   :  { %3083 = vmatprep.subr.bf16.mxu0 %v6882_v38  ;;  %3247 = vmatprep.subr.bf16.mxu1 %v6885_v39 }
 0x29b   :  { %3084 = vmatpush1.bf16.msra.mxu0 %v6880_v40  ;;  %3248 = vmatpush1.bf16.msra.mxu1 %v6883_v41 }
 0x29c   :  { %3085 = vmatprep.subr.bf16.mxu0 %v6888_v42  ;;  %3249 = vmatprep.subr.bf16.mxu1 %v6891_v43 }
 0x29f   :  { %3086 = vmatpush1.bf16.msra.mxu0 %v6886_v44  ;;  %3250 = vmatpush1.bf16.msra.mxu1 %v6889_v45 }
 0x2a2   :  { %3088 = vmatmul.mubr.bf16.vlgmr.msra.gmra.mrb[0].mxu0 %v1372_v47  ;;  %3252 = vmatmul.mubr.bf16.vlgmr.msra.gmra.mrb[0].mxu1 %v1372_v47 }
 0x375   :  { %v3089_v59 = vpop.f32.mrb[0].mxu0  ;;  %v3253_v60 = vpop.f32.mrb[0].mxu1 }
 0x376   :  { %v6391_v61 = vadd.f32 %v3089_v59, %v1635_v55  ;;  %v6393_v62 = vadd.f32 %v3253_v60, %v1643_v56  ;;  %v3091_v63 = vpop.f32.mrb[1].mxu0  ;;  %v3255_v0 = vpop.f32.mrb[1].mxu1 }
 0x377   :  { %v6392_v1 = vadd.f32 %v3091_v63, %v1639_v57  ;;  %v6394_v2 = vadd.f32 %v3255_v0, %v1647_v58  ;;  %v3093_v3 = vpop.f32.mrb[2].mxu0  ;;  %v3257_v4 = vpop.f32.mrb[2].mxu1 }
 0x378   :  { %6892 = vtanh.f32 %v6391_v61  ;;  %v3094_v5 = vpop.f32.mrb[3].mxu0  ;;  %v3258_v6 = vpop.f32.mrb[3].mxu1 }
 0x379   :  { %6894 = vtanh.f32 %v6393_v62 }
 0x37a   :  { %6896 = vtanh.f32 %v6392_v1 }
 0x37b   :  { %6898 = vtanh.f32 %v6394_v2 }
 0x382   :  { %v7832_v7 = vpop.eup %6892 }
 0x383   :  { %v7834_v8 = vpop.eup %6894 }
 0x384   :  { %v6897_v9 = vpop.eup %6896 }
 0x385   :  { %v7836_v10 = vpop.eup %6898 }
 0x386   :  { %7294 = dma.done.wait [#allocation7], 8192 }
 0x387   :  { %7295 = vsyncadd [#allocation7], 4294959104  ;;  %v3272_v11 = vpack.c.bf16 %v6897_v9, %v6897_v9  ;;  %v3276_v12 = vld [vmem:[#allocation2 + $0x8] sm:$0xff]  ;;  %v3275_v13 = vld [vmem:[#allocation2] sm:$0xff]  ;;  %v3271_v45 = vpack.c.bf16 %v7832_v7, %v7832_v7  ;;  %v3274_v46 = vpack.c.bf16 %v7836_v10, %v7836_v10  ;;  %s8099_s22 = sld [smem:[#allocation46_spill]] }
 0x388   :  { %v3278_v14 = vld [vmem:[#allocation2 + $0x18] sm:$0xff]  ;;  %3351 = vmatprep.subr.bf16.mxu0 %v3276_v12  ;;  %v3277_v15 = vld [vmem:[#allocation2 + $0x10] sm:$0xff]  ;;  %v3280_v16 = vld [vmem:[#allocation2 + $0x28] sm:$0xff] }
 0x389   :  { %3383 = vmatprep.mubr.bf16.mxu0 %v3272_v11  ;;  %3352 = vmatpush1.bf16.msra.mxu0 %v3275_v13  ;;  %v3279_v17 = vld [vmem:[#allocation2 + $0x20] sm:$0xff]  ;;  %v3282_v18 = vld [vmem:[#allocation2 + $0x38] sm:$0xff]  ;;  %v3281_v19 = vld [vmem:[#allocation2 + $0x30] sm:$0xff] }
 0x38a   :  { %3353 = vmatprep.subr.bf16.mxu0 %v3278_v14  ;;  %v3284_v20 = vld [vmem:[#allocation2 + $0x48] sm:$0xff]  ;;  %v3283_v21 = vld [vmem:[#allocation2 + $0x40] sm:$0xff]  ;;  %v3286_v22 = vld [vmem:[#allocation2 + $0x58] sm:$0xff] }
 0x38b   :  { %v3285_v23 = vld [vmem:[#allocation2 + $0x50] sm:$0xff]  ;;  %v3288_v24 = vld [vmem:[#allocation2 + $0x68] sm:$0xff]  ;;  %v3287_v25 = vld [vmem:[#allocation2 + $0x60] sm:$0xff] }
 0x38c   :  { %v3290_v26 = vld [vmem:[#allocation2 + $0x78] sm:$0xff]  ;;  %v3289_v27 = vld [vmem:[#allocation2 + $0x70] sm:$0xff]  ;;  %v3292_v28 = vld [vmem:[#allocation2 + $0x88] sm:$0xff] }
 0x38d   :  { %3354 = vmatpush1.bf16.msra.mxu0 %v3277_v15  ;;  %v3291_v29 = vld [vmem:[#allocation2 + $0x80] sm:$0xff]  ;;  %v3294_v30 = vld [vmem:[#allocation2 + $0x98] sm:$0xff]  ;;  %v3293_v31 = vld [vmem:[#allocation2 + $0x90] sm:$0xff] }
 0x38e   :  { %3355 = vmatprep.subr.bf16.mxu0 %v3280_v16  ;;  %v3296_v32 = vld [vmem:[#allocation2 + $0xa8] sm:$0xff]  ;;  %v3295_v33 = vld [vmem:[#allocation2 + $0xa0] sm:$0xff]  ;;  %v3298_v34 = vld [vmem:[#allocation2 + $0xb8] sm:$0xff] }
 0x38f   :  { %v3297_v35 = vld [vmem:[#allocation2 + $0xb0] sm:$0xff]  ;;  %v3300_v36 = vld [vmem:[#allocation2 + $0xc8] sm:$0xff]  ;;  %v3299_v37 = vld [vmem:[#allocation2 + $0xc0] sm:$0xff] }
 0x390   :  { %v3302_v38 = vld [vmem:[#allocation2 + $0xd8] sm:$0xff]  ;;  %v3301_v39 = vld [vmem:[#allocation2 + $0xd0] sm:$0xff]  ;;  %v3304_v40 = vld [vmem:[#allocation2 + $0xe8] sm:$0xff] }
 0x391   :  { %3356 = vmatpush1.bf16.msra.mxu0 %v3279_v17  ;;  %v3303_v41 = vld [vmem:[#allocation2 + $0xe0] sm:$0xff]  ;;  %v3306_v42 = vld [vmem:[#allocation2 + $0xf8] sm:$0xff]  ;;  %v3305_v43 = vld [vmem:[#allocation2 + $0xf0] sm:$0xff] }
 0x392   :  { %3357 = vmatprep.subr.bf16.mxu0 %v3282_v18  ;;  %v3308_v44 = vld [vmem:[#allocation2 + $0x108] sm:$0xff]  ;;  %v3307_v47 = vld [vmem:[#allocation2 + $0x100] sm:$0xff]  ;;  %v3310_v48 = vld [vmem:[#allocation2 + $0x118] sm:$0xff] }
 0x393   :  { %v3309_v52 = vld [vmem:[#allocation2 + $0x110] sm:$0xff]  ;;  %v3312_v55 = vld [vmem:[#allocation2 + $0x128] sm:$0xff]  ;;  %v3311_v56 = vld [vmem:[#allocation2 + $0x120] sm:$0xff] }
 0x394   :  { %v3314_v57 = vld [vmem:[#allocation2 + $0x138] sm:$0xff]  ;;  %v3313_v58 = vld [vmem:[#allocation2 + $0x130] sm:$0xff]  ;;  %v3316_v59 = vld [vmem:[#allocation2 + $0x148] sm:$0xff] }
 0x395   :  { %3358 = vmatpush1.bf16.msra.mxu0 %v3281_v19  ;;  %v3315_v60 = vld [vmem:[#allocation2 + $0x140] sm:$0xff]  ;;  %v3318_v61 = vld [vmem:[#allocation2 + $0x158] sm:$0xff]  ;;  %v3317_v62 = vld [vmem:[#allocation2 + $0x150] sm:$0xff] }
 0x396   :  { %3359 = vmatprep.subr.bf16.mxu0 %v3284_v20  ;;  %v3320_v63 = vld [vmem:[#allocation2 + $0x168] sm:$0xff]  ;;  %v3319_v0 = vld [vmem:[#allocation2 + $0x160] sm:$0xff]  ;;  %v3322_v1 = vld [vmem:[#allocation2 + $0x178] sm:$0xff]  ;;  %v3273_v20 = vpack.c.bf16 %v7834_v8, %v7834_v8 }
 0x397   :  { %v3321_v2 = vld [vmem:[#allocation2 + $0x170] sm:$0xff]  ;;  %v3324_v3 = vld [vmem:[#allocation2 + $0x188] sm:$0xff]  ;;  %v3323_v4 = vld [vmem:[#allocation2 + $0x180] sm:$0xff] }
 0x398   :  { %v3326_v5 = vld [vmem:[#allocation2 + $0x198] sm:$0xff]  ;;  %v3325_v6 = vld [vmem:[#allocation2 + $0x190] sm:$0xff]  ;;  %v3328_v7 = vld [vmem:[#allocation2 + $0x1a8] sm:$0xff] }
 0x399   :  { %3360 = vmatpush1.bf16.msra.mxu0 %v3283_v21  ;;  %v3327_v9 = vld [vmem:[#allocation2 + $0x1a0] sm:$0xff]  ;;  %v3330_v10 = vld [vmem:[#allocation2 + $0x1b8] sm:$0xff]  ;;  %v3329_v11 = vld [vmem:[#allocation2 + $0x1b0] sm:$0xff] }
 0x39a   :  { %3361 = vmatprep.subr.bf16.mxu0 %v3286_v22  ;;  %v3332_v12 = vld [vmem:[#allocation2 + $0x1c8] sm:$0xff]  ;;  %v3331_v13 = vld [vmem:[#allocation2 + $0x1c0] sm:$0xff]  ;;  %v3334_v14 = vld [vmem:[#allocation2 + $0x1d8] sm:$0xff] }
 0x39b   :  { %v3333_v15 = vld [vmem:[#allocation2 + $0x1d0] sm:$0xff]  ;;  %v3336_v16 = vld [vmem:[#allocation2 + $0x1e8] sm:$0xff]  ;;  %v3335_v17 = vld [vmem:[#allocation2 + $0x1e0] sm:$0xff] }
 0x39c   :  { %v3338_v18 = vld [vmem:[#allocation2 + $0x1f8] sm:$0xff]  ;;  %v3337_v19 = vld [vmem:[#allocation2 + $0x1f0] sm:$0xff]  ;;  %v3339_v21 = vld [vmem:[%s8099_s22] sm:$0x3] }
 0x39d   :  { %3362 = vmatpush1.bf16.msra.mxu0 %v3285_v23  ;;  %v3344_v22 = vrot.slane %v3339_v21, %v7816_v50  ;;  %v3348_v23 = vrot.slane %v3339_v21, %v7823_v53 }
 0x39e   :  { %3363 = vmatprep.subr.bf16.mxu0 %v3288_v24 }
 0x3a1   :  { %3364 = vmatpush1.bf16.msra.mxu0 %v3287_v25 }
 0x3a2   :  { %3365 = vmatprep.subr.bf16.mxu0 %v3290_v26 }
 0x3a5   :  { %3366 = vmatpush1.bf16.msra.mxu0 %v3289_v27 }
 0x3a6   :  { %3367 = vmatprep.subr.bf16.mxu0 %v3292_v28 }
 0x3a9   :  { %3368 = vmatpush1.bf16.msra.mxu0 %v3291_v29 }
 0x3aa   :  { %3369 = vmatprep.subr.bf16.mxu0 %v3294_v30 }
 0x3ad   :  { %3370 = vmatpush1.bf16.msra.mxu0 %v3293_v31 }
 0x3ae   :  { %3371 = vmatprep.subr.bf16.mxu0 %v3296_v32 }
 0x3b1   :  { %3372 = vmatpush1.bf16.msra.mxu0 %v3295_v33 }
 0x3b2   :  { %3373 = vmatprep.subr.bf16.mxu0 %v3298_v34 }
 0x3b5   :  { %3374 = vmatpush1.bf16.msra.mxu0 %v3297_v35 }
 0x3b6   :  { %3375 = vmatprep.subr.bf16.mxu0 %v3300_v36 }
 0x3b9   :  { %3376 = vmatpush1.bf16.msra.mxu0 %v3299_v37 }
 0x3ba   :  { %3377 = vmatprep.subr.bf16.mxu0 %v3302_v38 }
 0x3bd   :  { %3378 = vmatpush1.bf16.msra.mxu0 %v3301_v39 }
 0x3be   :  { %3379 = vmatprep.subr.bf16.mxu0 %v3304_v40 }
 0x3c1   :  { %3380 = vmatpush1.bf16.msra.mxu0 %v3303_v41 }
 0x3c2   :  { %3381 = vmatprep.subr.bf16.mxu0 %v3306_v42 }
 0x3c5   :  { %3382 = vmatpush1.bf16.msra.mxu0 %v3305_v43 }
 0x3c6   :  { %3392 = vmatprep.subr.bf16.mxu0 %v3308_v44 }
 0x3c8   :  { %3384 = vmatmul.mubr.bf16.vlgmr.msra.gmra.mrb[4].mxu0 %v3271_v45 }
 0x3c9   :  { %3393 = vmatpush1.bf16.msra.mxu0 %v3307_v47  ;;  %3424 = vmatprep.mubr.bf16.mxu0 %v3274_v46 }
 0x3ca   :  { %3394 = vmatprep.subr.bf16.mxu0 %v3310_v48 }
 0x3cd   :  { %3395 = vmatpush1.bf16.msra.mxu0 %v3309_v52 }
 0x3ce   :  { %3396 = vmatprep.subr.bf16.mxu0 %v3312_v55 }
 0x3d1   :  { %3397 = vmatpush1.bf16.msra.mxu0 %v3311_v56 }
 0x3d2   :  { %3398 = vmatprep.subr.bf16.mxu0 %v3314_v57 }
 0x3d5   :  { %3399 = vmatpush1.bf16.msra.mxu0 %v3313_v58 }
 0x3d6   :  { %3400 = vmatprep.subr.bf16.mxu0 %v3316_v59 }
 0x3d9   :  { %3401 = vmatpush1.bf16.msra.mxu0 %v3315_v60 }
 0x3da   :  { %3402 = vmatprep.subr.bf16.mxu0 %v3318_v61 }
 0x3dd   :  { %3403 = vmatpush1.bf16.msra.mxu0 %v3317_v62 }
 0x3de   :  { %3404 = vmatprep.subr.bf16.mxu0 %v3320_v63 }
 0x3e1   :  { %3405 = vmatpush1.bf16.msra.mxu0 %v3319_v0 }
 0x3e2   :  { %3406 = vmatprep.subr.bf16.mxu0 %v3322_v1 }
 0x3e5   :  { %3407 = vmatpush1.bf16.msra.mxu0 %v3321_v2 }
 0x3e6   :  { %3408 = vmatprep.subr.bf16.mxu0 %v3324_v3 }
 0x3e9   :  { %3409 = vmatpush1.bf16.msra.mxu0 %v3323_v4 }
 0x3ea   :  { %3410 = vmatprep.subr.bf16.mxu0 %v3326_v5 }
 0x3ed   :  { %3411 = vmatpush1.bf16.msra.mxu0 %v3325_v6 }
 0x3ee   :  { %3412 = vmatprep.subr.bf16.mxu0 %v3328_v7 }
 0x3f1   :  { %3413 = vmatpush1.bf16.msra.mxu0 %v3327_v9 }
 0x3f2   :  { %3414 = vmatprep.subr.bf16.mxu0 %v3330_v10 }
 0x3f5   :  { %3415 = vmatpush1.bf16.msra.mxu0 %v3329_v11 }
 0x3f6   :  { %3416 = vmatprep.subr.bf16.mxu0 %v3332_v12 }
 0x3f9   :  { %3417 = vmatpush1.bf16.msra.mxu0 %v3331_v13 }
 0x3fa   :  { %3418 = vmatprep.subr.bf16.mxu0 %v3334_v14 }
 0x3fd   :  { %3419 = vmatpush1.bf16.msra.mxu0 %v3333_v15 }
 0x3fe   :  { %3420 = vmatprep.subr.bf16.mxu0 %v3336_v16 }
 0x401   :  { %3421 = vmatpush1.bf16.msra.mxu0 %v3335_v17 }
 0x402   :  { %3422 = vmatprep.subr.bf16.mxu0 %v3338_v18 }
 0x405   :  { %3423 = vmatpush1.bf16.msra.mxu0 %v3337_v19 }
 0x408   :  { %3425 = vmatmul.mubr.bf16.vlgmr.msra.gmra.mrb[4].mxu0 %v3273_v20 }
 0x4db   :  { %v3426_v24 = vpop.f32.mrb[4].mxu0 }
 0x4dc   :  { %v7847_v25 = vadd.f32 %v3426_v24, %v3344_v22  ;;  %v3428_v26 = vpop.f32.mrb[5].mxu0 }
 0x4dd   :  { %v6396_v27 = vadd.f32 %v3428_v26, %v3348_v23  ;;  %v3430_v28 = vpop.f32.mrb[6].mxu0 }
 0x4de   :  { %v3433_v29 = vmax.f32 %v7847_v25, 0.0  ;;  %v3431_v30 = vpop.f32.mrb[7].mxu0 }
 0x4df   :  { %v3434_v31 = vmax.f32 %v6396_v27, 0.0 }
 0x4e0   :  { %7296 = dma.done.wait [#allocation7 + $0x1], 4096 }
 0x4e1   :  { %7297 = vsyncadd [#allocation7 + $0x1], 4294963200  ;;  %v3444_v8 = vpack.c.bf16 %v3434_v31, %v3434_v31  ;;  %v7360_v32 = vmov 0   ;;  %s8100_s23 = sld [smem:[#allocation49_spill]]  ;;  %v3446_v33 = vld [vmem:[#allocation3 + $0x8] sm:$0xff]  ;;  %v3445_v34 = vld [vmem:[#allocation3] sm:$0xff]  ;;  %v3443_v18 = vpack.c.bf16 %v3433_v29, %v3433_v29 }
 0x4e2   :  { %3845 = vmatprep.mubr.bf16.mxu0 %v7360_v32  ;;  %v3448_v35 = vld [vmem:[#allocation3 + $0x18] sm:$0xff]  ;;  %3489 = vmatprep.subr.bf16.mxu1 %v3446_v33  ;;  %s8101_s24 = sld [smem:[#allocation44_spill]]  ;;  %v3447_v36 = vld [vmem:[#allocation3 + $0x10] sm:$0xff]  ;;  %v3450_v37 = vld [vmem:[#allocation3 + $0x28] sm:$0xff]  ;;  %vm3800_vm0 = vcmask 1043456   ;;  %vm3796_vm1 = vcmask 64512  }
 0x4e3   :  { %3521 = vmatprep.mubr.bf16.mxu1 %v3444_v8  ;;  %3490 = vmatpush1.bf16.msra.mxu1 %v3445_v34  ;;  %v3449_v38 = vld [vmem:[#allocation3 + $0x20] sm:$0xff]  ;;  %v3452_v39 = vld [vmem:[#allocation3 + $0x38] sm:$0xff]  ;;  %v3451_v40 = vld [vmem:[#allocation3 + $0x30] sm:$0xff]  ;;  %s8102_s26 = sld [smem:[#allocation47_spill]]  ;;  %v7361_v19 = vmov 0.0   ;;  %s8103_s4 = sld [smem:[#allocation50_spill]] }
 0x4e4   :  { %3491 = vmatprep.subr.bf16.mxu1 %v3448_v35  ;;  %v3454_v46 = vld [vmem:[#allocation3 + $0x48] sm:$0xff]  ;;  %v3453_v56 = vld [vmem:[#allocation3 + $0x40] sm:$0xff]  ;;  %v3456_v57 = vld [vmem:[#allocation3 + $0x58] sm:$0xff]  ;;  %vm7362_vm2 = vmmov 0   ;;  %s8104_s25 = sld [smem:[#allocation48_spill]]  ;;  %s8105_s20 = sld [smem:[#allocation51_spill]] }
 0x4e5   :  { %v3455_v59 = vld [vmem:[#allocation3 + $0x50] sm:$0xff]  ;;  %v3458_v60 = vld [vmem:[#allocation3 + $0x68] sm:$0xff]  ;;  %v3457_v61 = vld [vmem:[#allocation3 + $0x60] sm:$0xff]  ;;  %s8106_s28 = sld [smem:[#allocation52_spill]] }
 0x4e6   :  { %v3460_v62 = vld [vmem:[#allocation3 + $0x78] sm:$0xff]  ;;  %v3459_v63 = vld [vmem:[#allocation3 + $0x70] sm:$0xff]  ;;  %v3462_v0 = vld [vmem:[#allocation3 + $0x88] sm:$0xff] }
 0x4e7   :  { %3492 = vmatpush1.bf16.msra.mxu1 %v3447_v36  ;;  %v3762_v41 = vld [vmem:[%s8100_s23] sm:$0xff]  ;;  %v3763_v45 = vld [vmem:[%s8100_s23 + $0x8] sm:$0xff]  ;;  %v3464_v2 = vld [vmem:[#allocation3 + $0x98] sm:$0xff] }
 0x4e8   :  { %3493 = vmatprep.subr.bf16.mxu1 %v3450_v37  ;;  %v6139_v42 = vcombine.high %v3762_v41, %v3762_v41  ;;  %v6138_v43 = vcombine.low %v3762_v41, %v3762_v41  ;;  %v3760_v44 = vld [vmem:[%s8101_s24] sm:$0xff]  ;;  %v6141_v47 = vcombine.high %v3763_v45, %v3763_v45  ;;  %v6140_v48 = vcombine.low %v3763_v45, %v3763_v45  ;;  %v3463_v3 = vld [vmem:[#allocation3 + $0x90] sm:$0xff]  ;;  %v3466_v4 = vld [vmem:[#allocation3 + $0xa8] sm:$0xff] }
 0x4e9   :  { %v3761_v55 = vpack.c.bf16 %v3760_v44, %v3760_v44  ;;  %v3461_v1 = vld [vmem:[#allocation3 + $0x80] sm:$0xff]  ;;  %v3468_v6 = vld [vmem:[#allocation3 + $0xb8] sm:$0xff]  ;;  %v3467_v7 = vld [vmem:[#allocation3 + $0xb0] sm:$0xff] }
 0x4ea   :  { %6142 = vmatprep.subr.msk.bf16.mxu0 %vm3800_vm0, %v6139_v42  ;;  %v3802_v52 = vsel %vm3800_vm0, %v6138_v43, 0  ;;  %v3808_v58 = vsel %vm3800_vm0, %v6140_v48, 0  ;;  %v3465_v5 = vld [vmem:[#allocation3 + $0xa0] sm:$0xff]  ;;  %v3470_v9 = vld [vmem:[#allocation3 + $0xc8] sm:$0xff]  ;;  %v3472_v11 = vld [vmem:[#allocation3 + $0xd8] sm:$0xff] }
 0x4eb   :  { %3494 = vmatpush1.bf16.msra.mxu1 %v3449_v38  ;;  %3814 = vmatpush1.bf16.msra.mxu0 %v3802_v52  ;;  %v3469_v10 = vld [vmem:[#allocation3 + $0xc0] sm:$0xff]  ;;  %v3471_v12 = vld [vmem:[#allocation3 + $0xd0] sm:$0xff]  ;;  %v3474_v13 = vld [vmem:[#allocation3 + $0xe8] sm:$0xff] }
 0x4ec   :  { %3495 = vmatprep.subr.bf16.mxu1 %v3452_v39  ;;  %6144 = vmatprep.subr.msk.bf16.mxu0 %vm3800_vm0, %v6141_v47  ;;  %v3473_v14 = vld [vmem:[#allocation3 + $0xe0] sm:$0xff]  ;;  %v3476_v15 = vld [vmem:[#allocation3 + $0xf8] sm:$0xff]  ;;  %v3475_v16 = vld [vmem:[#allocation3 + $0xf0] sm:$0xff] }
 0x4ed   :  { %v6904_v17 = vld [vmem:[%s8102_s26] sm:$0xff]   ;;  %v6905_v20 = vld [vmem:[%s8102_s26 + $0x8] sm:$0xff]   ;;  %v6906_v21 = vld [vmem:[%s8102_s26 + $0x10] sm:$0xff]  }
 0x4ee   :  { %6143 = vmatmul.mubr.msk.bf16.vlgmr.msra.gmra.mrb[8].mxu0 %vm3796_vm1, %v3761_v55  ;;  %v6907_v22 = vld [vmem:[%s8102_s26 + $0x18] sm:$0xff]   ;;  %v6908_v23 = vld [vmem:[%s8102_s26 + $0x20] sm:$0xff]   ;;  %v6909_v24 = vld [vmem:[%s8102_s26 + $0x28] sm:$0xff]  }
 0x4ef   :  { %3496 = vmatpush1.bf16.msra.mxu1 %v3451_v40  ;;  %3855 = vmatpush1.bf16.msra.mxu0 %v3808_v58  ;;  %v6910_v25 = vld [vmem:[%s8102_s26 + $0x30] sm:$0xff]   ;;  %v6911_v26 = vld [vmem:[%s8102_s26 + $0x38] sm:$0xff]   ;;  %v6917_v27 = vld [vmem:[%s8103_s4 + $0x40] sm:$0xff]  }
 0x4f0   :  { %3497 = vmatprep.subr.bf16.mxu1 %v3454_v46  ;;  %3886 = vmatprep.mubr.bf16.mxu0 %v7360_v32  ;;  %v6918_v28 = vld [vmem:[%s8103_s4] sm:$0xff]   ;;  %v6920_v29 = vld [vmem:[%s8103_s4 + $0x48] sm:$0xff]   ;;  %v6923_v31 = vld [vmem:[%s8103_s4 + $0x50] sm:$0xff]  }
 0x4f1   :  { %6255 = vmatprep.subr.bf16.mxu0 %v6917_v27  ;;  %v6921_v30 = vld [vmem:[%s8103_s4 + $0x8] sm:$0xff]   ;;  %v6924_v8 = vld [vmem:[%s8103_s4 + $0x10] sm:$0xff]   ;;  %v6926_v33 = vld [vmem:[%s8103_s4 + $0x58] sm:$0xff]  }
 0x4f2   :  { %v6927_v34 = vld [vmem:[%s8103_s4 + $0x18] sm:$0xff]   ;;  %v6930_v35 = vld [vmem:[%s8103_s4 + $0x60] sm:$0xff]   ;;  %v6934_v37 = vld [vmem:[%s8103_s4 + $0x68] sm:$0xff]  }
 0x4f3   :  { %3498 = vmatpush1.bf16.msra.mxu1 %v3453_v56  ;;  %v6931_v36 = vld [vmem:[%s8103_s4 + $0x20] sm:$0xff]   ;;  %v6935_v38 = vld [vmem:[%s8103_s4 + $0x28] sm:$0xff]   ;;  %v6938_v39 = vld [vmem:[%s8103_s4 + $0x70] sm:$0xff]  }
 0x4f4   :  { %3499 = vmatprep.subr.bf16.mxu1 %v3456_v57  ;;  %v6939_v40 = vld [vmem:[%s8103_s4 + $0x30] sm:$0xff]   ;;  %v6942_v41 = vld [vmem:[%s8103_s4 + $0x78] sm:$0xff]   ;;  %v3764_v43 = vld [vmem:[#allocation15] sm:$0xf] }
 0x4f5   :  { %v6943_v42 = vld [vmem:[%s8103_s4 + $0x38] sm:$0xff]   ;;  %v3769_v44 = vrot.slane %v3764_v43, %v7816_v50  ;;  %v3773_v45 = vrot.slane %v3764_v43, %v7823_v53 }
 0x4f6   :  { %6145 = vmatmul.mubr.msk.bf16.vlgmr.msra.gmra.mrb[12].mxu0 %vm3796_vm1, %v3761_v55 }
 0x4f7   :  { %3500 = vmatpush1.bf16.msra.mxu1 %v3455_v59  ;;  %6256 = vmatpush3.bf16.msra.mxu0 %v6918_v28  ;;  %v3777_v59 = vrot.slane %v3764_v43, %v7819_v51  ;;  %v6915_v28 = vld [vmem:[%s8104_s25 + $0x18] sm:$0xff]  }
 0x4f8   :  { %3501 = vmatprep.subr.bf16.mxu1 %v3458_v60  ;;  %6257 = vmatprep.subr.bf16.mxu0 %v6920_v29  ;;  %v3781_v60 = vrot.slane %v3764_v43, %v7826_v54  ;;  %v6933_v43 = vld [vmem:[%s8103_s4 + $0x88] sm:$0xff]  }
 0x4fb   :  { %3502 = vmatpush1.bf16.msra.mxu1 %v3457_v61  ;;  %6258 = vmatpush3.bf16.msra.mxu0 %v6921_v30 }
 0x4fc   :  { %3503 = vmatprep.subr.bf16.mxu1 %v3460_v62  ;;  %6259 = vmatprep.subr.bf16.mxu0 %v6923_v31  ;;  %v6916_v31 = vld [vmem:[%s8104_s25 + $0x20] sm:$0xff]  }
 0x4ff   :  { %3504 = vmatpush1.bf16.msra.mxu1 %v3459_v63  ;;  %6260 = vmatpush3.bf16.msra.mxu0 %v6924_v8  ;;  %v6919_v8 = vld [vmem:[%s8104_s25 + $0x28] sm:$0xff]  }
 0x500   :  { %3505 = vmatprep.subr.bf16.mxu1 %v3462_v0  ;;  %6261 = vmatprep.subr.bf16.mxu0 %v6926_v33  ;;  %v6922_v33 = vld [vmem:[%s8104_s25 + $0x30] sm:$0xff]  }
 0x503   :  { %3506 = vmatpush1.bf16.msra.mxu1 %v3461_v1  ;;  %6262 = vmatpush3.bf16.msra.mxu0 %v6927_v34  ;;  %v6925_v34 = vld [vmem:[%s8104_s25 + $0x38] sm:$0xff]  }
 0x504   :  { %3507 = vmatprep.subr.bf16.mxu1 %v3464_v2  ;;  %6263 = vmatprep.subr.bf16.mxu0 %v6930_v35 }
 0x507   :  { %3508 = vmatpush1.bf16.msra.mxu1 %v3463_v3  ;;  %6264 = vmatpush3.bf16.msra.mxu0 %v6931_v36  ;;  %v6928_v36 = vld [vmem:[%s8103_s4 + $0xc0] sm:$0xff]  }
 0x508   :  { %3509 = vmatprep.subr.bf16.mxu1 %v3466_v4  ;;  %6265 = vmatprep.subr.bf16.mxu0 %v6934_v37 }
 0x50b   :  { %3510 = vmatpush1.bf16.msra.mxu1 %v3465_v5  ;;  %6266 = vmatpush3.bf16.msra.mxu0 %v6935_v38 }
 0x50c   :  { %3511 = vmatprep.subr.bf16.mxu1 %v3468_v6  ;;  %6267 = vmatprep.subr.bf16.mxu0 %v6938_v39  ;;  %v6929_v39 = vld [vmem:[%s8103_s4 + $0x80] sm:$0xff]  }
 0x50f   :  { %3512 = vmatpush1.bf16.msra.mxu1 %v3467_v7  ;;  %6268 = vmatpush3.bf16.msra.mxu0 %v6939_v40 }
 0x510   :  { %3513 = vmatprep.subr.bf16.mxu1 %v3470_v9  ;;  %6269 = vmatprep.subr.bf16.mxu0 %v6942_v41 }
 0x513   :  { %3514 = vmatpush1.bf16.msra.mxu1 %v3469_v10  ;;  %6270 = vmatpush3.bf16.msra.mxu0 %v6943_v42  ;;  %v6932_v42 = vld [vmem:[%s8103_s4 + $0xc8] sm:$0xff]  }
 0x514   :  { %3515 = vmatprep.subr.bf16.mxu1 %v3472_v11 }
 0x517   :  { %3516 = vmatpush1.bf16.msra.mxu1 %v3471_v12  ;;  %v3477_v12 = vld [vmem:[#allocation10] sm:$0x3] }
 0x518   :  { %3517 = vmatprep.subr.bf16.mxu1 %v3474_v13  ;;  %v3482_v13 = vrot.slane %v3477_v12, %v7816_v50  ;;  %v3486_v27 = vrot.slane %v3477_v12, %v7823_v53 }
 0x51b   :  { %3518 = vmatpush1.bf16.msra.mxu1 %v3473_v14 }
 0x51c   :  { %3519 = vmatprep.subr.bf16.mxu1 %v3476_v15 }
 0x51f   :  { %3520 = vmatpush1.bf16.msra.mxu1 %v3475_v16 }
 0x520   :  { %6345 = vmatprep.subr.bf16.mxu1 %v7361_v19 }
 0x522   :  { %3522 = vmatmul.mubr.bf16.vlgmr.msra.gmra.mrb[4].mxu1 %v3443_v18 }
 0x523   :  { %6346 = vmatpush3.bf16.msra.mxu1 %v6904_v17  ;;  %6361 = vmatprep.mubr.msk.bf16.mxu1 %vm7362_vm2, %v7361_v19 }
 0x524   :  { %6347 = vmatprep.subr.bf16.mxu1 %v7361_v19 }
 0x527   :  { %6348 = vmatpush3.bf16.msra.mxu1 %v6905_v20 }
 0x528   :  { %6349 = vmatprep.subr.bf16.mxu1 %v7361_v19 }
 0x52b   :  { %6350 = vmatpush3.bf16.msra.mxu1 %v6906_v21 }
 0x52c   :  { %6351 = vmatprep.subr.bf16.mxu1 %v7361_v19 }
 0x52f   :  { %6352 = vmatpush3.bf16.msra.mxu1 %v6907_v22  ;;  %v6912_v22 = vld [vmem:[%s8104_s25] sm:$0xff]  }
 0x530   :  { %6353 = vmatprep.subr.bf16.mxu1 %v7361_v19 }
 0x533   :  { %6354 = vmatpush3.bf16.msra.mxu1 %v6908_v23 }
 0x534   :  { %6355 = vmatprep.subr.bf16.mxu1 %v7361_v19 }
 0x537   :  { %6356 = vmatpush3.bf16.msra.mxu1 %v6909_v24  ;;  %v6913_v24 = vld [vmem:[%s8104_s25 + $0x8] sm:$0xff]  }
 0x538   :  { %6357 = vmatprep.subr.bf16.mxu1 %v7361_v19 }
 0x53b   :  { %6358 = vmatpush3.bf16.msra.mxu1 %v6910_v25  ;;  %v6914_v25 = vld [vmem:[%s8104_s25 + $0x10] sm:$0xff]  }
 0x53c   :  { %6359 = vmatprep.subr.bf16.mxu1 %v7361_v19 }
 0x53f   :  { %6360 = vmatpush3.bf16.msra.mxu1 %v6911_v26 }
 0x540   :  { %6365 = vmatprep.subr.bf16.mxu1 %v7361_v19 }
 0x5c1   :  { %v3847_v46 = vpop.f32.mrb[8].mxu0 }
 0x5c2   :  { %v3848_v47 = vadd.f32 %v3847_v46, %v3769_v44  ;;  %v3849_v48 = vpop.f32.mrb[9].mxu0  ;;  %v6936_v44 = vld [vmem:[%s8103_s4 + $0xd0] sm:$0xff]   ;;  %v6940_v46 = vld [vmem:[%s8103_s4 + $0xd8] sm:$0xff]  }
 0x5c3   :  { %v3850_v52 = vadd.f32 %v3849_v48, %v3773_v45  ;;  %v3851_v55 = vpop.f32.mrb[10].mxu0  ;;  %v6937_v45 = vld [vmem:[%s8103_s4 + $0x90] sm:$0xff]  }
 0x5c4   :  { %v6146_v56 = vmul.f32 -1.442695, %v3848_v47  ;;  %v3852_v57 = vpop.f32.mrb[11].mxu0  ;;  %v6941_v47 = vld [vmem:[%s8103_s4 + $0x98] sm:$0xff]  }
 0x5c5   :  { %v6147_v58 = vmul.f32 -1.442695, %v3850_v52  ;;  %v6944_v52 = vld [vmem:[%s8103_s4 + $0xe0] sm:$0xff]   ;;  %v6946_v57 = vld [vmem:[%s8103_s4 + $0xe8] sm:$0xff]  }
 0x5c6   :  { %6988 = vpow2.f32 %v6146_v56  ;;  %v6945_v56 = vld [vmem:[%s8103_s4 + $0xa0] sm:$0xff]  }
 0x5c7   :  { %6990 = vpow2.f32 %v6147_v58  ;;  %v6947_v58 = vld [vmem:[%s8103_s4 + $0xa8] sm:$0xff]  }
 0x5c9   :  { %v3888_v61 = vpop.f32.mrb[12].mxu0 }
 0x5ca   :  { %v3889_v62 = vadd.f32 %v3888_v61, %v3777_v59  ;;  %v3890_v63 = vpop.f32.mrb[13].mxu0  ;;  %v6948_v59 = vld [vmem:[%s8103_s4 + $0xf0] sm:$0xff]   ;;  %v6950_v61 = vld [vmem:[%s8103_s4 + $0xf8] sm:$0xff]  }
 0x5cb   :  { %v3891_v0 = vadd.f32 %v3890_v63, %v3781_v60  ;;  %v3892_v1 = vpop.f32.mrb[14].mxu0  ;;  %v6949_v60 = vld [vmem:[%s8103_s4 + $0xb0] sm:$0xff]  }
 0x5cc   :  { %v3893_v2 = vpop.f32.mrb[15].mxu0  ;;  %v6148_v38 = vmul.f32 -1.442695, %v3889_v62  ;;  %v6951_v62 = vld [vmem:[%s8103_s4 + $0xb8] sm:$0xff]   ;;  %v4267_v1 = vld [vmem:[%s8105_s20] sm:$0xff] }
 0x5cd   :  { %v6149_v20 = vmul.f32 -1.442695, %v3891_v0  ;;  %v6184_v2 = vcombine.high %v4267_v1, %v4267_v1 }
 0x5cf   :  { %6187 = vmatprep.subr.msk.bf16.mxu0 %vm3800_vm0, %v6184_v2  ;;  %v6975_v2 = vld [vmem:[%s8106_s28 + $0xa0] sm:$0xff]  }
 0x5d0   :  { %v6989_v3 = vpop.eup %6988 }
 0x5d1   :  { %v6991_v4 = vpop.eup %6990  ;;  %v3907_v5 = vadd.f32 1.0, %v6989_v3  ;;  %v6183_v3 = vcombine.low %v4267_v1, %v4267_v1  ;;  %v6973_v1 = vld [vmem:[%s8106_s28 + $0x20] sm:$0xff]  }
 0x5d2   :  { %v3908_v6 = vadd.f32 1.0, %v6991_v4  ;;  %v4268_v4 = vld [vmem:[%s8105_s20 + $0x8] sm:$0xff] }
 0x5d3   :  { %6992 = vrcp.f32 %v3907_v5  ;;  %v4305_v5 = vsel %vm3800_vm0, %v6183_v3, 0  ;;  %v6976_v3 = vld [vmem:[%s8106_s28 + $0x68] sm:$0xff]  }
 0x5d4   :  { %6994 = vrcp.f32 %v3908_v6  ;;  %v6186_v6 = vcombine.high %v4268_v4, %v4268_v4 }
 0x5dd   :  { %v6993_v7 = vpop.eup %6992 }
 0x5de   :  { %v6995_v9 = vpop.eup %6994  ;;  %v3919_v10 = vpack.c.bf16 %v6993_v7, %v6993_v7  ;;  %v6185_v7 = vcombine.low %v4268_v4, %v4268_v4  ;;  %v6977_v4 = vld [vmem:[%s8106_s28 + $0x28] sm:$0xff]  }
 0x5df   :  { %v3920_v11 = vpack.c.bf16 %v6995_v9, %v6995_v9 }
 0x5e0   :  { %v4311_v9 = vsel %vm3800_vm0, %v6185_v7, 0  ;;  %v6980_v7 = vld [vmem:[%s8106_s28 + $0x70] sm:$0xff]  }
 0x5e1   :  { %4218 = vmatprep.mubr.bf16.mxu0 %v3920_v11 }
 0x5e2   :  { %4219 = vmatmul.mubr.bf16.vlgmr.msra.gmra.mrb[16].mxu0 %v3919_v10 }
 0x5e3   :  { %4348 = vmatprep.mubr.bf16.mxu0 %v7360_v32  ;;  %4317 = vmatpush1.bf16.msra.mxu0 %v4305_v5  ;;  %v6978_v5 = vld [vmem:[%s8106_s28 + $0xe8] sm:$0xff]  }
 0x5f5   :  { %v3523_v14 = vpop.f32.mrb[4].mxu1 }
 0x5f6   :  { %v3524_v15 = vadd.f32 %v3523_v14, %v3482_v13  ;;  %v3525_v16 = vpop.f32.mrb[5].mxu1 }
 0x5f7   :  { %v3527_v17 = vpop.f32.mrb[6].mxu1  ;;  %v3526_v30 = vadd.f32 %v3525_v16, %v3486_v27 }
 0x5f8   :  { %6996 = vtanh.f32 %v3524_v15  ;;  %v3528_v18 = vpop.f32.mrb[7].mxu1 }
 0x5f9   :  { %6998 = vpow2.f32 %v6149_v20 }
 0x602   :  { %v6997_v21 = vpop.eup %6996 }
 0x603   :  { %v3532_v23 = vpack.c.bf16 %v6997_v21, %v6997_v21  ;;  %v6999_v26 = vpop.eup %6998 }
 0x604   :  { %v3910_v29 = vadd.f32 1.0, %v6999_v26 }
 0x605   :  { %6362 = vmatmul.mubr.bf16.vlgmr.msra.gmra.mrb[8].mxu1 %v3532_v23 }
 0x606   :  { %6366 = vmatpush3.bf16.msra.mxu1 %v6912_v22  ;;  %6381 = vmatprep.mubr.msk.bf16.mxu1 %vm7362_vm2, %v7361_v19  ;;  %7000 = vrcp.f32 %v3910_v29 }
 0x607   :  { %6367 = vmatprep.subr.bf16.mxu1 %v7361_v19  ;;  %7002 = vtanh.f32 %v3526_v30 }
 0x608   :  { %7004 = vpow2.f32 %v6148_v38 }
 0x60a   :  { %6368 = vmatpush3.bf16.msra.mxu1 %v6913_v24  ;;  %v6128_v24 = vld [vmem:[#allocation13] ss:$0 sm:$0xff] }
 0x60b   :  { %6369 = vmatprep.subr.bf16.mxu1 %v7361_v19 }
 0x60e   :  { %6370 = vmatpush3.bf16.msra.mxu1 %v6914_v25 }
 0x60f   :  { %6371 = vmatprep.subr.bf16.mxu1 %v7361_v19 }
 0x610   :  { %v7001_v35 = vpop.eup %7000 }
 0x611   :  { %v7003_v37 = vpop.eup %7002  ;;  %v3922_v40 = vpack.c.bf16 %v7001_v35, %v7001_v35 }
 0x612   :  { %6372 = vmatpush3.bf16.msra.mxu1 %v6915_v28  ;;  %v3533_v41 = vpack.c.bf16 %v7003_v37, %v7003_v37  ;;  %v7005_v48 = vpop.eup %7004  ;;  %v6150_v28 = vld [vmem:[#allocation16] ss:$0 sm:$0xff] }
 0x613   :  { %6373 = vmatprep.subr.bf16.mxu1 %v7361_v19  ;;  %v3909_v55 = vadd.f32 1.0, %v7005_v48  ;;  %v6961_v48 = vld [vmem:[%s8106_s28 + $0x8] sm:$0xff]  }
 0x615   :  { %7006 = vrcp.f32 %v3909_v55  ;;  %v6964_v55 = vld [vmem:[%s8106_s28 + $0x50] sm:$0xff]  }
 0x616   :  { %6374 = vmatpush3.bf16.msra.mxu1 %v6916_v31 }
 0x617   :  { %6375 = vmatprep.subr.bf16.mxu1 %v7361_v19 }
 0x61a   :  { %6376 = vmatpush3.bf16.msra.mxu1 %v6919_v8 }
 0x61b   :  { %6377 = vmatprep.subr.bf16.mxu1 %v7361_v19 }
 0x61e   :  { %6378 = vmatpush3.bf16.msra.mxu1 %v6922_v33 }
 0x61f   :  { %6379 = vmatprep.subr.bf16.mxu1 %v7361_v19  ;;  %v7007_v63 = vpop.eup %7006 }
 0x620   :  { %v3921_v0 = vpack.c.bf16 %v7007_v63, %v7007_v63  ;;  %v6972_v63 = vld [vmem:[%s8106_s28 + $0x60] sm:$0xff]  }
 0x622   :  { %6380 = vmatpush3.bf16.msra.mxu1 %v6925_v34  ;;  %v6119_v34 = vld [vmem:[#allocation12] ss:$0 sm:$0xff] }
 0x623   :  { %6277 = vmatprep.subr.bf16.mxu1 %v6928_v36 }
 0x625   :  { %6382 = vmatmul.mubr.bf16.vlgmr.msra.gmra.mrb[12].mxu1 %v3533_v41 }
 0x626   :  { %6278 = vmatpush3.bf16.msra.mxu1 %v6929_v39  ;;  %4258 = vmatprep.mubr.bf16.mxu1 %v3922_v40 }
 0x627   :  { %6279 = vmatprep.subr.bf16.mxu1 %v6932_v42  ;;  %v6956_v42 = vld [vmem:[%s8106_s28 + $0x40] sm:$0xff]  }
 0x628   :  { %6299 = vmatprep.subr.bf16.mxu0 %v6956_v42 }
 0x62a   :  { %6280 = vmatpush3.bf16.msra.mxu1 %v6933_v43  ;;  %v6958_v43 = vld [vmem:[%s8106_s28 + $0xc0] sm:$0xff]  }
 0x62b   :  { %6281 = vmatprep.subr.bf16.mxu1 %v6936_v44  ;;  %v6957_v44 = vld [vmem:[%s8106_s28] sm:$0xff]  }
 0x62e   :  { %6282 = vmatpush3.bf16.msra.mxu1 %v6937_v45  ;;  %v6959_v45 = vld [vmem:[%s8106_s28 + $0x80] sm:$0xff]  }
 0x62f   :  { %6283 = vmatprep.subr.bf16.mxu1 %v6940_v46  ;;  %v6960_v46 = vld [vmem:[%s8106_s28 + $0x48] sm:$0xff]  }
 0x632   :  { %6284 = vmatpush3.bf16.msra.mxu1 %v6941_v47  ;;  %v6962_v47 = vld [vmem:[%s8106_s28 + $0xc8] sm:$0xff]  }
 0x633   :  { %6285 = vmatprep.subr.bf16.mxu1 %v6944_v52  ;;  %v6963_v52 = vld [vmem:[%s8106_s28 + $0x88] sm:$0xff]  }
 0x636   :  { %6286 = vmatpush3.bf16.msra.mxu1 %v6945_v56  ;;  %v6966_v56 = vld [vmem:[%s8106_s28 + $0xd0] sm:$0xff]  }
 0x637   :  { %6287 = vmatprep.subr.bf16.mxu1 %v6946_v57  ;;  %v6965_v57 = vld [vmem:[%s8106_s28 + $0x10] sm:$0xff]  }
 0x63a   :  { %6288 = vmatpush3.bf16.msra.mxu1 %v6947_v58  ;;  %v6967_v58 = vld [vmem:[%s8106_s28 + $0x90] sm:$0xff]  }
 0x63b   :  { %6289 = vmatprep.subr.bf16.mxu1 %v6948_v59  ;;  %v6968_v59 = vld [vmem:[%s8106_s28 + $0x58] sm:$0xff]  }
 0x63e   :  { %6290 = vmatpush3.bf16.msra.mxu1 %v6949_v60  ;;  %v6970_v60 = vld [vmem:[%s8106_s28 + $0xd8] sm:$0xff]  }
 0x63f   :  { %6291 = vmatprep.subr.bf16.mxu1 %v6950_v61  ;;  %v6969_v61 = vld [vmem:[%s8106_s28 + $0x18] sm:$0xff]  }
 0x642   :  { %6292 = vmatpush3.bf16.msra.mxu1 %v6951_v62  ;;  %v6971_v62 = vld [vmem:[%s8106_s28 + $0x98] sm:$0xff]  }
 0x643   :  { %6189 = vmatprep.subr.msk.bf16.mxu1 %vm3800_vm0, %v6186_v6  ;;  %v6979_v6 = vld [vmem:[%s8106_s28 + $0xa8] sm:$0xff]  }
 0x645   :  { %4259 = vmatmul.mubr.bf16.vlgmr.msra.gmra.mrb[16].mxu1 %v3921_v0  ;;  %v6974_v0 = vld [vmem:[%s8106_s28 + $0xe0] sm:$0xff]  }
 0x646   :  { %4389 = vmatprep.mubr.bf16.mxu1 %v7360_v32  ;;  %4358 = vmatpush1.bf16.msra.mxu1 %v4311_v9  ;;  %v6982_v9 = vld [vmem:[%s8106_s28 + $0xf0] sm:$0xff]  }
 0x647   :  { %6321 = vmatprep.subr.bf16.mxu1 %v6958_v43 }
 0x6b5   :  { %v6271_v10 = vpop.f32.mrb[16].mxu0 }
 0x6b6   :  { %v6272_v11 = vpop.f32.mrb[17].mxu0 }
 0x6b7   :  { %v6273_v12 = vadd.f32 %v6272_v11, %v6271_v10  ;;  %v6274_v13 = vpop.f32.mrb[18].mxu0  ;;  %v6981_v10 = vld [vmem:[%s8106_s28 + $0x30] sm:$0xff]  }
 0x6b8   :  { %v6275_v14 = vpop.f32.mrb[19].mxu0  ;;  %v6983_v11 = vld [vmem:[%s8106_s28 + $0xb0] sm:$0xff]   ;;  %v6986_v13 = vld [vmem:[%s8106_s28 + $0xf8] sm:$0xff]  }
 0x6b9   :  { %v4221_v31 = vadd.f32 %v6273_v12, %v6150_v28  ;;  %v6984_v12 = vld [vmem:[%s8106_s28 + $0x78] sm:$0xff]  }
 0x6ba   :  { %v6985_v14 = vld [vmem:[%s8106_s28 + $0x38] sm:$0xff]  }
 0x6d8   :  { %v3639_v15 = vpop.f32.mrb[8].mxu1 }
 0x6d9   :  { %v6363_v16 = vpop.f32.mrb[9].mxu1  ;;  %v3640_v38 = vadd.f32 %v6119_v34, %v3639_v15  ;;  %v6987_v15 = vld [vmem:[%s8106_s28 + $0xb8] sm:$0xff]  }
 0x6da   :  { %v3642_v17 = vpop.f32.mrb[10].mxu1  ;;  %v4269_v16 = vld [vmem:[#allocation18] sm:$0xf] }
 0x6db   :  { %v6364_v18 = vpop.f32.mrb[11].mxu1  ;;  %v4274_v17 = vrot.slane %v4269_v16, %v7816_v50 }
 0x6dc   :  { %v4282_v18 = vrot.slane %v4269_v16, %v7819_v51 }
 0x6f8   :  { %v3750_v20 = vpop.f32.mrb[12].mxu1 }
 0x6f9   :  { %v6383_v21 = vpop.f32.mrb[13].mxu1  ;;  %v3751_v25 = vadd.f32 %v6128_v24, %v3750_v20  ;;  %v4278_v20 = vrot.slane %v4269_v16, %v7823_v53 }
 0x6fa   :  { %v3753_v22 = vpop.f32.mrb[14].mxu1  ;;  %v4286_v21 = vrot.slane %v4269_v16, %v7826_v54 }
 0x6fb   :  { %v6384_v23 = vpop.f32.mrb[15].mxu1  ;;  %v6137_v26 = vclamps-f32 %v3751_v25, 4.0 }
 0x6fd   :  { %v3758_v27 = vmul.f32 1.442695, %v6137_v26 }
 0x6ff   :  { %7008 = vpow2.f32 %v3758_v27 }
 0x709   :  { %v7948_v37 = vpop.eup %7008 }
 0x718   :  { %v6293_v29 = vpop.f32.mrb[16].mxu1 }
 0x719   :  { %v6294_v30 = vpop.f32.mrb[17].mxu1 }
 0x71a   :  { %v6295_v8 = vadd.f32 %v6294_v30, %v6293_v29  ;;  %v6296_v33 = vpop.f32.mrb[18].mxu1 }
 0x71b   :  { %v6297_v35 = vpop.f32.mrb[19].mxu1 }
 0x71c   :  { %v7946_v36 = vadd.f32 %v6295_v8, %v4221_v31 }
 0x71e   :  { %v4266_v39 = vpack.c.bf16 %v7946_v36, %v7946_v36  ;;  %v4769_v40 = vmul.f32 %v7948_v37, %v7946_v36 }
 0x720   :  { %v7954_v41 = vadd.f32 %v4769_v40, %v3640_v38  ;;  %6188 = vmatmul.mubr.msk.bf16.vlgmr.msra.gmra.mrb[20].mxu0 %vm3796_vm1, %v4266_v39  ;;  %6190 = vmatmul.mubr.msk.bf16.vlgmr.msra.gmra.mrb[20].mxu1 %vm3796_vm1, %v4266_v39 }
 0x721   :  { %6300 = vmatpush3.bf16.msra.mxu0 %v6957_v44  ;;  %6322 = vmatpush3.bf16.msra.mxu1 %v6959_v45 }
 0x722   :  { %6301 = vmatprep.subr.bf16.mxu0 %v6960_v46  ;;  %6323 = vmatprep.subr.bf16.mxu1 %v6962_v47 }
 0x725   :  { %6302 = vmatpush3.bf16.msra.mxu0 %v6961_v48  ;;  %6324 = vmatpush3.bf16.msra.mxu1 %v6963_v52 }
 0x726   :  { %6303 = vmatprep.subr.bf16.mxu0 %v6964_v55  ;;  %6325 = vmatprep.subr.bf16.mxu1 %v6966_v56  ;;  %v4772_v56 = vld [vmem:[#allocation21] sm:$0xf] }
 0x729   :  { %6304 = vmatpush3.bf16.msra.mxu0 %v6965_v57  ;;  %6326 = vmatpush3.bf16.msra.mxu1 %v6967_v58 }
 0x72a   :  { %6305 = vmatprep.subr.bf16.mxu0 %v6968_v59  ;;  %6327 = vmatprep.subr.bf16.mxu1 %v6970_v60 }
 0x72d   :  { %6306 = vmatpush3.bf16.msra.mxu0 %v6969_v61  ;;  %6328 = vmatpush3.bf16.msra.mxu1 %v6971_v62  ;;  %v4784_v62 = vsel %vm3800_vm0, %v4772_v56, 0 }
 0x72e   :  { %6307 = vmatprep.subr.bf16.mxu0 %v6972_v63  ;;  %6329 = vmatprep.subr.bf16.mxu1 %v6974_v0  ;;  %v4771_v0 = vpack.c.bf16 %v7954_v41, %v7954_v41 }
 0x731   :  { %6308 = vmatpush3.bf16.msra.mxu0 %v6973_v1  ;;  %6330 = vmatpush3.bf16.msra.mxu1 %v6975_v2 }
 0x732   :  { %6309 = vmatprep.subr.bf16.mxu0 %v6976_v3  ;;  %6331 = vmatprep.subr.bf16.mxu1 %v6978_v5  ;;  %v6195_v3 = vld [vmem:[#allocation19] ss:$0 sm:$0xff] }
 0x735   :  { %6310 = vmatpush3.bf16.msra.mxu0 %v6977_v4  ;;  %6332 = vmatpush3.bf16.msra.mxu1 %v6979_v6 }
 0x736   :  { %6311 = vmatprep.subr.bf16.mxu0 %v6980_v7  ;;  %6333 = vmatprep.subr.bf16.mxu1 %v6982_v9 }
 0x739   :  { %6312 = vmatpush3.bf16.msra.mxu0 %v6981_v10  ;;  %6334 = vmatpush3.bf16.msra.mxu1 %v6983_v11 }
 0x73a   :  { %6313 = vmatprep.subr.bf16.mxu0 %v6984_v12  ;;  %6335 = vmatprep.subr.bf16.mxu1 %v6986_v13 }
 0x73d   :  { %6314 = vmatpush3.bf16.msra.mxu0 %v6985_v14  ;;  %6336 = vmatpush3.bf16.msra.mxu1 %v6987_v15 }
 0x73e   :  { %6385 = vmatprep.subr.bf16.mxu0 %v7361_v19 }
 0x7f3   :  { %v4350_v22 = vpop.f32.mrb[20].mxu0  ;;  %v4391_v23 = vpop.f32.mrb[20].mxu1 }
 0x7f4   :  { %v4351_v24 = vadd.f32 %v4350_v22, %v4274_v17  ;;  %v4392_v25 = vadd.f32 %v4391_v23, %v4282_v18  ;;  %v4352_v26 = vpop.f32.mrb[21].mxu0  ;;  %v4393_v27 = vpop.f32.mrb[21].mxu1 }
 0x7f5   :  { %v4353_v28 = vadd.f32 %v4352_v26, %v4278_v20  ;;  %v4394_v29 = vadd.f32 %v4393_v27, %v4286_v21  ;;  %v4354_v30 = vpop.f32.mrb[22].mxu0  ;;  %v4395_v31 = vpop.f32.mrb[22].mxu1 }
 0x7f6   :  { %v6191_v8 = vmul.f32 -1.442695, %v4351_v24  ;;  %v6193_v33 = vmul.f32 -1.442695, %v4392_v25  ;;  %v4355_v34 = vpop.f32.mrb[23].mxu0  ;;  %v4396_v35 = vpop.f32.mrb[23].mxu1 }
 0x7f7   :  { %v6192_v38 = vmul.f32 -1.442695, %v4353_v28  ;;  %v6194_v39 = vmul.f32 -1.442695, %v4394_v29 }
 0x7f8   :  { %7010 = vpow2.f32 %v6191_v8 }
 0x7f9   :  { %7012 = vpow2.f32 %v6193_v33 }
 0x7fa   :  { %7014 = vpow2.f32 %v6192_v38 }
 0x7fb   :  { %7016 = vpow2.f32 %v6194_v39 }
 0x802   :  { %v7011_v40 = vpop.eup %7010 }
 0x803   :  { %v7013_v42 = vpop.eup %7012  ;;  %v4410_v43 = vadd.f32 1.0, %v7011_v40 }
 0x804   :  { %v7015_v44 = vpop.eup %7014  ;;  %v4412_v45 = vadd.f32 1.0, %v7013_v42 }
 0x805   :  { %v7017_v46 = vpop.eup %7016  ;;  %7018 = vrcp.f32 %v4410_v43  ;;  %v4411_v47 = vadd.f32 1.0, %v7015_v44 }
 0x806   :  { %7020 = vrcp.f32 %v4412_v45  ;;  %v4413_v48 = vadd.f32 1.0, %v7017_v46 }
 0x807   :  { %7022 = vrcp.f32 %v4411_v47 }
 0x808   :  { %7024 = vrcp.f32 %v4413_v48 }
 0x80f   :  { %v7019_v52 = vpop.eup %7018 }
 0x810   :  { %v7021_v55 = vpop.eup %7020  ;;  %v4422_v61 = vpack.c.bf16 %v7019_v52, %v7019_v52 }
 0x811   :  { %v7023_v57 = vpop.eup %7022  ;;  %v4424_v63 = vpack.c.bf16 %v7021_v55, %v7021_v55 }
 0x812   :  { %v7025_v58 = vpop.eup %7024  ;;  %v4423_v59 = vpack.c.bf16 %v7023_v57, %v7023_v57 }
 0x813   :  { %v4425_v60 = vpack.c.bf16 %v7025_v58, %v7025_v58 }
 0x814   :  { %4721 = vmatprep.mubr.bf16.mxu0 %v4423_v59 }
 0x815   :  { %4761 = vmatprep.mubr.bf16.mxu1 %v4425_v60  ;;  %4722 = vmatmul.mubr.bf16.vlgmr.msra.gmra.mrb[24].mxu0 %v4422_v61 }
 0x816   :  { %4762 = vmatmul.mubr.bf16.vlgmr.msra.gmra.mrb[24].mxu1 %v4424_v63  ;;  %6386 = vmatpush3.bf16.msra.mxu0 %v4784_v62 }
 0x817   :  { %6387 = vmatprep.mubr.msk.bf16.mxu0 %vm7362_vm2, %v7361_v19  ;;  %v6228_v19 = vld [vmem:[#allocation22] ss:$0 sm:$0xff] }
 0x81d   :  { %6388 = vmatmul.mubr.msk.bf16.vlgmr.msra.gmra.mrb[28].mxu0 %vm3796_vm1, %v4771_v0 }
 0x8e8   :  { %v6315_v1 = vpop.f32.mrb[24].mxu0 }
 0x8e9   :  { %v6337_v2 = vpop.f32.mrb[24].mxu1  ;;  %v6316_v4 = vpop.f32.mrb[25].mxu0 }
 0x8ea   :  { %v6317_v5 = vadd.f32 %v6316_v4, %v6315_v1  ;;  %v6338_v6 = vpop.f32.mrb[25].mxu1  ;;  %v6318_v7 = vpop.f32.mrb[26].mxu0 }
 0x8eb   :  { %v6339_v9 = vadd.f32 %v6338_v6, %v6337_v2  ;;  %v6340_v10 = vpop.f32.mrb[26].mxu1  ;;  %v6319_v11 = vpop.f32.mrb[27].mxu0 }
 0x8ec   :  { %v4724_v12 = vadd.f32 %v6317_v5, %v6195_v3  ;;  %v6341_v13 = vpop.f32.mrb[27].mxu1 }
 0x8ee   :  { %v8001_v14 = vadd.f32 %v6339_v9, %v4724_v12 }
 0x8f0   :  { %v4820_v15 = vpop.f32.mrb[28].mxu0 }
 0x8f1   :  { %v4821_v16 = vadd.f32 %v6228_v19, %v4820_v15  ;;  %v6389_v41 = vpop.f32.mrb[29].mxu0 }
 0x8f2   :  { %v4823_v17 = vpop.f32.mrb[30].mxu0 }
 0x8f3   :  { %7026 = vtanh.f32 %v4821_v16  ;;  %v6390_v18 = vpop.f32.mrb[31].mxu0 }
 0x8fd   :  { %v7027_v20 = vpop.eup %7026 }
 0x8fe   :  { %7298 = dma.done.wait [#allocation7 + $0x2], 2048 }
 0x8ff   :  { %7299 = vsyncadd [#allocation7 + $0x2], 4294965248  ;;  %4896 = vmatprep.mubr.bf16.mxu1 %v7360_v32  ;;  %v4837_v21 = vld [vmem:[#allocation4 + $0x8] sm:$0xff]  ;;  %v4836_v22 = vld [vmem:[#allocation4] sm:$0xff]  ;;  %s8107_s9 = sld [smem:[#allocation53_spill]]  ;;  %v4835_v38 = vpack.c.bf16 %v7027_v20, %v7027_v20 }
 0x900   :  { %v4839_v23 = vld [vmem:[#allocation4 + $0x18] sm:$0xff]  ;;  %4864 = vmatprep.subr.bf16.mxu1 %v4837_v21  ;;  %v4838_v24 = vld [vmem:[#allocation4 + $0x10] sm:$0xff]  ;;  %v4841_v25 = vld [vmem:[#allocation4 + $0x28] sm:$0xff] }
 0x901   :  { %4865 = vmatpush1.bf16.msra.mxu1 %v4836_v22  ;;  %v4840_v26 = vld [vmem:[#allocation4 + $0x20] sm:$0xff]  ;;  %v4843_v27 = vld [vmem:[#allocation4 + $0x38] sm:$0xff]  ;;  %v4842_v28 = vld [vmem:[#allocation4 + $0x30] sm:$0xff] }
 0x902   :  { %4866 = vmatprep.subr.bf16.mxu1 %v4839_v23  ;;  %v4845_v29 = vld [vmem:[#allocation4 + $0x48] sm:$0xff]  ;;  %v4844_v30 = vld [vmem:[#allocation4 + $0x40] sm:$0xff]  ;;  %v4847_v32 = vld [vmem:[#allocation4 + $0x58] sm:$0xff] }
 0x903   :  { %v4846_v31 = vld [vmem:[#allocation4 + $0x50] sm:$0xff]  ;;  %v4849_v8 = vld [vmem:[#allocation4 + $0x68] sm:$0xff]  ;;  %v4848_v33 = vld [vmem:[#allocation4 + $0x60] sm:$0xff] }
 0x904   :  { %v4851_v34 = vld [vmem:[#allocation4 + $0x78] sm:$0xff]  ;;  %v4850_v35 = vld [vmem:[#allocation4 + $0x70] sm:$0xff] }
 0x905   :  { %4867 = vmatpush1.bf16.msra.mxu1 %v4838_v24  ;;  %v4852_v39 = vld [vmem:[%s8107_s9] sm:$0x3] }
 0x906   :  { %4868 = vmatprep.subr.bf16.mxu1 %v4841_v25  ;;  %v4857_v40 = vrot.slane %v4852_v39, %v7816_v50  ;;  %v4861_v42 = vrot.slane %v4852_v39, %v7823_v53 }
 0x909   :  { %4869 = vmatpush1.bf16.msra.mxu1 %v4840_v26 }
 0x90a   :  { %4870 = vmatprep.subr.bf16.mxu1 %v4843_v27 }
 0x90d   :  { %4871 = vmatpush1.bf16.msra.mxu1 %v4842_v28 }
 0x90e   :  { %4872 = vmatprep.subr.bf16.mxu1 %v4845_v29 }
 0x911   :  { %4873 = vmatpush1.bf16.msra.mxu1 %v4844_v30 }
 0x912   :  { %4874 = vmatprep.subr.bf16.mxu1 %v4847_v32 }
 0x915   :  { %4875 = vmatpush1.bf16.msra.mxu1 %v4846_v31 }
 0x916   :  { %4876 = vmatprep.subr.bf16.mxu1 %v4849_v8 }
 0x919   :  { %4877 = vmatpush1.bf16.msra.mxu1 %v4848_v33 }
 0x91a   :  { %4878 = vmatprep.subr.bf16.mxu1 %v4851_v34 }
 0x91d   :  { %4879 = vmatpush1.bf16.msra.mxu1 %v4850_v35 }
 0x920   :  { %4897 = vmatmul.mubr.bf16.vlgmr.msra.gmra.mrb[28].mxu1 %v4835_v38 }
 0x9f3   :  { %v4898_v43 = vpop.f32.mrb[28].mxu1 }
 0x9f4   :  { %v4899_v44 = vadd.f32 %v4898_v43, %v4857_v40  ;;  %v4900_v45 = vpop.f32.mrb[29].mxu1 }
 0x9f5   :  { %v4901_v46 = vadd.f32 %v4900_v45, %v4861_v42  ;;  %v4902_v47 = vpop.f32.mrb[30].mxu1 }
 0x9f6   :  { %7028 = vtanh.f32 %v4899_v44  ;;  %v4903_v48 = vpop.f32.mrb[31].mxu1 }
 0x9f7   :  { %7030 = vtanh.f32 %v4901_v46 }
 0xa00   :  { %v8007_v52 = vpop.eup %7028 }
 0xa01   :  { %v7031_v55 = vpop.eup %7030 }
 0xa02   :  { %7300 = dma.done.wait [#allocation7 + $0x3], 8192 }
 0xa03   :  { %7301 = vsyncadd [#allocation7 + $0x3], 4294959104  ;;  %v4916_v56 = vpack.c.bf16 %v7031_v55, %v7031_v55  ;;  %v4918_v57 = vld [vmem:[#allocation5 + $0x8] sm:$0xff]  ;;  %v4920_v58 = vld [vmem:[#allocation5 + $0x18] sm:$0xff] }
 0xa04   :  { %v4917_v59 = vld [vmem:[#allocation5] sm:$0xff]  ;;  %5003 = vmatprep.subr.bf16.mxu0 %v4918_v57  ;;  %5044 = vmatprep.subr.bf16.mxu1 %v4920_v58  ;;  %v4919_v60 = vld [vmem:[#allocation5 + $0x10] sm:$0xff]  ;;  %v4922_v61 = vld [vmem:[#allocation5 + $0x28] sm:$0xff] }
 0xa05   :  { %5035 = vmatprep.mubr.bf16.mxu0 %v4916_v56  ;;  %5076 = vmatprep.mubr.bf16.mxu1 %v4916_v56  ;;  %v4924_v62 = vld [vmem:[#allocation5 + $0x38] sm:$0xff]  ;;  %v4921_v63 = vld [vmem:[#allocation5 + $0x20] sm:$0xff]  ;;  %v4923_v0 = vld [vmem:[#allocation5 + $0x30] sm:$0xff] }
 0xa06   :  { %5004 = vmatpush1.bf16.msra.mxu0 %v4917_v59  ;;  %5045 = vmatpush1.bf16.msra.mxu1 %v4919_v60  ;;  %v4926_v1 = vld [vmem:[#allocation5 + $0x48] sm:$0xff]  ;;  %v4928_v2 = vld [vmem:[#allocation5 + $0x58] sm:$0xff]  ;;  %v4925_v3 = vld [vmem:[#allocation5 + $0x40] sm:$0xff] }
 0xa07   :  { %5005 = vmatprep.subr.bf16.mxu0 %v4922_v61  ;;  %5046 = vmatprep.subr.bf16.mxu1 %v4924_v62  ;;  %v4927_v4 = vld [vmem:[#allocation5 + $0x50] sm:$0xff]  ;;  %v4930_v5 = vld [vmem:[#allocation5 + $0x68] sm:$0xff]  ;;  %v4932_v6 = vld [vmem:[#allocation5 + $0x78] sm:$0xff] }
 0xa08   :  { %v4929_v7 = vld [vmem:[#allocation5 + $0x60] sm:$0xff]  ;;  %v4931_v9 = vld [vmem:[#allocation5 + $0x70] sm:$0xff]  ;;  %v4934_v10 = vld [vmem:[#allocation5 + $0x88] sm:$0xff] }
 0xa09   :  { %v4936_v11 = vld [vmem:[#allocation5 + $0x98] sm:$0xff]  ;;  %v4933_v12 = vld [vmem:[#allocation5 + $0x80] sm:$0xff]  ;;  %v4935_v13 = vld [vmem:[#allocation5 + $0x90] sm:$0xff] }
 0xa0a   :  { %5006 = vmatpush1.bf16.msra.mxu0 %v4921_v63  ;;  %5047 = vmatpush1.bf16.msra.mxu1 %v4923_v0  ;;  %v4938_v19 = vld [vmem:[#allocation5 + $0xa8] sm:$0xff]  ;;  %v4940_v15 = vld [vmem:[#allocation5 + $0xb8] sm:$0xff]  ;;  %v4937_v16 = vld [vmem:[#allocation5 + $0xa0] sm:$0xff] }
 0xa0b   :  { %5007 = vmatprep.subr.bf16.mxu0 %v4926_v1  ;;  %5048 = vmatprep.subr.bf16.mxu1 %v4928_v2  ;;  %v4939_v41 = vld [vmem:[#allocation5 + $0xb0] sm:$0xff]  ;;  %v4942_v17 = vld [vmem:[#allocation5 + $0xc8] sm:$0xff]  ;;  %v4944_v18 = vld [vmem:[#allocation5 + $0xd8] sm:$0xff]  ;;  %v4915_v2 = vpack.c.bf16 %v8007_v52, %v8007_v52 }
 0xa0c   :  { %v4941_v20 = vld [vmem:[#allocation5 + $0xc0] sm:$0xff]  ;;  %v4943_v21 = vld [vmem:[#allocation5 + $0xd0] sm:$0xff]  ;;  %v4946_v22 = vld [vmem:[#allocation5 + $0xe8] sm:$0xff] }
 0xa0d   :  { %v4948_v23 = vld [vmem:[#allocation5 + $0xf8] sm:$0xff]  ;;  %v4945_v24 = vld [vmem:[#allocation5 + $0xe0] sm:$0xff]  ;;  %v4947_v25 = vld [vmem:[#allocation5 + $0xf0] sm:$0xff] }
 0xa0e   :  { %5008 = vmatpush1.bf16.msra.mxu0 %v4925_v3  ;;  %5049 = vmatpush1.bf16.msra.mxu1 %v4927_v4  ;;  %v4950_v26 = vld [vmem:[#allocation5 + $0x108] sm:$0xff]  ;;  %v4952_v27 = vld [vmem:[#allocation5 + $0x118] sm:$0xff]  ;;  %v4949_v28 = vld [vmem:[#allocation5 + $0x100] sm:$0xff] }
 0xa0f   :  { %5009 = vmatprep.subr.bf16.mxu0 %v4930_v5  ;;  %5050 = vmatprep.subr.bf16.mxu1 %v4932_v6  ;;  %v4951_v29 = vld [vmem:[#allocation5 + $0x110] sm:$0xff]  ;;  %v4954_v30 = vld [vmem:[#allocation5 + $0x128] sm:$0xff]  ;;  %v4956_v32 = vld [vmem:[#allocation5 + $0x138] sm:$0xff] }
 0xa10   :  { %v4953_v31 = vld [vmem:[#allocation5 + $0x120] sm:$0xff]  ;;  %v4955_v8 = vld [vmem:[#allocation5 + $0x130] sm:$0xff]  ;;  %v4958_v33 = vld [vmem:[#allocation5 + $0x148] sm:$0xff] }
 0xa11   :  { %v4960_v34 = vld [vmem:[#allocation5 + $0x158] sm:$0xff]  ;;  %v4957_v35 = vld [vmem:[#allocation5 + $0x140] sm:$0xff]  ;;  %v4959_v38 = vld [vmem:[#allocation5 + $0x150] sm:$0xff] }
 0xa12   :  { %5010 = vmatpush1.bf16.msra.mxu0 %v4929_v7  ;;  %5051 = vmatpush1.bf16.msra.mxu1 %v4931_v9  ;;  %v4962_v39 = vld [vmem:[#allocation5 + $0x168] sm:$0xff]  ;;  %v4964_v40 = vld [vmem:[#allocation5 + $0x178] sm:$0xff]  ;;  %v4961_v42 = vld [vmem:[#allocation5 + $0x160] sm:$0xff] }
 0xa13   :  { %5011 = vmatprep.subr.bf16.mxu0 %v4934_v10  ;;  %5052 = vmatprep.subr.bf16.mxu1 %v4936_v11  ;;  %v4963_v43 = vld [vmem:[#allocation5 + $0x170] sm:$0xff]  ;;  %v4966_v44 = vld [vmem:[#allocation5 + $0x188] sm:$0xff]  ;;  %v4968_v45 = vld [vmem:[#allocation5 + $0x198] sm:$0xff] }
 0xa14   :  { %v4965_v46 = vld [vmem:[#allocation5 + $0x180] sm:$0xff]  ;;  %v4967_v47 = vld [vmem:[#allocation5 + $0x190] sm:$0xff]  ;;  %v4970_v48 = vld [vmem:[#allocation5 + $0x1a8] sm:$0xff] }
 0xa15   :  { %v4972_v55 = vld [vmem:[#allocation5 + $0x1b8] sm:$0xff]  ;;  %v4969_v56 = vld [vmem:[#allocation5 + $0x1a0] sm:$0xff]  ;;  %v4971_v57 = vld [vmem:[#allocation5 + $0x1b0] sm:$0xff] }
 0xa16   :  { %5012 = vmatpush1.bf16.msra.mxu0 %v4933_v12  ;;  %5053 = vmatpush1.bf16.msra.mxu1 %v4935_v13  ;;  %v4974_v58 = vld [vmem:[#allocation5 + $0x1c8] sm:$0xff]  ;;  %v4976_v59 = vld [vmem:[#allocation5 + $0x1d8] sm:$0xff]  ;;  %v4973_v60 = vld [vmem:[#allocation5 + $0x1c0] sm:$0xff] }
 0xa17   :  { %5013 = vmatprep.subr.bf16.mxu0 %v4938_v19  ;;  %5054 = vmatprep.subr.bf16.mxu1 %v4940_v15  ;;  %v4975_v61 = vld [vmem:[#allocation5 + $0x1d0] sm:$0xff]  ;;  %v4978_v62 = vld [vmem:[#allocation5 + $0x1e8] sm:$0xff]  ;;  %v4980_v63 = vld [vmem:[#allocation5 + $0x1f8] sm:$0xff] }
 0xa18   :  { %v4977_v0 = vld [vmem:[#allocation5 + $0x1e0] sm:$0xff]  ;;  %v4979_v1 = vld [vmem:[#allocation5 + $0x1f0] sm:$0xff]  ;;  %v4981_v3 = vld [vmem:[#allocation24] sm:$0xf] }
 0xa19   :  { %v4986_v4 = vrot.slane %v4981_v3, %v7816_v50  ;;  %v4994_v5 = vrot.slane %v4981_v3, %v7819_v51  ;;  %v4990_v6 = vrot.slane %v4981_v3, %v7823_v53  ;;  %v4998_v7 = vrot.slane %v4981_v3, %v7826_v54 }
 0xa1a   :  { %5014 = vmatpush1.bf16.msra.mxu0 %v4937_v16  ;;  %5055 = vmatpush1.bf16.msra.mxu1 %v4939_v41 }
 0xa1b   :  { %5015 = vmatprep.subr.bf16.mxu0 %v4942_v17  ;;  %5056 = vmatprep.subr.bf16.mxu1 %v4944_v18 }
 0xa1e   :  { %5016 = vmatpush1.bf16.msra.mxu0 %v4941_v20  ;;  %5057 = vmatpush1.bf16.msra.mxu1 %v4943_v21 }
 0xa1f   :  { %5017 = vmatprep.subr.bf16.mxu0 %v4946_v22  ;;  %5058 = vmatprep.subr.bf16.mxu1 %v4948_v23 }
 0xa22   :  { %5018 = vmatpush1.bf16.msra.mxu0 %v4945_v24  ;;  %5059 = vmatpush1.bf16.msra.mxu1 %v4947_v25 }
 0xa23   :  { %5019 = vmatprep.subr.bf16.mxu0 %v4950_v26  ;;  %5060 = vmatprep.subr.bf16.mxu1 %v4952_v27 }
 0xa26   :  { %5020 = vmatpush1.bf16.msra.mxu0 %v4949_v28  ;;  %5061 = vmatpush1.bf16.msra.mxu1 %v4951_v29 }
 0xa27   :  { %5021 = vmatprep.subr.bf16.mxu0 %v4954_v30  ;;  %5062 = vmatprep.subr.bf16.mxu1 %v4956_v32 }
 0xa2a   :  { %5022 = vmatpush1.bf16.msra.mxu0 %v4953_v31  ;;  %5063 = vmatpush1.bf16.msra.mxu1 %v4955_v8 }
 0xa2b   :  { %5023 = vmatprep.subr.bf16.mxu0 %v4958_v33  ;;  %5064 = vmatprep.subr.bf16.mxu1 %v4960_v34 }
 0xa2e   :  { %5024 = vmatpush1.bf16.msra.mxu0 %v4957_v35  ;;  %5065 = vmatpush1.bf16.msra.mxu1 %v4959_v38 }
 0xa2f   :  { %5025 = vmatprep.subr.bf16.mxu0 %v4962_v39  ;;  %5066 = vmatprep.subr.bf16.mxu1 %v4964_v40 }
 0xa32   :  { %5026 = vmatpush1.bf16.msra.mxu0 %v4961_v42  ;;  %5067 = vmatpush1.bf16.msra.mxu1 %v4963_v43 }
 0xa33   :  { %5027 = vmatprep.subr.bf16.mxu0 %v4966_v44  ;;  %5068 = vmatprep.subr.bf16.mxu1 %v4968_v45 }
 0xa36   :  { %5028 = vmatpush1.bf16.msra.mxu0 %v4965_v46  ;;  %5069 = vmatpush1.bf16.msra.mxu1 %v4967_v47 }
 0xa37   :  { %5029 = vmatprep.subr.bf16.mxu0 %v4970_v48  ;;  %5070 = vmatprep.subr.bf16.mxu1 %v4972_v55 }
 0xa3a   :  { %5030 = vmatpush1.bf16.msra.mxu0 %v4969_v56  ;;  %5071 = vmatpush1.bf16.msra.mxu1 %v4971_v57 }
 0xa3b   :  { %5031 = vmatprep.subr.bf16.mxu0 %v4974_v58  ;;  %5072 = vmatprep.subr.bf16.mxu1 %v4976_v59 }
 0xa3e   :  { %5032 = vmatpush1.bf16.msra.mxu0 %v4973_v60  ;;  %5073 = vmatpush1.bf16.msra.mxu1 %v4975_v61 }
 0xa3f   :  { %5033 = vmatprep.subr.bf16.mxu0 %v4978_v62  ;;  %5074 = vmatprep.subr.bf16.mxu1 %v4980_v63 }
 0xa42   :  { %5034 = vmatpush1.bf16.msra.mxu0 %v4977_v0  ;;  %5075 = vmatpush1.bf16.msra.mxu1 %v4979_v1 }
 0xa45   :  { %5036 = vmatmul.mubr.bf16.vlgmr.msra.gmra.mrb[32].mxu0 %v4915_v2  ;;  %5077 = vmatmul.mubr.bf16.vlgmr.msra.gmra.mrb[32].mxu1 %v4915_v2 }
 0xb18   :  { %v5037_v9 = vpop.f32.mrb[32].mxu0  ;;  %v5078_v10 = vpop.f32.mrb[32].mxu1 }
 0xb19   :  { %v5038_v11 = vadd.f32 %v5037_v9, %v4986_v4  ;;  %v5079_v12 = vadd.f32 %v5078_v10, %v4994_v5  ;;  %v5039_v13 = vpop.f32.mrb[33].mxu0  ;;  %v5080_v19 = vpop.f32.mrb[33].mxu1 }
 0xb1a   :  { %v5040_v52 = vadd.f32 %v5039_v13, %v4990_v6  ;;  %v5081_v15 = vadd.f32 %v5080_v19, %v4998_v7  ;;  %v5041_v16 = vpop.f32.mrb[34].mxu0  ;;  %v5082_v41 = vpop.f32.mrb[34].mxu1 }
 0xb1b   :  { %7032 = vtanh.f32 %v5038_v11  ;;  %v5042_v17 = vpop.f32.mrb[35].mxu0  ;;  %v5083_v18 = vpop.f32.mrb[35].mxu1 }
 0xb1c   :  { %7034 = vtanh.f32 %v5079_v12 }
 0xb1d   :  { %7036 = vtanh.f32 %v5040_v52 }
 0xb1e   :  { %7038 = vtanh.f32 %v5081_v15 }
 0xb25   :  { %v8015_v20 = vpop.eup %7032 }
 0xb26   :  { %v8017_v21 = vpop.eup %7034 }
 0xb27   :  { %v7037_v22 = vpop.eup %7036 }
 0xb28   :  { %v8019_v23 = vpop.eup %7038 }
 0xb29   :  { %7302 = dma.done.wait [#allocation7 + $0x4], 32768 }
 0xb2a   :  { %7303 = vsyncadd [#allocation7 + $0x4], 4294934528  ;;  %v8021_v24 = vpack.c.bf16 %v7037_v22, %v7037_v22  ;;  %5735 = vst.msk [vmem:[%s7516_s5] sm:$0xff] %vm3796_vm1, %v7948_v37  ;;  %v5102_v25 = vld [vmem:[#allocation6 + $0x8] sm:$0xff]  ;;  %v5104_v26 = vld [vmem:[#allocation6 + $0x18] sm:$0xff] }
 0xb2b   :  { %6230 = vst.msk [vmem:[%s7516_s5 + $0x8] sm:$0xff] %vm3796_vm1, %v7946_v36  ;;  %6231 = vst.msk [vmem:[%s7516_s5 + $0x10] sm:$0xff] %vm3796_vm1, %v8001_v14  ;;  %v5101_v27 = vld [vmem:[#allocation6] sm:$0xff]  ;;  %5399 = vmatprep.subr.bf16.mxu0 %v5102_v25  ;;  %5481 = vmatprep.subr.bf16.mxu1 %v5104_v26  ;;  %v5103_v28 = vld [vmem:[#allocation6 + $0x10] sm:$0xff]  ;;  %s8108_s5 = sld [smem:[#allocation54_spill]] }
 0xb2c   :  { %5431 = vmatprep.mubr.bf16.mxu0 %v8021_v24  ;;  %5513 = vmatprep.mubr.bf16.mxu1 %v8021_v24  ;;  %v5110_v29 = vld [vmem:[#allocation6 + $0x48] sm:$0xff]  ;;  %v5112_v30 = vld [vmem:[#allocation6 + $0x58] sm:$0xff]  ;;  %v5109_v36 = vld [vmem:[#allocation6 + $0x40] sm:$0xff] }
 0xb2d   :  { %5400 = vmatpush1.bf16.msra.mxu0 %v5101_v27  ;;  %5482 = vmatpush1.bf16.msra.mxu1 %v5103_v28  ;;  %v5111_v37 = vld [vmem:[#allocation6 + $0x50] sm:$0xff]  ;;  %v5118_v32 = vld [vmem:[#allocation6 + $0x88] sm:$0xff]  ;;  %v5120_v14 = vld [vmem:[#allocation6 + $0x98] sm:$0xff] }
 0xb2e   :  { %5401 = vmatprep.subr.bf16.mxu0 %v5110_v29  ;;  %5483 = vmatprep.subr.bf16.mxu1 %v5112_v30  ;;  %v5117_v31 = vld [vmem:[#allocation6 + $0x80] sm:$0xff]  ;;  %v5119_v8 = vld [vmem:[#allocation6 + $0x90] sm:$0xff]  ;;  %v5126_v33 = vld [vmem:[#allocation6 + $0xc8] sm:$0xff] }
 0xb2f   :  { %v5128_v34 = vld [vmem:[#allocation6 + $0xd8] sm:$0xff]  ;;  %v5125_v35 = vld [vmem:[#allocation6 + $0xc0] sm:$0xff]  ;;  %v5127_v38 = vld [vmem:[#allocation6 + $0xd0] sm:$0xff] }
 0xb30   :  { %v5134_v39 = vld [vmem:[#allocation6 + $0x108] sm:$0xff]  ;;  %v5136_v40 = vld [vmem:[#allocation6 + $0x118] sm:$0xff]  ;;  %v5133_v42 = vld [vmem:[#allocation6 + $0x100] sm:$0xff] }
 0xb31   :  { %5402 = vmatpush1.bf16.msra.mxu0 %v5109_v36  ;;  %5484 = vmatpush1.bf16.msra.mxu1 %v5111_v37  ;;  %v5135_v43 = vld [vmem:[#allocation6 + $0x110] sm:$0xff]  ;;  %v5142_v44 = vld [vmem:[#allocation6 + $0x148] sm:$0xff]  ;;  %v5144_v45 = vld [vmem:[#allocation6 + $0x158] sm:$0xff] }
 0xb32   :  { %5403 = vmatprep.subr.bf16.mxu0 %v5118_v32  ;;  %5485 = vmatprep.subr.bf16.mxu1 %v5120_v14  ;;  %v5141_v46 = vld [vmem:[#allocation6 + $0x140] sm:$0xff]  ;;  %v5143_v47 = vld [vmem:[#allocation6 + $0x150] sm:$0xff]  ;;  %v5150_v48 = vld [vmem:[#allocation6 + $0x188] sm:$0xff] }
 0xb33   :  { %v5152_v55 = vld [vmem:[#allocation6 + $0x198] sm:$0xff]  ;;  %v5149_v56 = vld [vmem:[#allocation6 + $0x180] sm:$0xff]  ;;  %v5151_v57 = vld [vmem:[#allocation6 + $0x190] sm:$0xff] }
 0xb34   :  { %v5158_v58 = vld [vmem:[#allocation6 + $0x1c8] sm:$0xff]  ;;  %v5160_v59 = vld [vmem:[#allocation6 + $0x1d8] sm:$0xff]  ;;  %v5157_v60 = vld [vmem:[#allocation6 + $0x1c0] sm:$0xff] }
 0xb35   :  { %5404 = vmatpush1.bf16.msra.mxu0 %v5117_v31  ;;  %5486 = vmatpush1.bf16.msra.mxu1 %v5119_v8  ;;  %v5159_v61 = vld [vmem:[#allocation6 + $0x1d0] sm:$0xff]  ;;  %v5166_v62 = vld [vmem:[#allocation6 + $0x208] sm:$0xff]  ;;  %v5168_v63 = vld [vmem:[#allocation6 + $0x218] sm:$0xff]  ;;  %v8036_v8 = vpack.c.bf16 %v8015_v20, %v8015_v20 }
 0xb36   :  { %5405 = vmatprep.subr.bf16.mxu0 %v5126_v33  ;;  %5487 = vmatprep.subr.bf16.mxu1 %v5128_v34  ;;  %v5165_v0 = vld [vmem:[#allocation6 + $0x200] sm:$0xff]  ;;  %v5167_v1 = vld [vmem:[#allocation6 + $0x210] sm:$0xff]  ;;  %v5174_v2 = vld [vmem:[#allocation6 + $0x248] sm:$0xff] }
 0xb37   :  { %v5176_v3 = vld [vmem:[#allocation6 + $0x258] sm:$0xff]  ;;  %v5173_v4 = vld [vmem:[#allocation6 + $0x240] sm:$0xff]  ;;  %v5175_v5 = vld [vmem:[#allocation6 + $0x250] sm:$0xff] }
 0xb38   :  { %v5182_v6 = vld [vmem:[#allocation6 + $0x288] sm:$0xff]  ;;  %v5184_v7 = vld [vmem:[#allocation6 + $0x298] sm:$0xff]  ;;  %v5181_v9 = vld [vmem:[#allocation6 + $0x280] sm:$0xff] }
 0xb39   :  { %5406 = vmatpush1.bf16.msra.mxu0 %v5125_v35  ;;  %5488 = vmatpush1.bf16.msra.mxu1 %v5127_v38  ;;  %v5183_v10 = vld [vmem:[#allocation6 + $0x290] sm:$0xff]  ;;  %v5190_v11 = vld [vmem:[#allocation6 + $0x2c8] sm:$0xff]  ;;  %v5192_v12 = vld [vmem:[#allocation6 + $0x2d8] sm:$0xff] }
 0xb3a   :  { %5407 = vmatprep.subr.bf16.mxu0 %v5134_v39  ;;  %5489 = vmatprep.subr.bf16.mxu1 %v5136_v40  ;;  %v5189_v13 = vld [vmem:[#allocation6 + $0x2c0] sm:$0xff]  ;;  %v5191_v19 = vld [vmem:[#allocation6 + $0x2d0] sm:$0xff]  ;;  %v5198_v52 = vld [vmem:[#allocation6 + $0x308] sm:$0xff]  ;;  %v8040_v39 = vpack.c.bf16 %v8019_v23, %v8019_v23 }
 0xb3b   :  { %v5200_v15 = vld [vmem:[#allocation6 + $0x318] sm:$0xff]  ;;  %v5197_v16 = vld [vmem:[#allocation6 + $0x300] sm:$0xff]  ;;  %v5199_v41 = vld [vmem:[#allocation6 + $0x310] sm:$0xff] }
 0xb3c   :  { %v5206_v17 = vld [vmem:[#allocation6 + $0x348] sm:$0xff]  ;;  %v5208_v18 = vld [vmem:[#allocation6 + $0x358] sm:$0xff]  ;;  %v5205_v22 = vld [vmem:[#allocation6 + $0x340] sm:$0xff] }
 0xb3d   :  { %5408 = vmatpush1.bf16.msra.mxu0 %v5133_v42  ;;  %5490 = vmatpush1.bf16.msra.mxu1 %v5135_v43  ;;  %v5207_v25 = vld [vmem:[#allocation6 + $0x350] sm:$0xff]  ;;  %v5214_v26 = vld [vmem:[#allocation6 + $0x388] sm:$0xff]  ;;  %v5216_v27 = vld [vmem:[#allocation6 + $0x398] sm:$0xff] }
 0xb3e   :  { %5409 = vmatprep.subr.bf16.mxu0 %v5142_v44  ;;  %5491 = vmatprep.subr.bf16.mxu1 %v5144_v45  ;;  %v5213_v28 = vld [vmem:[#allocation6 + $0x380] sm:$0xff]  ;;  %v5215_v29 = vld [vmem:[#allocation6 + $0x390] sm:$0xff]  ;;  %v5222_v30 = vld [vmem:[#allocation6 + $0x3c8] sm:$0xff] }
 0xb3f   :  { %v5224_v36 = vld [vmem:[#allocation6 + $0x3d8] sm:$0xff]  ;;  %v5221_v37 = vld [vmem:[#allocation6 + $0x3c0] sm:$0xff]  ;;  %v5223_v32 = vld [vmem:[#allocation6 + $0x3d0] sm:$0xff] }
 0xb40   :  { %v5230_v14 = vld [vmem:[#allocation6 + $0x408] sm:$0xff]  ;;  %v5232_v31 = vld [vmem:[#allocation6 + $0x418] sm:$0xff]  ;;  %v5229_v33 = vld [vmem:[#allocation6 + $0x400] sm:$0xff] }
 0xb41   :  { %5410 = vmatpush1.bf16.msra.mxu0 %v5141_v46  ;;  %5492 = vmatpush1.bf16.msra.mxu1 %v5143_v47  ;;  %v5231_v34 = vld [vmem:[#allocation6 + $0x410] sm:$0xff]  ;;  %v5238_v35 = vld [vmem:[#allocation6 + $0x448] sm:$0xff]  ;;  %v5240_v38 = vld [vmem:[#allocation6 + $0x458] sm:$0xff] }
 0xb42   :  { %5411 = vmatprep.subr.bf16.mxu0 %v5150_v48  ;;  %5493 = vmatprep.subr.bf16.mxu1 %v5152_v55  ;;  %v5237_v20 = vld [vmem:[#allocation6 + $0x440] sm:$0xff]  ;;  %v5239_v40 = vld [vmem:[#allocation6 + $0x450] sm:$0xff]  ;;  %v5246_v42 = vld [vmem:[#allocation6 + $0x488] sm:$0xff] }
 0xb43   :  { %v5248_v43 = vld [vmem:[#allocation6 + $0x498] sm:$0xff]  ;;  %v5245_v23 = vld [vmem:[#allocation6 + $0x480] sm:$0xff]  ;;  %v5247_v44 = vld [vmem:[#allocation6 + $0x490] sm:$0xff] }
 0xb44   :  { %v5254_v45 = vld [vmem:[#allocation6 + $0x4c8] sm:$0xff]  ;;  %v5256_v46 = vld [vmem:[#allocation6 + $0x4d8] sm:$0xff]  ;;  %v5253_v47 = vld [vmem:[#allocation6 + $0x4c0] sm:$0xff] }
 0xb45   :  { %5412 = vmatpush1.bf16.msra.mxu0 %v5149_v56  ;;  %5494 = vmatpush1.bf16.msra.mxu1 %v5151_v57  ;;  %v5255_v48 = vld [vmem:[#allocation6 + $0x4d0] sm:$0xff]  ;;  %v5262_v55 = vld [vmem:[#allocation6 + $0x508] sm:$0xff]  ;;  %v5264_v56 = vld [vmem:[#allocation6 + $0x518] sm:$0xff] }
 0xb46   :  { %5413 = vmatprep.subr.bf16.mxu0 %v5158_v58  ;;  %5495 = vmatprep.subr.bf16.mxu1 %v5160_v59  ;;  %v5261_v57 = vld [vmem:[#allocation6 + $0x500] sm:$0xff]  ;;  %v5263_v58 = vld [vmem:[#allocation6 + $0x510] sm:$0xff]  ;;  %v5270_v59 = vld [vmem:[#allocation6 + $0x548] sm:$0xff] }
 0xb49   :  { %5414 = vmatpush1.bf16.msra.mxu0 %v5157_v60  ;;  %5496 = vmatpush1.bf16.msra.mxu1 %v5159_v61  ;;  %v5272_v60 = vld [vmem:[#allocation6 + $0x558] sm:$0xff]  ;;  %v5269_v61 = vld [vmem:[#allocation6 + $0x540] sm:$0xff] }
 0xb4a   :  { %5415 = vmatprep.subr.bf16.mxu0 %v5166_v62  ;;  %5497 = vmatprep.subr.bf16.mxu1 %v5168_v63  ;;  %v5271_v62 = vld [vmem:[#allocation6 + $0x550] sm:$0xff]  ;;  %v5278_v63 = vld [vmem:[#allocation6 + $0x588] sm:$0xff] }
 0xb4d   :  { %5416 = vmatpush1.bf16.msra.mxu0 %v5165_v0  ;;  %5498 = vmatpush1.bf16.msra.mxu1 %v5167_v1  ;;  %v5280_v0 = vld [vmem:[#allocation6 + $0x598] sm:$0xff]  ;;  %v5277_v1 = vld [vmem:[#allocation6 + $0x580] sm:$0xff] }
 0xb4e   :  { %5417 = vmatprep.subr.bf16.mxu0 %v5174_v2  ;;  %5499 = vmatprep.subr.bf16.mxu1 %v5176_v3  ;;  %v5279_v2 = vld [vmem:[#allocation6 + $0x590] sm:$0xff]  ;;  %v5286_v3 = vld [vmem:[#allocation6 + $0x5c8] sm:$0xff] }
 0xb51   :  { %5418 = vmatpush1.bf16.msra.mxu0 %v5173_v4  ;;  %5500 = vmatpush1.bf16.msra.mxu1 %v5175_v5  ;;  %v5288_v4 = vld [vmem:[#allocation6 + $0x5d8] sm:$0xff]  ;;  %v5285_v5 = vld [vmem:[#allocation6 + $0x5c0] sm:$0xff] }
 0xb52   :  { %5419 = vmatprep.subr.bf16.mxu0 %v5182_v6  ;;  %5501 = vmatprep.subr.bf16.mxu1 %v5184_v7  ;;  %v5287_v6 = vld [vmem:[#allocation6 + $0x5d0] sm:$0xff]  ;;  %v5294_v7 = vld [vmem:[#allocation6 + $0x608] sm:$0xff] }
 0xb55   :  { %5420 = vmatpush1.bf16.msra.mxu0 %v5181_v9  ;;  %5502 = vmatpush1.bf16.msra.mxu1 %v5183_v10  ;;  %v5296_v9 = vld [vmem:[#allocation6 + $0x618] sm:$0xff]  ;;  %v5293_v10 = vld [vmem:[#allocation6 + $0x600] sm:$0xff] }
 0xb56   :  { %5421 = vmatprep.subr.bf16.mxu0 %v5190_v11  ;;  %5503 = vmatprep.subr.bf16.mxu1 %v5192_v12  ;;  %v5295_v11 = vld [vmem:[#allocation6 + $0x610] sm:$0xff]  ;;  %v5302_v12 = vld [vmem:[#allocation6 + $0x648] sm:$0xff] }
 0xb59   :  { %5422 = vmatpush1.bf16.msra.mxu0 %v5189_v13  ;;  %5504 = vmatpush1.bf16.msra.mxu1 %v5191_v19  ;;  %v5304_v13 = vld [vmem:[#allocation6 + $0x658] sm:$0xff]  ;;  %v5301_v19 = vld [vmem:[#allocation6 + $0x640] sm:$0xff] }
 0xb5a   :  { %5423 = vmatprep.subr.bf16.mxu0 %v5198_v52  ;;  %5505 = vmatprep.subr.bf16.mxu1 %v5200_v15  ;;  %v5303_v52 = vld [vmem:[#allocation6 + $0x650] sm:$0xff]  ;;  %v5310_v15 = vld [vmem:[#allocation6 + $0x688] sm:$0xff] }
 0xb5d   :  { %5424 = vmatpush1.bf16.msra.mxu0 %v5197_v16  ;;  %5506 = vmatpush1.bf16.msra.mxu1 %v5199_v41  ;;  %v5312_v16 = vld [vmem:[#allocation6 + $0x698] sm:$0xff]  ;;  %v5309_v41 = vld [vmem:[#allocation6 + $0x680] sm:$0xff] }
 0xb5e   :  { %5425 = vmatprep.subr.bf16.mxu0 %v5206_v17  ;;  %5507 = vmatprep.subr.bf16.mxu1 %v5208_v18  ;;  %v5311_v17 = vld [vmem:[#allocation6 + $0x690] sm:$0xff]  ;;  %v5318_v18 = vld [vmem:[#allocation6 + $0x6c8] sm:$0xff] }
 0xb61   :  { %5426 = vmatpush1.bf16.msra.mxu0 %v5205_v22  ;;  %5508 = vmatpush1.bf16.msra.mxu1 %v5207_v25  ;;  %v5320_v22 = vld [vmem:[#allocation6 + $0x6d8] sm:$0xff]  ;;  %v5317_v25 = vld [vmem:[#allocation6 + $0x6c0] sm:$0xff] }
 0xb62   :  { %5427 = vmatprep.subr.bf16.mxu0 %v5214_v26  ;;  %5509 = vmatprep.subr.bf16.mxu1 %v5216_v27  ;;  %v5319_v26 = vld [vmem:[#allocation6 + $0x6d0] sm:$0xff]  ;;  %v5326_v27 = vld [vmem:[#allocation6 + $0x708] sm:$0xff] }
 0xb65   :  { %5428 = vmatpush1.bf16.msra.mxu0 %v5213_v28  ;;  %5510 = vmatpush1.bf16.msra.mxu1 %v5215_v29  ;;  %v5328_v28 = vld [vmem:[#allocation6 + $0x718] sm:$0xff]  ;;  %v5325_v29 = vld [vmem:[#allocation6 + $0x700] sm:$0xff] }
 0xb66   :  { %5429 = vmatprep.subr.bf16.mxu0 %v5222_v30  ;;  %5511 = vmatprep.subr.bf16.mxu1 %v5224_v36  ;;  %v5327_v30 = vld [vmem:[#allocation6 + $0x710] sm:$0xff]  ;;  %v5334_v36 = vld [vmem:[#allocation6 + $0x748] sm:$0xff] }
 0xb69   :  { %5430 = vmatpush1.bf16.msra.mxu0 %v5221_v37  ;;  %5512 = vmatpush1.bf16.msra.mxu1 %v5223_v32  ;;  %v5336_v37 = vld [vmem:[#allocation6 + $0x758] sm:$0xff]  ;;  %v5333_v32 = vld [vmem:[#allocation6 + $0x740] sm:$0xff] }
 0xb6a   :  { %5440 = vmatprep.subr.bf16.mxu0 %v5230_v14  ;;  %5522 = vmatprep.subr.bf16.mxu1 %v5232_v31  ;;  %v5335_v14 = vld [vmem:[#allocation6 + $0x750] sm:$0xff]  ;;  %v5342_v31 = vld [vmem:[#allocation6 + $0x788] sm:$0xff] }
 0xb6c   :  { %5432 = vmatmul.mubr.bf16.vlgmr.msra.gmra.mrb[36].mxu0 %v8036_v8  ;;  %5514 = vmatmul.mubr.bf16.vlgmr.msra.gmra.mrb[36].mxu1 %v8036_v8 }
 0xb6d   :  { %5441 = vmatpush1.bf16.msra.mxu0 %v5229_v33  ;;  %5523 = vmatpush1.bf16.msra.mxu1 %v5231_v34  ;;  %v5344_v33 = vld [vmem:[#allocation6 + $0x798] sm:$0xff]  ;;  %v5341_v34 = vld [vmem:[#allocation6 + $0x780] sm:$0xff] }
 0xb6e   :  { %5442 = vmatprep.subr.bf16.mxu0 %v5238_v35  ;;  %5524 = vmatprep.subr.bf16.mxu1 %v5240_v38  ;;  %v5343_v35 = vld [vmem:[#allocation6 + $0x790] sm:$0xff]  ;;  %v5350_v38 = vld [vmem:[#allocation6 + $0x7c8] sm:$0xff] }
 0xb6f   :  { %5472 = vmatprep.mubr.bf16.mxu0 %v8040_v39  ;;  %5554 = vmatprep.mubr.bf16.mxu1 %v8040_v39 }
 0xb71   :  { %5443 = vmatpush1.bf16.msra.mxu0 %v5237_v20  ;;  %5525 = vmatpush1.bf16.msra.mxu1 %v5239_v40  ;;  %v5352_v20 = vld [vmem:[#allocation6 + $0x7d8] sm:$0xff]  ;;  %v5349_v40 = vld [vmem:[#allocation6 + $0x7c0] sm:$0xff] }
 0xb72   :  { %5444 = vmatprep.subr.bf16.mxu0 %v5246_v42  ;;  %5526 = vmatprep.subr.bf16.mxu1 %v5248_v43  ;;  %v5351_v42 = vld [vmem:[#allocation6 + $0x7d0] sm:$0xff]  ;;  %v5106_v43 = vld [vmem:[#allocation6 + $0x28] sm:$0xff] }
 0xb75   :  { %5445 = vmatpush1.bf16.msra.mxu0 %v5245_v23  ;;  %5527 = vmatpush1.bf16.msra.mxu1 %v5247_v44  ;;  %v5108_v23 = vld [vmem:[#allocation6 + $0x38] sm:$0xff]  ;;  %v8048_v44 = vpack.c.bf16 %v8017_v21, %v8017_v21  ;;  %v5122_v21 = vld [vmem:[#allocation6 + $0xa8] sm:$0xff] }
 0xb76   :  { %5446 = vmatprep.subr.bf16.mxu0 %v5254_v45  ;;  %5528 = vmatprep.subr.bf16.mxu1 %v5256_v46  ;;  %v5105_v45 = vld [vmem:[#allocation6 + $0x20] sm:$0xff]  ;;  %v5107_v46 = vld [vmem:[#allocation6 + $0x30] sm:$0xff] }
 0xb79   :  { %5447 = vmatpush1.bf16.msra.mxu0 %v5253_v47  ;;  %5529 = vmatpush1.bf16.msra.mxu1 %v5255_v48  ;;  %v5114_v47 = vld [vmem:[#allocation6 + $0x68] sm:$0xff]  ;;  %v5116_v48 = vld [vmem:[#allocation6 + $0x78] sm:$0xff] }
 0xb7a   :  { %5448 = vmatprep.subr.bf16.mxu0 %v5262_v55  ;;  %5530 = vmatprep.subr.bf16.mxu1 %v5264_v56  ;;  %v5113_v55 = vld [vmem:[#allocation6 + $0x60] sm:$0xff]  ;;  %v5115_v56 = vld [vmem:[#allocation6 + $0x70] sm:$0xff] }
 0xb7d   :  { %5449 = vmatpush1.bf16.msra.mxu0 %v5261_v57  ;;  %5531 = vmatpush1.bf16.msra.mxu1 %v5263_v58  ;;  %v5124_v57 = vld [vmem:[#allocation6 + $0xb8] sm:$0xff]  ;;  %v5121_v58 = vld [vmem:[#allocation6 + $0xa0] sm:$0xff] }
 0xb7e   :  { %5450 = vmatprep.subr.bf16.mxu0 %v5270_v59  ;;  %5532 = vmatprep.subr.bf16.mxu1 %v5272_v60  ;;  %v5123_v59 = vld [vmem:[#allocation6 + $0xb0] sm:$0xff]  ;;  %v5130_v60 = vld [vmem:[#allocation6 + $0xe8] sm:$0xff] }
 0xb81   :  { %5451 = vmatpush1.bf16.msra.mxu0 %v5269_v61  ;;  %5533 = vmatpush1.bf16.msra.mxu1 %v5271_v62  ;;  %v5132_v61 = vld [vmem:[#allocation6 + $0xf8] sm:$0xff]  ;;  %v5129_v62 = vld [vmem:[#allocation6 + $0xe0] sm:$0xff] }
 0xb82   :  { %5452 = vmatprep.subr.bf16.mxu0 %v5278_v63  ;;  %5534 = vmatprep.subr.bf16.mxu1 %v5280_v0  ;;  %v5131_v63 = vld [vmem:[#allocation6 + $0xf0] sm:$0xff]  ;;  %v5138_v0 = vld [vmem:[#allocation6 + $0x128] sm:$0xff] }
 0xb85   :  { %5453 = vmatpush1.bf16.msra.mxu0 %v5277_v1  ;;  %5535 = vmatpush1.bf16.msra.mxu1 %v5279_v2  ;;  %v5140_v1 = vld [vmem:[#allocation6 + $0x138] sm:$0xff]  ;;  %v5139_v2 = vld [vmem:[#allocation6 + $0x130] sm:$0xff] }
 0xb86   :  { %5454 = vmatprep.subr.bf16.mxu0 %v5286_v3  ;;  %5536 = vmatprep.subr.bf16.mxu1 %v5288_v4  ;;  %v5146_v3 = vld [vmem:[#allocation6 + $0x168] sm:$0xff]  ;;  %v5148_v4 = vld [vmem:[#allocation6 + $0x178] sm:$0xff] }
 0xb89   :  { %5455 = vmatpush1.bf16.msra.mxu0 %v5285_v5  ;;  %5537 = vmatpush1.bf16.msra.mxu1 %v5287_v6  ;;  %v5145_v5 = vld [vmem:[#allocation6 + $0x160] sm:$0xff]  ;;  %v5147_v6 = vld [vmem:[#allocation6 + $0x170] sm:$0xff] }
 0xb8a   :  { %5456 = vmatprep.subr.bf16.mxu0 %v5294_v7  ;;  %5538 = vmatprep.subr.bf16.mxu1 %v5296_v9  ;;  %v5154_v7 = vld [vmem:[#allocation6 + $0x1a8] sm:$0xff]  ;;  %v5156_v9 = vld [vmem:[#allocation6 + $0x1b8] sm:$0xff] }
 0xb8d   :  { %5457 = vmatpush1.bf16.msra.mxu0 %v5293_v10  ;;  %5539 = vmatpush1.bf16.msra.mxu1 %v5295_v11  ;;  %v5153_v10 = vld [vmem:[#allocation6 + $0x1a0] sm:$0xff]  ;;  %v5155_v11 = vld [vmem:[#allocation6 + $0x1b0] sm:$0xff] }
 0xb8e   :  { %5458 = vmatprep.subr.bf16.mxu0 %v5302_v12  ;;  %5540 = vmatprep.subr.bf16.mxu1 %v5304_v13  ;;  %v5162_v12 = vld [vmem:[#allocation6 + $0x1e8] sm:$0xff]  ;;  %v5164_v13 = vld [vmem:[#allocation6 + $0x1f8] sm:$0xff] }
 0xb91   :  { %5459 = vmatpush1.bf16.msra.mxu0 %v5301_v19  ;;  %5541 = vmatpush1.bf16.msra.mxu1 %v5303_v52  ;;  %v5161_v19 = vld [vmem:[#allocation6 + $0x1e0] sm:$0xff]  ;;  %v5163_v52 = vld [vmem:[#allocation6 + $0x1f0] sm:$0xff] }
 0xb92   :  { %5460 = vmatprep.subr.bf16.mxu0 %v5310_v15  ;;  %5542 = vmatprep.subr.bf16.mxu1 %v5312_v16  ;;  %v5170_v15 = vld [vmem:[#allocation6 + $0x228] sm:$0xff]  ;;  %v5172_v16 = vld [vmem:[#allocation6 + $0x238] sm:$0xff] }
 0xb95   :  { %5461 = vmatpush1.bf16.msra.mxu0 %v5309_v41  ;;  %5543 = vmatpush1.bf16.msra.mxu1 %v5311_v17  ;;  %v5169_v41 = vld [vmem:[#allocation6 + $0x220] sm:$0xff]  ;;  %v5171_v17 = vld [vmem:[#allocation6 + $0x230] sm:$0xff] }
 0xb96   :  { %5462 = vmatprep.subr.bf16.mxu0 %v5318_v18  ;;  %5544 = vmatprep.subr.bf16.mxu1 %v5320_v22  ;;  %v5178_v18 = vld [vmem:[#allocation6 + $0x268] sm:$0xff]  ;;  %v5180_v22 = vld [vmem:[#allocation6 + $0x278] sm:$0xff] }
 0xb99   :  { %5463 = vmatpush1.bf16.msra.mxu0 %v5317_v25  ;;  %5545 = vmatpush1.bf16.msra.mxu1 %v5319_v26  ;;  %v5177_v25 = vld [vmem:[#allocation6 + $0x260] sm:$0xff]  ;;  %v5179_v26 = vld [vmem:[#allocation6 + $0x270] sm:$0xff] }
 0xb9a   :  { %5464 = vmatprep.subr.bf16.mxu0 %v5326_v27  ;;  %5546 = vmatprep.subr.bf16.mxu1 %v5328_v28  ;;  %v5186_v27 = vld [vmem:[#allocation6 + $0x2a8] sm:$0xff]  ;;  %v5188_v28 = vld [vmem:[#allocation6 + $0x2b8] sm:$0xff] }
 0xb9d   :  { %5465 = vmatpush1.bf16.msra.mxu0 %v5325_v29  ;;  %5547 = vmatpush1.bf16.msra.mxu1 %v5327_v30  ;;  %v5185_v29 = vld [vmem:[#allocation6 + $0x2a0] sm:$0xff]  ;;  %v5187_v30 = vld [vmem:[#allocation6 + $0x2b0] sm:$0xff] }
 0xb9e   :  { %5466 = vmatprep.subr.bf16.mxu0 %v5334_v36  ;;  %5548 = vmatprep.subr.bf16.mxu1 %v5336_v37  ;;  %v5194_v36 = vld [vmem:[#allocation6 + $0x2e8] sm:$0xff]  ;;  %v5196_v37 = vld [vmem:[#allocation6 + $0x2f8] sm:$0xff] }
 0xba1   :  { %5467 = vmatpush1.bf16.msra.mxu0 %v5333_v32  ;;  %5549 = vmatpush1.bf16.msra.mxu1 %v5335_v14  ;;  %v5193_v32 = vld [vmem:[#allocation6 + $0x2e0] sm:$0xff]  ;;  %v5195_v14 = vld [vmem:[#allocation6 + $0x2f0] sm:$0xff] }
 0xba2   :  { %5468 = vmatprep.subr.bf16.mxu0 %v5342_v31  ;;  %5550 = vmatprep.subr.bf16.mxu1 %v5344_v33  ;;  %v5202_v31 = vld [vmem:[#allocation6 + $0x328] sm:$0xff]  ;;  %v5204_v33 = vld [vmem:[#allocation6 + $0x338] sm:$0xff] }
 0xba5   :  { %5469 = vmatpush1.bf16.msra.mxu0 %v5341_v34  ;;  %5551 = vmatpush1.bf16.msra.mxu1 %v5343_v35  ;;  %v5201_v34 = vld [vmem:[#allocation6 + $0x320] sm:$0xff]  ;;  %v5203_v35 = vld [vmem:[#allocation6 + $0x330] sm:$0xff] }
 0xba6   :  { %5470 = vmatprep.subr.bf16.mxu0 %v5350_v38  ;;  %5552 = vmatprep.subr.bf16.mxu1 %v5352_v20  ;;  %v5210_v38 = vld [vmem:[#allocation6 + $0x368] sm:$0xff]  ;;  %v5212_v20 = vld [vmem:[#allocation6 + $0x378] sm:$0xff] }
 0xba9   :  { %5471 = vmatpush1.bf16.msra.mxu0 %v5349_v40  ;;  %5553 = vmatpush1.bf16.msra.mxu1 %v5351_v42  ;;  %v5209_v40 = vld [vmem:[#allocation6 + $0x360] sm:$0xff]  ;;  %v5211_v42 = vld [vmem:[#allocation6 + $0x370] sm:$0xff] }
 0xbaa   :  { %5563 = vmatprep.subr.bf16.mxu0 %v5106_v43  ;;  %5645 = vmatprep.subr.bf16.mxu1 %v5108_v23  ;;  %v5218_v43 = vld [vmem:[#allocation6 + $0x3a8] sm:$0xff]  ;;  %v5220_v23 = vld [vmem:[#allocation6 + $0x3b8] sm:$0xff] }
 0xbac   :  { %5473 = vmatmul.mubr.bf16.vlgmr.msra.gmra.mrb[36].mxu0 %v8048_v44  ;;  %5555 = vmatmul.mubr.bf16.vlgmr.msra.gmra.mrb[36].mxu1 %v8048_v44 }
 0xbad   :  { %5564 = vmatpush1.bf16.msra.mxu0 %v5105_v45  ;;  %5646 = vmatpush1.bf16.msra.mxu1 %v5107_v46  ;;  %v5217_v45 = vld [vmem:[#allocation6 + $0x3a0] sm:$0xff]  ;;  %v5219_v46 = vld [vmem:[#allocation6 + $0x3b0] sm:$0xff] }
 0xbae   :  { %5565 = vmatprep.subr.bf16.mxu0 %v5114_v47  ;;  %5647 = vmatprep.subr.bf16.mxu1 %v5116_v48  ;;  %v5226_v47 = vld [vmem:[#allocation6 + $0x3e8] sm:$0xff]  ;;  %v5228_v48 = vld [vmem:[#allocation6 + $0x3f8] sm:$0xff] }
 0xbaf   :  { %5595 = vmatprep.mubr.bf16.mxu0 %v8021_v24  ;;  %5677 = vmatprep.mubr.bf16.mxu1 %v8021_v24  ;;  %v5137_v24 = vld [vmem:[#allocation6 + $0x120] sm:$0xff] }
 0xbb1   :  { %5566 = vmatpush1.bf16.msra.mxu0 %v5113_v55  ;;  %5648 = vmatpush1.bf16.msra.mxu1 %v5115_v56  ;;  %v5225_v55 = vld [vmem:[#allocation6 + $0x3e0] sm:$0xff]  ;;  %v5227_v56 = vld [vmem:[#allocation6 + $0x3f0] sm:$0xff] }
 0xbb2   :  { %5567 = vmatprep.subr.bf16.mxu0 %v5122_v21  ;;  %5649 = vmatprep.subr.bf16.mxu1 %v5124_v57  ;;  %v5234_v21 = vld [vmem:[#allocation6 + $0x428] sm:$0xff]  ;;  %v5236_v57 = vld [vmem:[#allocation6 + $0x438] sm:$0xff] }
 0xbb5   :  { %5568 = vmatpush1.bf16.msra.mxu0 %v5121_v58  ;;  %5650 = vmatpush1.bf16.msra.mxu1 %v5123_v59  ;;  %v5233_v58 = vld [vmem:[#allocation6 + $0x420] sm:$0xff]  ;;  %v5235_v59 = vld [vmem:[#allocation6 + $0x430] sm:$0xff] }
 0xbb6   :  { %5569 = vmatprep.subr.bf16.mxu0 %v5130_v60  ;;  %5651 = vmatprep.subr.bf16.mxu1 %v5132_v61  ;;  %v5242_v60 = vld [vmem:[#allocation6 + $0x468] sm:$0xff]  ;;  %v5244_v61 = vld [vmem:[#allocation6 + $0x478] sm:$0xff] }
 0xbb9   :  { %5570 = vmatpush1.bf16.msra.mxu0 %v5129_v62  ;;  %5652 = vmatpush1.bf16.msra.mxu1 %v5131_v63  ;;  %v5241_v62 = vld [vmem:[#allocation6 + $0x460] sm:$0xff]  ;;  %v5243_v63 = vld [vmem:[#allocation6 + $0x470] sm:$0xff] }
 0xbba   :  { %5571 = vmatprep.subr.bf16.mxu0 %v5138_v0  ;;  %5653 = vmatprep.subr.bf16.mxu1 %v5140_v1  ;;  %v5250_v0 = vld [vmem:[#allocation6 + $0x4a8] sm:$0xff]  ;;  %v5252_v1 = vld [vmem:[#allocation6 + $0x4b8] sm:$0xff] }
 0xbbd   :  { %5572 = vmatpush1.bf16.msra.mxu0 %v5137_v24  ;;  %5654 = vmatpush1.bf16.msra.mxu1 %v5139_v2  ;;  %v5249_v24 = vld [vmem:[#allocation6 + $0x4a0] sm:$0xff]  ;;  %v5251_v2 = vld [vmem:[#allocation6 + $0x4b0] sm:$0xff] }
 0xbbe   :  { %5573 = vmatprep.subr.bf16.mxu0 %v5146_v3  ;;  %5655 = vmatprep.subr.bf16.mxu1 %v5148_v4  ;;  %v5258_v3 = vld [vmem:[#allocation6 + $0x4e8] sm:$0xff]  ;;  %v5257_v4 = vld [vmem:[#allocation6 + $0x4e0] sm:$0xff] }
 0xbc1   :  { %5574 = vmatpush1.bf16.msra.mxu0 %v5145_v5  ;;  %5656 = vmatpush1.bf16.msra.mxu1 %v5147_v6  ;;  %v5259_v5 = vld [vmem:[#allocation6 + $0x4f0] sm:$0xff]  ;;  %v5266_v6 = vld [vmem:[#allocation6 + $0x528] sm:$0xff] }
 0xbc2   :  { %5575 = vmatprep.subr.bf16.mxu0 %v5154_v7  ;;  %5657 = vmatprep.subr.bf16.mxu1 %v5156_v9  ;;  %v5268_v7 = vld [vmem:[#allocation6 + $0x538] sm:$0xff]  ;;  %v5267_v9 = vld [vmem:[#allocation6 + $0x530] sm:$0xff] }
 0xbc5   :  { %5576 = vmatpush1.bf16.msra.mxu0 %v5153_v10  ;;  %5658 = vmatpush1.bf16.msra.mxu1 %v5155_v11  ;;  %v5274_v10 = vld [vmem:[#allocation6 + $0x568] sm:$0xff]  ;;  %v5276_v11 = vld [vmem:[#allocation6 + $0x578] sm:$0xff] }
 0xbc6   :  { %5577 = vmatprep.subr.bf16.mxu0 %v5162_v12  ;;  %5659 = vmatprep.subr.bf16.mxu1 %v5164_v13  ;;  %v5273_v12 = vld [vmem:[#allocation6 + $0x560] sm:$0xff]  ;;  %v5275_v13 = vld [vmem:[#allocation6 + $0x570] sm:$0xff] }
 0xbc9   :  { %5578 = vmatpush1.bf16.msra.mxu0 %v5161_v19  ;;  %5660 = vmatpush1.bf16.msra.mxu1 %v5163_v52  ;;  %v5282_v19 = vld [vmem:[#allocation6 + $0x5a8] sm:$0xff]  ;;  %v5284_v52 = vld [vmem:[#allocation6 + $0x5b8] sm:$0xff] }
 0xbca   :  { %5579 = vmatprep.subr.bf16.mxu0 %v5170_v15  ;;  %5661 = vmatprep.subr.bf16.mxu1 %v5172_v16  ;;  %v5281_v15 = vld [vmem:[#allocation6 + $0x5a0] sm:$0xff]  ;;  %v5283_v16 = vld [vmem:[#allocation6 + $0x5b0] sm:$0xff] }
 0xbcd   :  { %5580 = vmatpush1.bf16.msra.mxu0 %v5169_v41  ;;  %5662 = vmatpush1.bf16.msra.mxu1 %v5171_v17  ;;  %v5290_v41 = vld [vmem:[#allocation6 + $0x5e8] sm:$0xff]  ;;  %v5292_v17 = vld [vmem:[#allocation6 + $0x5f8] sm:$0xff] }
 0xbce   :  { %5581 = vmatprep.subr.bf16.mxu0 %v5178_v18  ;;  %5663 = vmatprep.subr.bf16.mxu1 %v5180_v22  ;;  %v5289_v18 = vld [vmem:[#allocation6 + $0x5e0] sm:$0xff]  ;;  %v5291_v22 = vld [vmem:[#allocation6 + $0x5f0] sm:$0xff] }
 0xbd1   :  { %5582 = vmatpush1.bf16.msra.mxu0 %v5177_v25  ;;  %5664 = vmatpush1.bf16.msra.mxu1 %v5179_v26  ;;  %v5298_v25 = vld [vmem:[#allocation6 + $0x628] sm:$0xff]  ;;  %v5300_v26 = vld [vmem:[#allocation6 + $0x638] sm:$0xff] }
 0xbd2   :  { %5583 = vmatprep.subr.bf16.mxu0 %v5186_v27  ;;  %5665 = vmatprep.subr.bf16.mxu1 %v5188_v28  ;;  %v5297_v27 = vld [vmem:[#allocation6 + $0x620] sm:$0xff]  ;;  %v5299_v28 = vld [vmem:[#allocation6 + $0x630] sm:$0xff] }
 0xbd5   :  { %5584 = vmatpush1.bf16.msra.mxu0 %v5185_v29  ;;  %5666 = vmatpush1.bf16.msra.mxu1 %v5187_v30  ;;  %v5306_v29 = vld [vmem:[#allocation6 + $0x668] sm:$0xff]  ;;  %v5308_v30 = vld [vmem:[#allocation6 + $0x678] sm:$0xff] }
 0xbd6   :  { %5585 = vmatprep.subr.bf16.mxu0 %v5194_v36  ;;  %5667 = vmatprep.subr.bf16.mxu1 %v5196_v37  ;;  %v5305_v36 = vld [vmem:[#allocation6 + $0x660] sm:$0xff]  ;;  %v5307_v37 = vld [vmem:[#allocation6 + $0x670] sm:$0xff] }
 0xbd9   :  { %5586 = vmatpush1.bf16.msra.mxu0 %v5193_v32  ;;  %5668 = vmatpush1.bf16.msra.mxu1 %v5195_v14  ;;  %v5314_v32 = vld [vmem:[#allocation6 + $0x6a8] sm:$0xff]  ;;  %v5316_v14 = vld [vmem:[#allocation6 + $0x6b8] sm:$0xff] }
 0xbda   :  { %5587 = vmatprep.subr.bf16.mxu0 %v5202_v31  ;;  %5669 = vmatprep.subr.bf16.mxu1 %v5204_v33  ;;  %v5313_v31 = vld [vmem:[#allocation6 + $0x6a0] sm:$0xff]  ;;  %v5315_v33 = vld [vmem:[#allocation6 + $0x6b0] sm:$0xff] }
 0xbdd   :  { %5588 = vmatpush1.bf16.msra.mxu0 %v5201_v34  ;;  %5670 = vmatpush1.bf16.msra.mxu1 %v5203_v35  ;;  %v5322_v34 = vld [vmem:[#allocation6 + $0x6e8] sm:$0xff]  ;;  %v5324_v35 = vld [vmem:[#allocation6 + $0x6f8] sm:$0xff] }
 0xbde   :  { %5589 = vmatprep.subr.bf16.mxu0 %v5210_v38  ;;  %5671 = vmatprep.subr.bf16.mxu1 %v5212_v20  ;;  %v5321_v38 = vld [vmem:[#allocation6 + $0x6e0] sm:$0xff]  ;;  %v5323_v20 = vld [vmem:[#allocation6 + $0x6f0] sm:$0xff] }
 0xbe1   :  { %5590 = vmatpush1.bf16.msra.mxu0 %v5209_v40  ;;  %5672 = vmatpush1.bf16.msra.mxu1 %v5211_v42  ;;  %v5330_v40 = vld [vmem:[#allocation6 + $0x728] sm:$0xff]  ;;  %v5332_v42 = vld [vmem:[#allocation6 + $0x738] sm:$0xff] }
 0xbe2   :  { %5591 = vmatprep.subr.bf16.mxu0 %v5218_v43  ;;  %5673 = vmatprep.subr.bf16.mxu1 %v5220_v23  ;;  %v5329_v43 = vld [vmem:[#allocation6 + $0x720] sm:$0xff]  ;;  %v5331_v23 = vld [vmem:[#allocation6 + $0x730] sm:$0xff] }
 0xbe5   :  { %5592 = vmatpush1.bf16.msra.mxu0 %v5217_v45  ;;  %5674 = vmatpush1.bf16.msra.mxu1 %v5219_v46  ;;  %v5338_v45 = vld [vmem:[#allocation6 + $0x768] sm:$0xff]  ;;  %v5340_v46 = vld [vmem:[#allocation6 + $0x778] sm:$0xff] }
 0xbe6   :  { %5593 = vmatprep.subr.bf16.mxu0 %v5226_v47  ;;  %5675 = vmatprep.subr.bf16.mxu1 %v5228_v48  ;;  %v5337_v47 = vld [vmem:[#allocation6 + $0x760] sm:$0xff]  ;;  %v5339_v48 = vld [vmem:[#allocation6 + $0x770] sm:$0xff] }
 0xbe9   :  { %5594 = vmatpush1.bf16.msra.mxu0 %v5225_v55  ;;  %5676 = vmatpush1.bf16.msra.mxu1 %v5227_v56  ;;  %v5346_v55 = vld [vmem:[#allocation6 + $0x7a8] sm:$0xff]  ;;  %v5348_v56 = vld [vmem:[#allocation6 + $0x7b8] sm:$0xff] }
 0xbea   :  { %5604 = vmatprep.subr.bf16.mxu0 %v5234_v21  ;;  %5686 = vmatprep.subr.bf16.mxu1 %v5236_v57  ;;  %v5345_v21 = vld [vmem:[#allocation6 + $0x7a0] sm:$0xff]  ;;  %v5347_v57 = vld [vmem:[#allocation6 + $0x7b0] sm:$0xff] }
 0xbec   :  { %5596 = vmatmul.mubr.bf16.vlgmr.msra.gmra.mrb[40].mxu0 %v8036_v8  ;;  %5678 = vmatmul.mubr.bf16.vlgmr.msra.gmra.mrb[40].mxu1 %v8036_v8  ;;  %v5260_v8 = vld [vmem:[#allocation6 + $0x4f8] sm:$0xff] }
 0xbed   :  { %5605 = vmatpush1.bf16.msra.mxu0 %v5233_v58  ;;  %5687 = vmatpush1.bf16.msra.mxu1 %v5235_v59  ;;  %v5354_v58 = vld [vmem:[#allocation6 + $0x7e8] sm:$0xff]  ;;  %v5356_v59 = vld [vmem:[#allocation6 + $0x7f8] sm:$0xff] }
 0xbee   :  { %5606 = vmatprep.subr.bf16.mxu0 %v5242_v60  ;;  %5688 = vmatprep.subr.bf16.mxu1 %v5244_v61  ;;  %v5353_v60 = vld [vmem:[#allocation6 + $0x7e0] sm:$0xff]  ;;  %v5355_v61 = vld [vmem:[#allocation6 + $0x7f0] sm:$0xff] }
 0xbef   :  { %5636 = vmatprep.mubr.bf16.mxu0 %v8040_v39  ;;  %5718 = vmatprep.mubr.bf16.mxu1 %v8040_v39  ;;  %v5265_v39 = vld [vmem:[#allocation6 + $0x520] sm:$0xff] }
 0xbf1   :  { %5607 = vmatpush1.bf16.msra.mxu0 %v5241_v62  ;;  %5689 = vmatpush1.bf16.msra.mxu1 %v5243_v63  ;;  %v5357_v62 = vld [vmem:[%s8108_s5] sm:$0xff] }
 0xbf2   :  { %5608 = vmatprep.subr.bf16.mxu0 %v5250_v0  ;;  %5690 = vmatprep.subr.bf16.mxu1 %v5252_v1  ;;  %v5362_v63 = vrot.slane %v5357_v62, %v7816_v50  ;;  %v5370_v0 = vrot.slane %v5357_v62, %v7819_v51  ;;  %v5366_v1 = vrot.slane %v5357_v62, %v7823_v53  ;;  %v5377_v53 = vsub.s32 4, %v7813_v49 }
 0xbf5   :  { %5609 = vmatpush1.bf16.msra.mxu0 %v5249_v24  ;;  %5691 = vmatpush1.bf16.msra.mxu1 %v5251_v2  ;;  %v5374_v24 = vrot.slane %v5357_v62, %v7826_v54  ;;  %v5385_v54 = vsub.s32 6, %v7813_v49 }
 0xbf6   :  { %5610 = vmatprep.subr.bf16.mxu0 %v5258_v3  ;;  %5692 = vmatprep.subr.bf16.mxu1 %v5260_v8 }
 0xbf9   :  { %5611 = vmatpush1.bf16.msra.mxu0 %v5257_v4  ;;  %5693 = vmatpush1.bf16.msra.mxu1 %v5259_v5 }
 0xbfa   :  { %5612 = vmatprep.subr.bf16.mxu0 %v5266_v6  ;;  %5694 = vmatprep.subr.bf16.mxu1 %v5268_v7 }
 0xbfd   :  { %5613 = vmatpush1.bf16.msra.mxu0 %v5265_v39  ;;  %5695 = vmatpush1.bf16.msra.mxu1 %v5267_v9 }
 0xbfe   :  { %5614 = vmatprep.subr.bf16.mxu0 %v5274_v10  ;;  %5696 = vmatprep.subr.bf16.mxu1 %v5276_v11  ;;  %v5381_v10 = vsub.s32 5, %v7813_v49  ;;  %v5389_v11 = vsub.s32 7, %v7813_v49 }
 0xc01   :  { %5615 = vmatpush1.bf16.msra.mxu0 %v5273_v12  ;;  %5697 = vmatpush1.bf16.msra.mxu1 %v5275_v13  ;;  %v5378_v12 = vrot.slane %v5357_v62, %v5377_v53  ;;  %v5386_v13 = vrot.slane %v5357_v62, %v5385_v54 }
 0xc02   :  { %5616 = vmatprep.subr.bf16.mxu0 %v5282_v19  ;;  %5698 = vmatprep.subr.bf16.mxu1 %v5284_v52  ;;  %v5382_v19 = vrot.slane %v5357_v62, %v5381_v10  ;;  %v5390_v52 = vrot.slane %v5357_v62, %v5389_v11 }
 0xc05   :  { %5617 = vmatpush1.bf16.msra.mxu0 %v5281_v15  ;;  %5699 = vmatpush1.bf16.msra.mxu1 %v5283_v16 }
 0xc06   :  { %5618 = vmatprep.subr.bf16.mxu0 %v5290_v41  ;;  %5700 = vmatprep.subr.bf16.mxu1 %v5292_v17 }
 0xc09   :  { %5619 = vmatpush1.bf16.msra.mxu0 %v5289_v18  ;;  %5701 = vmatpush1.bf16.msra.mxu1 %v5291_v22 }
 0xc0a   :  { %5620 = vmatprep.subr.bf16.mxu0 %v5298_v25  ;;  %5702 = vmatprep.subr.bf16.mxu1 %v5300_v26 }
 0xc0d   :  { %5621 = vmatpush1.bf16.msra.mxu0 %v5297_v27  ;;  %5703 = vmatpush1.bf16.msra.mxu1 %v5299_v28 }
 0xc0e   :  { %5622 = vmatprep.subr.bf16.mxu0 %v5306_v29  ;;  %5704 = vmatprep.subr.bf16.mxu1 %v5308_v30 }
 0xc11   :  { %5623 = vmatpush1.bf16.msra.mxu0 %v5305_v36  ;;  %5705 = vmatpush1.bf16.msra.mxu1 %v5307_v37 }
 0xc12   :  { %5624 = vmatprep.subr.bf16.mxu0 %v5314_v32  ;;  %5706 = vmatprep.subr.bf16.mxu1 %v5316_v14 }
 0xc15   :  { %5625 = vmatpush1.bf16.msra.mxu0 %v5313_v31  ;;  %5707 = vmatpush1.bf16.msra.mxu1 %v5315_v33 }
 0xc16   :  { %5626 = vmatprep.subr.bf16.mxu0 %v5322_v34  ;;  %5708 = vmatprep.subr.bf16.mxu1 %v5324_v35 }
 0xc19   :  { %5627 = vmatpush1.bf16.msra.mxu0 %v5321_v38  ;;  %5709 = vmatpush1.bf16.msra.mxu1 %v5323_v20 }
 0xc1a   :  { %5628 = vmatprep.subr.bf16.mxu0 %v5330_v40  ;;  %5710 = vmatprep.subr.bf16.mxu1 %v5332_v42 }
 0xc1d   :  { %5629 = vmatpush1.bf16.msra.mxu0 %v5329_v43  ;;  %5711 = vmatpush1.bf16.msra.mxu1 %v5331_v23 }
 0xc1e   :  { %5630 = vmatprep.subr.bf16.mxu0 %v5338_v45  ;;  %5712 = vmatprep.subr.bf16.mxu1 %v5340_v46 }
 0xc21   :  { %5631 = vmatpush1.bf16.msra.mxu0 %v5337_v47  ;;  %5713 = vmatpush1.bf16.msra.mxu1 %v5339_v48 }
 0xc22   :  { %5632 = vmatprep.subr.bf16.mxu0 %v5346_v55  ;;  %5714 = vmatprep.subr.bf16.mxu1 %v5348_v56 }
 0xc25   :  { %5633 = vmatpush1.bf16.msra.mxu0 %v5345_v21  ;;  %5715 = vmatpush1.bf16.msra.mxu1 %v5347_v57 }
 0xc26   :  { %5634 = vmatprep.subr.bf16.mxu0 %v5354_v58  ;;  %5716 = vmatprep.subr.bf16.mxu1 %v5356_v59 }
 0xc29   :  { %5635 = vmatpush1.bf16.msra.mxu0 %v5353_v60  ;;  %5717 = vmatpush1.bf16.msra.mxu1 %v5355_v61 }
 0xc2c   :  { %5637 = vmatmul.mubr.bf16.vlgmr.msra.gmra.mrb[40].mxu0 %v8048_v44  ;;  %5719 = vmatmul.mubr.bf16.vlgmr.msra.gmra.mrb[40].mxu1 %v8048_v44 }
 0xc7f   :  { %v5474_v2 = vpop.f32.mrb[36].mxu0  ;;  %v5556_v3 = vpop.f32.mrb[36].mxu1 }
 0xc80   :  { %v6397_v8 = vadd.f32 %v5474_v2, %v5362_v63  ;;  %v6399_v4 = vadd.f32 %v5556_v3, %v5370_v0  ;;  %v5476_v5 = vpop.f32.mrb[37].mxu0  ;;  %v5558_v6 = vpop.f32.mrb[37].mxu1 }
 0xc81   :  { %v6398_v44 = vadd.f32 %v5476_v5, %v5366_v1  ;;  %v6400_v7 = vadd.f32 %v5558_v6, %v5374_v24  ;;  %v5478_v39 = vpop.f32.mrb[38].mxu0  ;;  %v5560_v9 = vpop.f32.mrb[38].mxu1 }
 0xc82   :  { %5727 = vst [vmem:[%s7511_s17] sm:$0xff] %v6397_v8  ;;  %5729 = vst [vmem:[%s7511_s17 + $0x10] sm:$0xff] %v6399_v4  ;;  %v5479_v50 = vpop.f32.mrb[39].mxu0  ;;  %v5561_v51 = vpop.f32.mrb[39].mxu1 }
 0xc83   :  { %5728 = vst [vmem:[%s7511_s17 + $0x8] sm:$0xff] %v6398_v44  ;;  %5730 = vst [vmem:[%s7511_s17 + $0x18] sm:$0xff] %v6400_v7 }
 0xcff   :  { %v5638_v15 = vpop.f32.mrb[40].mxu0  ;;  %v5720_v16 = vpop.f32.mrb[40].mxu1 }
 0xd00   :  { %v6401_v41 = vadd.f32 %v5638_v15, %v5378_v12  ;;  %v6403_v17 = vadd.f32 %v5720_v16, %v5386_v13  ;;  %v5640_v18 = vpop.f32.mrb[41].mxu0  ;;  %v5722_v22 = vpop.f32.mrb[41].mxu1 }
 0xd01   :  { %v6402_v25 = vadd.f32 %v5640_v18, %v5382_v19  ;;  %v6404_v26 = vadd.f32 %v5722_v22, %v5390_v52  ;;  %v5642_v27 = vpop.f32.mrb[42].mxu0  ;;  %v5724_v28 = vpop.f32.mrb[42].mxu1 }
 0xd02   :  { %5731 = vst [vmem:[%s7511_s17 + $0x20] sm:$0xff] %v6401_v41  ;;  %5733 = vst [vmem:[%s7511_s17 + $0x30] sm:$0xff] %v6403_v17  ;;  %v5643_v49 = vpop.f32.mrb[43].mxu0  ;;  %v5725_v29 = vpop.f32.mrb[43].mxu1 }
 0xd03   :  { %5732 = vst [vmem:[%s7511_s17 + $0x28] sm:$0xff] %v6402_v25  ;;  %5734 = vst [vmem:[%s7511_s17 + $0x38] sm:$0xff] %v6404_v26 }
 0xd04   :  { %5748 = vsyncpa [#allocation9], 1 }
 0xd05   :  { %5749 = vsyncpa [#allocation11], 1 }
 0xd06   :  { %5750 = vsyncpa [#allocation14], 1 }
 0xd07   :  { %5751 = vsyncpa [#allocation17], 1 }
 0xd08   :  { %5752 = vsyncpa [#allocation20], 1 }
 0xd09   :  { %5753 = vsyncpa [#allocation23], 1 }
 0xd0a   :  { %5754 = vsyncmov [#allocation7] }
 0xd0d   :  { %s5755_s30 = vpop.sfrf %5754 }
 0xd0e   :  { %p6232_p4 = scmp.ne.s32.totalorder %s5755_s30, 0 }
 0xd10   :  { %5759 = shalt.err (%p6232_p4)  }
 0xd11   :  { %5761 = vsyncmov [#allocation7 + $0x1] }
 0xd14   :  { %s5762_s12 = vpop.sfrf %5761 }
 0xd15   :  { %p6233_p5 = scmp.ne.s32.totalorder %s5762_s12, 0 }
 0xd17   :  { %5766 = shalt.err (%p6233_p5)  }
 0xd18   :  { %5768 = vsyncmov [#allocation7 + $0x2] }
 0xd1b   :  { %s5769_s27 = vpop.sfrf %5768 }
 0xd1c   :  { %p6234_p6 = scmp.ne.s32.totalorder %s5769_s27, 0 }
 0xd1e   :  { %5773 = shalt.err (%p6234_p6)  }
 0xd1f   :  { %5775 = vsyncmov [#allocation7 + $0x3] }
 0xd22   :  { %s5776_s17 = vpop.sfrf %5775 }
 0xd23   :  { %p6235_p7 = scmp.ne.s32.totalorder %s5776_s17, 0 }
 0xd25   :  { %5780 = shalt.err (%p6235_p7)  }
 0xd26   :  { %5782 = vsyncmov [#allocation7 + $0x4] }
 0xd29   :  { %s5783_s8 = vpop.sfrf %5782 }
 0xd2a   :  { %p6236_p8 = scmp.ne.s32.totalorder %s5783_s8, 0 }
 0xd2c   :  { %5787 = shalt.err (%p6236_p8)  }

</bundles_post_ra>
